<compile_context>
chip_gen: v6e
topology: v6e:2x2x1
jax: 0.10.0
libtpu: 0.0.40
codegen_flags: <defaults>
</compile_context>

<pallas_src>
import jax
import jax.numpy as jnp
from jax.experimental import pallas as pl
from jax.experimental.pallas import tpu as pltpu


def _cdiv(a, b):
    return -(-a // b)


def _round_up(v, m):
    return _cdiv(v, m) * m


def _round_down(v, m):
    return (v // m) * m


def _make_rowwise_dot_kernel(d_valid, td):
    """Kernel: accumulate sum(x * y) over the feature (lane) axis.

    Grid = (row_blocks, feature_blocks). Rows are "parallel", the feature axis
    is a reduction ("arbitrary"); acc_ref is a (tn, 1) f32 scratch that lives
    across the feature-axis steps of one row block.
    """
    mask_needed = (d_valid % td) != 0

    def kernel(x_ref, y_ref, o_ref, acc_ref):
        k = pl.program_id(1)

        @pl.when(k == 0)
        def _init():
            acc_ref[...] = jnp.zeros_like(acc_ref)

        # Upcast to f32 inside the kernel (inputs stream in native dtype).
        prod = x_ref[...].astype(jnp.float32) * y_ref[...].astype(jnp.float32)
        if mask_needed:
            # Ragged last feature block: out-of-bounds lanes hold unspecified
            # data; zero them before the cross-lane reduce (cheap VPU select).
            col = k * td + jax.lax.broadcasted_iota(jnp.int32, prod.shape, 1)
            prod = jnp.where(col < d_valid, prod, 0.0)
        acc_ref[...] += jnp.sum(prod, axis=-1, keepdims=True)

        @pl.when(k == pl.num_programs(1) - 1)
        def _store():
            o_ref[...] = acc_ref[...].astype(o_ref.dtype)

    return kernel


# Budgets sized against v7x (smallest VMEM of v5e/v6e/v7x: 64 MiB physical/TC).
_TARGET_BLOCK_BYTES = 4 * 1024 * 1024   # per-input block target (>=85% of HBM roofline)
_MAX_BLOCK_BYTES = 6 * 1024 * 1024      # hard cap per input block
_VMEM_WORKING_BYTES = 24 * 1024 * 1024  # inputs(x2 buf) + out(x2 buf) + accumulator
_VMEM_LIMIT_BYTES = 40 * 1024 * 1024    # explicit scoped-VMEM limit (> default on all gens)
_MIN_TN = 512                           # amortize ~0.35 us per-grid-step overhead
_FAST_PATH_BYTES = 1 * 1024 * 1024      # below this, XLA fusion beats the launch cost


def _rowwise_dot(x, y):
    """Row-wise dot product (f32 accumulation) via a tiled Pallas TPU kernel."""
    n, d = x.shape
    itemsize = max(jnp.dtype(x.dtype).itemsize, jnp.dtype(y.dtype).itemsize)
    n8 = _round_up(n, 8)
    row_bytes = d * itemsize

    # ---- feature tile (td) ------------------------------------------------
    if _MIN_TN * row_bytes <= _MAX_BLOCK_BYTES:
        td = d  # whole feature dim fits in one block at a healthy row tile
    else:
        # Very large d: reduce over 128-aligned feature chunks so the row tile
        # stays large (lane-/DMA-efficient). Balance the chunk count so the
        # masked last block wastes as little as possible.
        td_cap = max(128, _round_down(_TARGET_BLOCK_BYTES // (_MIN_TN * itemsize), 128))
        n_chunks = _cdiv(d, td_cap)
        td = min(td_cap, _round_up(_cdiv(d, n_chunks), 128))

    # ---- row tile (tn) ----------------------------------------------------
    # VMEM accounting per row: 2 inputs x 2 pipeline buffers x td*itemsize,
    # plus (2 output buffers + 1 accumulator) x 512 B — a (tn, 1) f32 array in
    # VMEM is lane-padded to 128 lanes (512 B per row).
    per_row_vmem = 4 * td * itemsize + 3 * 512
    tn = max(_MIN_TN, _round_down(_TARGET_BLOCK_BYTES // max(td * itemsize, 1), 8))
    tn = min(tn, max(8, _round_down(_VMEM_WORKING_BYTES // per_row_vmem, 8)))
    tn = max(8, min(tn, n8))
    # v7x has 2 TensorCores/chip: keep >= 2 balanced steps on the parallel row
    # axis whenever the problem is big enough to care.
    half = _round_up(_cdiv(n8, 2), 8)
    if half >= _MIN_TN:
        tn = min(tn, half)

    grid = (_cdiv(n, tn), _cdiv(d, td))

    out = pl.pallas_call(
        _make_rowwise_dot_kernel(d, td),
        out_shape=jax.ShapeDtypeStruct((n, 1), jnp.float32),
        grid_spec=pltpu.PrefetchScalarGridSpec(
            num_scalar_prefetch=0,
            grid=grid,
            in_specs=[
                pl.BlockSpec((tn, td), lambda i, k: (i, k)),
                pl.BlockSpec((tn, td), lambda i, k: (i, k)),
            ],
            out_specs=pl.BlockSpec((tn, 1), lambda i, k: (i, 0)),
            scratch_shapes=[pltpu.VMEM((tn, 1), jnp.float32)],
        ),
        compiler_params=pltpu.CompilerParams(
            dimension_semantics=("parallel", "arbitrary"),
            vmem_limit_bytes=_VMEM_LIMIT_BYTES,
        ),
    )(x, y)
    return out[:, 0]


class Similarity:
    """Dot-product similarity: (x @ y.T).diagonal(), Pallas TPU backed."""

    def __init__(self, temp):
        self.temp = temp  # unused in forward(), kept for module fidelity
        # TODO(synk): nn.CosineSimilarity member is never used in forward(); not ported.

    def __call__(self, x, y):
        # torch.diagonal of the (Nx, Ny) product keeps min(Nx, Ny) entries.
        n = min(x.shape[0], y.shape[0])
        x = x[:n]
        y = y[:n]
        result_dtype = jnp.promote_types(x.dtype, y.dtype)

        total_bytes = (x.size * jnp.dtype(x.dtype).itemsize
                       + y.size * jnp.dtype(y.dtype).itemsize)
        if n < 8 or x.shape[1] == 0 or total_bytes < _FAST_PATH_BYTES:
            # Tiny problem: pallas_call launch / pipeline-prologue cost dominates.
            s = jnp.sum(x.astype(jnp.float32) * y.astype(jnp.float32), axis=-1)
            return s.astype(result_dtype)

        return _rowwise_dot(x, y).astype(result_dtype)


if __name__ == "__main__":
    key = jax.random.PRNGKey(0)
    k1, k2, k3, k4, k5, k6 = jax.random.split(key, 6)

    sim = Similarity(temp=0.05)

    def ref(a, b):
        return jnp.sum(a.astype(jnp.float32) * b.astype(jnp.float32), axis=-1)

    # 1) Small module-scale case (batch=8, hidden=32): fast path, checked
    #    against the literal PyTorch formula.
    x = jax.random.normal(k1, (8, 32), dtype=jnp.float32)
    y = jax.random.normal(k2, (8, 32), dtype=jnp.float32)
    out = jax.block_until_ready(sim(x, y))
    assert out.shape == (8,), out.shape
    assert jnp.allclose(out, jnp.diagonal(x @ y.T), atol=1e-3, rtol=1e-3)

    # 2) bf16, ragged batch: exercises the Pallas kernel (2 parallel row blocks,
    #    masked partial last row block) with in-kernel f32 accumulation.
    xb = jax.random.normal(k3, (1030, 768), dtype=jnp.bfloat16)
    yb = jax.random.normal(k4, (1030, 768), dtype=jnp.bfloat16)
    outb = jax.block_until_ready(sim(xb, yb))
    assert outb.shape == (1030,), outb.shape
    assert outb.dtype == jnp.bfloat16, outb.dtype
    assert jnp.allclose(outb.astype(jnp.float32), ref(xb, yb), atol=5e-1, rtol=2e-2)

    # 3) Large feature dim: exercises the feature-axis reduction grid
    #    (accumulator + pl.when init/finalize) and the in-kernel ragged-lane mask.
    xl = jax.random.normal(k5, (600, 3200), dtype=jnp.float32)
    yl = jax.random.normal(k6, (600, 3200), dtype=jnp.float32)
    outl = jax.block_until_ready(sim(xl, yl))
    assert outl.shape == (600,), outl.shape
    assert jnp.allclose(outl, ref(xl, yl), atol=1e-2, rtol=1e-4)

    print("KERNEL_OK")
</pallas_src>

<mosaic_0001>
module attributes {stable_mosaic.version = 11 : i64} {
  func.func @kernel(%arg0: i32, %arg1: i32, %arg2: memref<520x768xbf16, #tpu.memory_space<vmem>>, %arg3: memref<520x768xbf16, #tpu.memory_space<vmem>>, %arg4: memref<520x1xf32, #tpu.memory_space<vmem>>, %arg5: memref<520x1xf32, #tpu.memory_space<vmem>>) attributes {dimension_semantics = [#tpu.dimension_semantics<parallel>, #tpu.dimension_semantics<arbitrary>], iteration_bounds = array<i64: 2, 1>, scalar_prefetch = 0 : i64, scratch_operands = 1 : i64, tpu.core_type = #tpu.core_type<tc>, window_params = [{transform_indices = @transform_0, window_bounds = array<i64: 520, 768>}, {transform_indices = @transform_1, window_bounds = array<i64: 520, 768>}, {transform_indices = @transform_2, window_bounds = array<i64: 520, 1>}]} {
    %c0_i32 = arith.constant 0 : i32
    %0 = arith.cmpi eq, %arg1, %c0_i32 : i32
    %1 = arith.extui %0 : i1 to i32
    %c0_i32_0 = arith.constant 0 : i32
    %2 = arith.cmpi ne, %1, %c0_i32_0 : i32
    scf.if %2 {
      %cst_10 = arith.constant 0.000000e+00 : f32
      %16 = vector.broadcast %cst_10 : f32 to vector<520x1xf32>
      %c0_11 = arith.constant 0 : index
      %c0_12 = arith.constant 0 : index
      %17 = vector.load %arg5[%c0_11, %c0_12] : memref<520x1xf32, #tpu.memory_space<vmem>>, vector<520x1xf32>
      tpu.vector_store %arg5[%c0_11, %c0_12], %16 {strides = array<i32>} : memref<520x1xf32, #tpu.memory_space<vmem>>, vector<520x1xf32>,
    } else {
    }
    %c0 = arith.constant 0 : index
    %c0_1 = arith.constant 0 : index
    %3 = vector.load %arg2[%c0, %c0_1] : memref<520x768xbf16, #tpu.memory_space<vmem>>, vector<520x768xbf16>
    %4 = arith.extf %3 : vector<520x768xbf16> to vector<520x768xf32>
    %c0_2 = arith.constant 0 : index
    %c0_3 = arith.constant 0 : index
    %5 = vector.load %arg3[%c0_2, %c0_3] : memref<520x768xbf16, #tpu.memory_space<vmem>>, vector<520x768xbf16>
    %6 = arith.extf %5 : vector<520x768xbf16> to vector<520x768xf32>
    %7 = arith.mulf %4, %6 : vector<520x768xf32>
    %c0_4 = arith.constant 0 : index
    %c0_5 = arith.constant 0 : index
    %8 = vector.load %arg5[%c0_4, %c0_5] : memref<520x1xf32, #tpu.memory_space<vmem>>, vector<520x1xf32>
    %cst = arith.constant dense<0.000000e+00> : vector<520xf32>
    %9 = vector.multi_reduction <add>, %7, %cst [1] : vector<520x768xf32> to vector<520xf32>
    %10 = vector.shape_cast %9 : vector<520xf32> to vector<520x1xf32>
    %11 = arith.addf %8, %10 : vector<520x1xf32>
    %c0_6 = arith.constant 0 : index
    %c0_7 = arith.constant 0 : index
    %12 = vector.load %arg5[%c0_6, %c0_7] : memref<520x1xf32, #tpu.memory_space<vmem>>, vector<520x1xf32>
    tpu.vector_store %arg5[%c0_6, %c0_7], %11 {strides = array<i32>} : memref<520x1xf32, #tpu.memory_space<vmem>>, vector<520x1xf32>,
    %c0_i32_8 = arith.constant 0 : i32
    %13 = arith.cmpi eq, %arg1, %c0_i32_8 : i32
    %14 = arith.extui %13 : i1 to i32
    %c0_i32_9 = arith.constant 0 : i32
    %15 = arith.cmpi ne, %14, %c0_i32_9 : i32
    scf.if %15 {
      %c0_10 = arith.constant 0 : index
      %c0_11 = arith.constant 0 : index
      %16 = vector.load %arg5[%c0_10, %c0_11] : memref<520x1xf32, #tpu.memory_space<vmem>>, vector<520x1xf32>
      %c0_12 = arith.constant 0 : index
      %c0_13 = arith.constant 0 : index
      %17 = vector.load %arg4[%c0_12, %c0_13] : memref<520x1xf32, #tpu.memory_space<vmem>>, vector<520x1xf32>
      tpu.vector_store %arg4[%c0_12, %c0_13], %16 {strides = array<i32>} : memref<520x1xf32, #tpu.memory_space<vmem>>, vector<520x1xf32>,
    } else {
    }
    return
  }
  func.func @transform_0(%arg0: i32, %arg1: i32) -> (i32, i32) {
    %c0_i32 = arith.constant 0 : i32
    return %arg0, %arg1 : i32, i32
  }
  func.func @transform_1(%arg0: i32, %arg1: i32) -> (i32, i32) {
    %c0_i32 = arith.constant 0 : i32
    return %arg0, %arg1 : i32, i32
  }
  func.func @transform_2(%arg0: i32, %arg1: i32) -> (i32, i32) {
    %c0_i32 = arith.constant 0 : i32
    %c0_i32_0 = arith.constant 0 : i32
    return %arg0, %c0_i32 : i32, i32
  }
}

</mosaic_0001>

<bundles_post_ra>
// kernel: tpu_custom_call.1
= control target key start
LH: loop header
LB: loop body
LE: loop exit
PB: predicated region body
PF: predicated region fallthrough
CT: control target
= control target key end

     0   :  { %7 = vsyncpa [#allocation4], 0  ;;  %s4810_s0 = inlined_call_operand.hbm [shape: bf16[1030,768], index: 0, kind: input, shape index: {}]   ;;  %s4811_s1 = inlined_call_operand.hbm [shape: bf16[1030,768], index: 1, kind: input, shape index: {}]   ;;  %s4812_s2 = inlined_call_operand.vmem [shape: f32[1030,1], index: 2, kind: output, shape index: {}]  }
   0x1   :  { %9 = vsyncpa [#allocation4 + $0x1], 0 }
   0x2   :  { %10 = vsyncpa [#allocation6], 0 }
   0x3   :  { %12 = vsyncpa [#allocation6 + $0x1], 0  ;;  %s3537_s9 = smov 0   ;;  %s3539_s10 = smov 0  }
   0x4   :  { %s3541_s11 = smov 0   ;;  %s3543_s12 = smov 0  }
   0x5   :  { %s3545_s13 = smov 0   ;;  %s3547_s14 = smov 0  }
   0x6 LB: > { %s3183_s15 = sadd.s32 4294967295, %s3481_s14   ;;  %s30_s16 = sadd.s32 1, %s3477_s13  ;;  %s3481_s14 = sphi %s3547_s14, %s18_s14   ;;  %s3477_s13 = sphi %s3545_s13, %s4829_s13   ;;  %s3473_s12 = sphi %s3543_s12, %s4828_s12   ;;  %s3469_s11 = sphi %s3541_s11, %s4827_s11   ;;  %s3465_s10 = sphi %s3539_s10, %s4826_s10   ;;  %s3461_s9 = sphi %s3537_s9, %s4825_s9  }
   0x7   : > { %p32_p0 = scmp.ge.s32.totalorder %s30_s16, 2  ;;  %s39_s17 = sadd.s32 1, %s3469_s11 }
   0x8   : > { %p46_p1 = scmp.ne.s32.totalorder %s3469_s11, %s3465_s10  ;;  %p47_p2 = scmp.eq.s32.totalorder %s3481_s14, 0 }
   0x9   : > { %s4831_s16 = smov (%p32_p0, %s30_s16), 0  ;;  %p52_p4 = scmp.ne.s32.totalorder %s3465_s10, %s3461_s9 }
   0xa   : > { %p3573_p3 = por %p47_p2, %p46_p1  ;;  %s34_s19 = ssub.s32 %s3477_s13, %s4831_s16 }
   0xb   : > { %p53_p5 = scmp.eq.s32.totalorder %s3183_s15, 0  ;;  %p37_p6 = scmp.eq.s32.totalorder %s34_s19, 0 }
   0xc   : > { %p104_p7 = scmp.eq.s32.totalorder %s3183_s15, 1  ;;  %p3186_p10 = scmp.ge.s32.totalorder %s3481_s14, 2 }
   0xd   : > { %p3580_p8 = por %p53_p5, %p52_p4 }
   0xe   : > { %s3585_s21 = scalar_select %p37_p6, %s3469_s11, %s39_s17  }
   0xf   : > { %p3587_p9 = por %p104_p7, %p46_p1  ;;  %126 = sbr.rel (%p3186_p10) target bundleno = 90 (0x5a), region = 16 }
  0x14   : > { %129 = sbr.rel (!%p3573_p3) target bundleno = 55 (0x37), region = 20  ;;  %s130_s23 = sand.u32 (%p3573_p3), 1, %s3469_s11  }
  0x15   : > { %s135_s24 = smul.u32 (%p3573_p3), 65, %s3477_s13  ;;  %s3599_s29 = scalar_lea.sflag (%p3573_p3), [#allocation4], %s130_s23 }
  0x16   : > { %s3216_s25 = smul.u32 (%p3573_p3), 1560, %s130_s23 }
  0x17   : > { %s137_s26 = ssub.s32 (%p3573_p3), 129, %s135_s24 }
  0x18   : > { %p138_p11 = scmp.lt.s32.totalorder (%p3573_p3), %s137_s26, 65  ;;  %s134_s30 = scalar_lea.vmem (%p3573_p3), [#allocation3], %s3216_s25 }
  0x1a   : > { %s4833_s26 = smov (!%p138_p11, %s137_s26), 65 }
  0x1b   : > { %s3596_s27 = smul.u32 384, %s4833_s26 }
  0x1d   : > { %s143_s28 = ssub.s32 24960, %s3596_s27 }
  0x1e   : > { %144 = vsyncadd %s3599_s29, %s143_s28  ;;  %p3189_p12 = scmp.ne.s32.totalorder %s3596_s27, 0  ;;  %s3224_s3 = smul.u32 24960, %s3477_s13 }
  0x1f   : > { %s151_s4 = sshll.u32 %s134_s30, 4  ;;  %s3347_s17 = scalar_lea.hbm %s4810_s0, 49536  ;;  %s3609_s4 = int_to_ptr.vmem [resolvable:$true] %s151_s4 }
  0x20   : > { %s3607_s7 = scalar_lea.hbm %s4810_s0, %s3224_s3 }
  0x21   : > { %s3343_s8 = scalar_lea.hbm %s3607_s7, %s3596_s27 }
  0x22   : > { %p3344_p13 = scmp.ne.s32.totalorder %s3607_s7, %s3343_s8  ;;  %p3349_p2 = scmp.lt.s32.totalorder %s3347_s17, %s3343_s8 }
  0x24   : > { %p3345_p0 = pnand %p3344_p13, %p3189_p12 }
  0x26   : > { %p3346_p1 = pneg %p3345_p0 }
  0x28   : > { %p3351_p4 = pnand %p3349_p2, %p3346_p1 }
  0x2a   : > { %3354 = shalt.err (!%p3351_p4)
}
  0x2b   : > { %s3355_s19 = scalar_lea.vmem %s3609_s4, %s3596_s27  ;;  %s3515_s23 = smov [#allocation3]  }
  0x2c   : > { %p3356_p5 = scmp.ne.s32.totalorder %s3609_s4, %s3355_s19  ;;  %s3359_s24 = sshll.u32 %s3515_s23, 4  ;;  %s3360_s24 = int_to_ptr.vmem [resolvable:$false] %s3359_s24 }
  0x2d   : > { %s3361_s25 = scalar_lea.vmem %s3360_s24, 49920  ;;  %p3362_p10 = scmp.lt.s32.totalorder %s3609_s4, %s3360_s24 }
  0x2e   : > { %p3357_p6 = pnand %p3356_p5, %p3189_p12  ;;  %p3363_p11 = scmp.lt.s32.totalorder %s3361_s25, %s3355_s19 }
  0x30   : > { %p3358_p7 = pneg %p3357_p6  ;;  %p3364_p13 = por %p3363_p11, %p3362_p10 }
  0x32   : > { %p3365_p0 = pnand %p3364_p13, %p3358_p7 }
  0x34   : > { %3368 = shalt.err (!%p3365_p0)
}
  0x35   : > { %s3516_s26 = smov 384   ;;  %s3517_s28 = smov 24  }
  0x36   : > { %157 = dma.hbm_to_vmem [thread:$0]  (%p3189_p12), %s3607_s7, %s3596_s27, %s3609_s4, %s3599_s29, %s3516_s26, %s3516_s26, %s3517_s28  }
  0x37 PF: > { %160 = sbr.rel (!%p3573_p3) target bundleno = 90 (0x5a), region = 24  ;;  %s161_s30 = sand.u32 (%p3573_p3), 1, %s3469_s11  }
  0x38   : > { %s166_s3 = smul.u32 (%p3573_p3), 65, %s3477_s13  ;;  %s3638_s15 = scalar_lea.sflag (%p3573_p3), [#allocation6], %s161_s30 }
  0x39   : > { %s3218_s5 = smul.u32 (%p3573_p3), 1560, %s161_s30 }
  0x3a   : > { %s168_s6 = ssub.s32 (%p3573_p3), 129, %s166_s3 }
  0x3b   : > { %p169_p1 = scmp.lt.s32.totalorder (%p3573_p3), %s168_s6, 65  ;;  %s165_s27 = scalar_lea.vmem (%p3573_p3), [#allocation5], %s3218_s5 }
  0x3d   : > { %s4835_s6 = smov (!%p169_p1, %s168_s6), 65 }
  0x3e   : > { %s3635_s8 = smul.u32 384, %s4835_s6 }
  0x40   : > { %s174_s9 = ssub.s32 24960, %s3635_s8 }
  0x41   : > { %175 = vsyncadd %s3638_s15, %s174_s9  ;;  %p3194_p3 = scmp.ne.s32.totalorder %s3635_s8, 0  ;;  %s3225_s18 = smul.u32 24960, %s3477_s13 }
  0x42   : > { %s182_s29 = sshll.u32 %s165_s27, 4  ;;  %s3373_s25 = scalar_lea.hbm %s4811_s1, 49536  ;;  %s3648_s29 = int_to_ptr.vmem [resolvable:$true] %s182_s29 }
  0x43   : > { %s3646_s17 = scalar_lea.hbm %s4811_s1, %s3225_s18 }
  0x44   : > { %s3369_s19 = scalar_lea.hbm %s3646_s17, %s3635_s8 }
  0x45   : > { %p3370_p12 = scmp.ne.s32.totalorder %s3646_s17, %s3369_s19  ;;  %p3375_p5 = scmp.lt.s32.totalorder %s3373_s25, %s3369_s19 }
  0x47   : > { %p3371_p2 = pnand %p3370_p12, %p3194_p3 }
  0x49   : > { %p3372_p4 = pneg %p3371_p2 }
  0x4b   : > { %p3377_p6 = pnand %p3375_p5, %p3372_p4 }
  0x4d   : > { %3380 = shalt.err (!%p3377_p6)
}
  0x4e   : > { %s3381_s26 = scalar_lea.vmem %s3648_s29, %s3635_s8  ;;  %s3518_s28 = smov [#allocation5]  }
  0x4f   : > { %p3382_p7 = scmp.ne.s32.totalorder %s3648_s29, %s3381_s26  ;;  %s3385_s30 = sshll.u32 %s3518_s28, 4  ;;  %s3386_s30 = int_to_ptr.vmem [resolvable:$false] %s3385_s30 }
  0x50   : > { %s3387_s3 = scalar_lea.vmem %s3386_s30, 49920  ;;  %p3388_p13 = scmp.lt.s32.totalorder %s3648_s29, %s3386_s30 }
  0x51   : > { %p3383_p10 = pnand %p3382_p7, %p3194_p3  ;;  %p3389_p0 = scmp.lt.s32.totalorder %s3387_s3, %s3381_s26 }
  0x53   : > { %p3384_p11 = pneg %p3383_p10  ;;  %p3390_p1 = por %p3389_p0, %p3388_p13 }
  0x55   : > { %p3391_p12 = pnand %p3390_p1, %p3384_p11 }
  0x57   : > { %3394 = shalt.err (!%p3391_p12)
}
  0x58   : > { %s3519_s5 = smov 384   ;;  %s3520_s6 = smov 24  }
  0x59   : > { %188 = dma.hbm_to_vmem [thread:$0]  (%p3194_p3), %s3646_s17, %s3635_s8, %s3648_s29, %s3638_s15, %s3519_s5, %s3519_s5, %s3520_s6  }
  0x5a PF: > { %p3197_p2 = scmp.ge.s32.totalorder %s3481_s14, 1  ;;  %p190_p4 = scmp.lt.s32.totalorder %s3481_s14, 3 }
  0x5c   : > { %p191_p5 = pnand %p3197_p2, %p190_p4 }
  0x5e   : > { %194 = sbr.rel (%p191_p5) target bundleno = 702 (0x2be), region = 28 }
  0x63   : > { %s3673_s9 = sand.u32 1, %s3465_s10  }
  0x64   : > { %s3220_s27 = smul.u32 1560, %s3673_s9  ;;  %s197_s18 = scalar_lea.sflag [#allocation4], %s3673_s9 }
  0x66   : > { %s3677_s4 = scalar_lea.vmem [#allocation3], %s3220_s27 }
  0x67   : > { %3452 = dma.done.wait (%p3580_p8), %s197_s18, 24960  }
  0x68   : > { %3454 = vsyncadd (%p3580_p8), %s197_s18, 4294942336  ;;  %s206_s8 = scalar_lea.sflag [#allocation6], %s3673_s9  ;;  %s3684_s15 = scalar_lea.vmem [#allocation5], %s3220_s27 }
  0x69   : > { %3456 = dma.done.wait (%p3580_p8), %s206_s8, 24960  }
  0x6a   : > { %3458 = vsyncadd (%p3580_p8), %s206_s8, 4294942336  ;;  %v323_v0 = vld [vmem:[%s3677_s4] sm:$0xff]  ;;  %v324_v1 = vld [vmem:[%s3677_s4 + $0x8] sm:$0xff]  ;;  %vm257_vm0 = vcmask 7168   ;;  %s3221_s20 = smul.u32 520, %s3673_s9 }
  0x6b   : > { %v325_v2 = vld [vmem:[%s3677_s4 + $0x10] sm:$0xff]  ;;  %v518_v3 = vunpack.c.l.bf16 %v323_v0  ;;  %v519_v4 = vunpack.c.h.bf16 %v323_v0  ;;  %v520_v5 = vunpack.c.l.bf16 %v324_v1  ;;  %v521_v6 = vunpack.c.h.bf16 %v324_v1  ;;  %v909_v8 = vld [vmem:[%s3684_s15 + $0x8] sm:$0xff]  ;;  %v910_v9 = vld [vmem:[%s3684_s15 + $0x10] sm:$0xff]  ;;  %s2674_s7 = smul.u32 (%p3587_p9), 65, %s3473_s12 }
  0x6c   : > { %v908_v7 = vld [vmem:[%s3684_s15] sm:$0xff]  ;;  %v522_v10 = vunpack.c.l.bf16 %v325_v2  ;;  %v523_v14 = vunpack.c.h.bf16 %v325_v2  ;;  %v1105_v15 = vunpack.c.l.bf16 %v909_v8  ;;  %v1106_v16 = vunpack.c.h.bf16 %v909_v8  ;;  %v330_v18 = vld [vmem:[%s3677_s4 + $0x38] sm:$0xff]  ;;  %v331_v19 = vld [vmem:[%s3677_s4 + $0x40] sm:$0xff]  ;;  %s4410_s29 = scalar_lea.vmem [#allocation7], %s3221_s20   ;;  %s3213_s17 = smul.u32 (%p3587_p9), 520, %s3473_s12 }
  0x6d   : > { %v1103_v11 = vunpack.c.l.bf16 %v908_v7  ;;  %v1104_v12 = vunpack.c.h.bf16 %v908_v7  ;;  %v329_v13 = vld [vmem:[%s3677_s4 + $0x30] sm:$0xff]  ;;  %v1107_v17 = vunpack.c.l.bf16 %v910_v9  ;;  %v1108_v20 = vunpack.c.h.bf16 %v910_v9  ;;  %v914_v24 = vld [vmem:[%s3684_s15 + $0x30] sm:$0xff]  ;;  %v915_v25 = vld [vmem:[%s3684_s15 + $0x38] sm:$0xff]  ;;  %s2675_s19 = ssub.s32 (%p3587_p9), 129, %s2674_s7 }
  0x6e   : > { %v530_v23 = vunpack.c.l.bf16 %v329_v13  ;;  %v1495_v26 = vmul.f32 %v1105_v15, %v520_v5  ;;  %v1496_v27 = vmul.f32 %v1106_v16, %v521_v6  ;;  %v531_v29 = vunpack.c.h.bf16 %v329_v13  ;;  %v916_v30 = vld [vmem:[%s3684_s15 + $0x40] sm:$0xff]  ;;  %v326_v39 = vld [vmem:[%s3677_s4 + $0x18] sm:$0xff]  ;;  %v327_v44 = vld [vmem:[%s3677_s4 + $0x20] sm:$0xff]  ;;  %p2676_p8 = scmp.lt.s32.totalorder (%p3587_p9), %s2675_s19, 65  ;;  %s4603_s25 = scalar_lea.vmem (%p3587_p9), %s4812_s2, %s3213_s17  }
  0x6f   : > { %v1493_v21 = vmul.f32 %v1103_v11, %v518_v3  ;;  %v1494_v22 = vmul.f32 %v1104_v12, %v519_v4  ;;  %v1497_v28 = vmul.f32 %v1107_v17, %v522_v10  ;;  %v532_v32 = vunpack.c.l.bf16 %v330_v18  ;;  %v328_v49 = vld [vmem:[%s3677_s4 + $0x28] sm:$0xff]  ;;  %v912_v55 = vld [vmem:[%s3684_s15 + $0x20] sm:$0xff]  ;;  %v913_v60 = vld [vmem:[%s3684_s15 + $0x28] sm:$0xff] }
  0x70   : > { %v533_v33 = vunpack.c.h.bf16 %v330_v18  ;;  %v534_v34 = vunpack.c.l.bf16 %v331_v19  ;;  %v535_v35 = vunpack.c.h.bf16 %v331_v19  ;;  %v1115_v36 = vunpack.c.l.bf16 %v914_v24  ;;  %v911_v50 = vld [vmem:[%s3684_s15 + $0x18] sm:$0xff]  ;;  %v333_v10 = vld [vmem:[%s3677_s4 + $0x50] sm:$0xff]  ;;  %v334_v15 = vld [vmem:[%s3677_s4 + $0x58] sm:$0xff] }
  0x71   : > { %v1948_v31 = vadd.f32 %v1494_v22, %v1493_v21  ;;  %v1116_v37 = vunpack.c.h.bf16 %v914_v24  ;;  %v1117_v38 = vunpack.c.l.bf16 %v915_v25  ;;  %v1118_v41 = vunpack.c.h.bf16 %v915_v25  ;;  %v332_v5 = vld [vmem:[%s3677_s4 + $0x48] sm:$0xff]  ;;  %v917_v16 = vld [vmem:[%s3684_s15 + $0x48] sm:$0xff]  ;;  %v918_v21 = vld [vmem:[%s3684_s15 + $0x50] sm:$0xff] }
  0x72   : > { %v1119_v42 = vunpack.c.l.bf16 %v916_v30  ;;  %v1120_v43 = vunpack.c.h.bf16 %v916_v30  ;;  %v1498_v45 = vmul.f32 %v1108_v20, %v523_v14  ;;  %v1505_v46 = vmul.f32 %v1115_v36, %v530_v23 }
  0x73   : > { %v1949_v40 = vadd.f32 %v1948_v31, %v1495_v26  ;;  %v1506_v47 = vmul.f32 %v1116_v37, %v531_v29  ;;  %v1507_v48 = vmul.f32 %v1117_v38, %v532_v32  ;;  %v1508_v52 = vmul.f32 %v1118_v41, %v533_v33  ;;  %v919_v26 = vld [vmem:[%s3684_s15 + $0x58] sm:$0xff]  ;;  %v337_v41 = vld [vmem:[%s3677_s4 + $0x70] sm:$0xff] }
  0x74   : > { %v1509_v53 = vmul.f32 %v1119_v42, %v534_v34  ;;  %v524_v54 = vunpack.c.l.bf16 %v326_v39  ;;  %v1510_v56 = vmul.f32 %v1120_v43, %v535_v35  ;;  %v525_v58 = vunpack.c.h.bf16 %v326_v39  ;;  %v335_v35 = vld [vmem:[%s3677_s4 + $0x60] sm:$0xff] }
  0x75   : > { %v1950_v51 = vadd.f32 %v1949_v40, %v1496_v27  ;;  %v1962_v57 = vadd.f32 %v1506_v47, %v1505_v46  ;;  %v526_v59 = vunpack.c.l.bf16 %v327_v44  ;;  %v527_v62 = vunpack.c.h.bf16 %v327_v44  ;;  %v336_v40 = vld [vmem:[%s3677_s4 + $0x68] sm:$0xff]  ;;  %v920_v46 = vld [vmem:[%s3684_s15 + $0x60] sm:$0xff] }
  0x76   : > { %v528_v63 = vunpack.c.l.bf16 %v328_v49  ;;  %v1109_v0 = vunpack.c.l.bf16 %v911_v50  ;;  %v1110_v2 = vunpack.c.h.bf16 %v911_v50  ;;  %v1111_v3 = vunpack.c.l.bf16 %v912_v55 }
  0x77   : > { %v1951_v61 = vadd.f32 %v1950_v51, %v1497_v28  ;;  %v1963_v1 = vadd.f32 %v1962_v57, %v1507_v48  ;;  %v1112_v4 = vunpack.c.h.bf16 %v912_v55  ;;  %v529_v7 = vunpack.c.h.bf16 %v328_v49  ;;  %v921_v51 = vld [vmem:[%s3684_s15 + $0x68] sm:$0xff] }
  0x78   : > { %v1113_v8 = vunpack.c.l.bf16 %v913_v60  ;;  %v1499_v9 = vmul.f32 %v1109_v0, %v524_v54  ;;  %v1114_v12 = vunpack.c.h.bf16 %v913_v60  ;;  %v1500_v13 = vmul.f32 %v1110_v2, %v525_v58 }
  0x79   : > { %v1952_v6 = vadd.f32 %v1951_v61, %v1498_v45  ;;  %v1964_v11 = vadd.f32 %v1963_v1, %v1508_v52  ;;  %v1501_v14 = vmul.f32 %v1111_v3, %v526_v59  ;;  %v1502_v17 = vmul.f32 %v1112_v4, %v527_v62  ;;  %v922_v52 = vld [vmem:[%s3684_s15 + $0x70] sm:$0xff]  ;;  %v338_v1 = vld [vmem:[%s3677_s4 + $0x78] sm:$0xff] }
  0x7a   : > { %v1503_v18 = vmul.f32 %v1113_v8, %v528_v63  ;;  %v536_v19 = vunpack.c.l.bf16 %v332_v5  ;;  %v537_v20 = vunpack.c.h.bf16 %v332_v5  ;;  %v1955_v23 = vadd.f32 %v1500_v13, %v1499_v9 }
  0x7b   : > { %1953 = vadd.xlane.f32.xlu0 %v1952_v6  ;;  %v1965_v22 = vadd.f32 %v1964_v11, %v1509_v53  ;;  %v538_v24 = vunpack.c.l.bf16 %v333_v10  ;;  %v539_v25 = vunpack.c.h.bf16 %v333_v10  ;;  %v540_v27 = vunpack.c.l.bf16 %v334_v15  ;;  %v339_v6 = vld [vmem:[%s3677_s4 + $0x80] sm:$0xff] }
  0x7c   : > { %v541_v28 = vunpack.c.h.bf16 %v334_v15  ;;  %v1121_v29 = vunpack.c.l.bf16 %v917_v16  ;;  %v1122_v30 = vunpack.c.h.bf16 %v917_v16  ;;  %v1956_v32 = vadd.f32 %v1955_v23, %v1501_v14 }
  0x7d   : > { %v1966_v31 = vadd.f32 %v1965_v22, %v1510_v56  ;;  %v1123_v33 = vunpack.c.l.bf16 %v918_v21  ;;  %v1124_v34 = vunpack.c.h.bf16 %v918_v21  ;;  %v1125_v36 = vunpack.c.l.bf16 %v919_v26 }
  0x7e   : > { %v1126_v37 = vunpack.c.h.bf16 %v919_v26  ;;  %v1511_v38 = vmul.f32 %v1121_v29, %v536_v19  ;;  %v1512_v39 = vmul.f32 %v1122_v30, %v537_v20  ;;  %v1504_v42 = vmul.f32 %v1114_v12, %v529_v7  ;;  %v340_v7 = vld [vmem:[%s3677_s4 + $0x88] sm:$0xff] }
  0x7f   : > { %1967 = vadd.xlane.f32.xlu1 %v1966_v31  ;;  %v1957_v43 = vadd.f32 %v1956_v32, %v1502_v17  ;;  %v1513_v44 = vmul.f32 %v1123_v33, %v538_v24  ;;  %v1514_v45 = vmul.f32 %v1124_v34, %v539_v25  ;;  %v1515_v47 = vmul.f32 %v1125_v36, %v540_v27  ;;  %v923_v12 = vld [vmem:[%s3684_s15 + $0x78] sm:$0xff]  ;;  %v924_v17 = vld [vmem:[%s3684_s15 + $0x80] sm:$0xff]  ;;  %v342_v32 = vld [vmem:[%s3677_s4 + $0x98] sm:$0xff] }
  0x80   : > { %v1969_v48 = vadd.f32 %v1512_v39, %v1511_v38  ;;  %v542_v49 = vunpack.c.l.bf16 %v335_v35  ;;  %v543_v50 = vunpack.c.h.bf16 %v335_v35  ;;  %v544_v54 = vunpack.c.l.bf16 %v336_v40  ;;  %v341_v27 = vld [vmem:[%s3677_s4 + $0x90] sm:$0xff]  ;;  %v926_v38 = vld [vmem:[%s3684_s15 + $0x90] sm:$0xff] }
  0x81   : > { %v1958_v53 = vadd.f32 %v1957_v43, %v1503_v18  ;;  %v545_v55 = vunpack.c.h.bf16 %v336_v40  ;;  %v546_v56 = vunpack.c.l.bf16 %v337_v41  ;;  %v1516_v57 = vmul.f32 %v1126_v37, %v541_v28  ;;  %v925_v18 = vld [vmem:[%s3684_s15 + $0x88] sm:$0xff]  ;;  %v343_v37 = vld [vmem:[%s3677_s4 + $0xa0] sm:$0xff]  ;;  %v927_v43 = vld [vmem:[%s3684_s15 + $0x98] sm:$0xff] }
  0x82   : > { %v1970_v58 = vadd.f32 %v1969_v48, %v1513_v44  ;;  %v1127_v59 = vunpack.c.l.bf16 %v920_v46  ;;  %v1128_v60 = vunpack.c.h.bf16 %v920_v46  ;;  %v1129_v62 = vunpack.c.l.bf16 %v921_v51  ;;  %v928_v48 = vld [vmem:[%s3684_s15 + $0xa0] sm:$0xff] }
  0x83   : > { %v1959_v61 = vadd.f32 %v1958_v53, %v1504_v42  ;;  %v1130_v63 = vunpack.c.h.bf16 %v921_v51  ;;  %v1131_v0 = vunpack.c.l.bf16 %v922_v52  ;;  %v547_v3 = vunpack.c.h.bf16 %v337_v41 }
  0x84   : > { %v1971_v2 = vadd.f32 %v1970_v58, %v1514_v45  ;;  %v1517_v4 = vmul.f32 %v1127_v59, %v542_v49  ;;  %v1518_v5 = vmul.f32 %v1128_v60, %v543_v50  ;;  %v1132_v8 = vunpack.c.h.bf16 %v922_v52 }
  0x85   : > { %1960 = vadd.xlane.f32.xlu0 %v1959_v61  ;;  %v1519_v9 = vmul.f32 %v1129_v62, %v544_v54  ;;  %v1520_v10 = vmul.f32 %v1130_v63, %v545_v55  ;;  %v1521_v11 = vmul.f32 %v1131_v0, %v546_v56  ;;  %v548_v15 = vunpack.c.l.bf16 %v338_v1  ;;  %v345_v62 = vld [vmem:[%s3677_s4 + $0xb0] sm:$0xff] }
  0x86   : > { %v1972_v13 = vadd.f32 %v1971_v2, %v1515_v47  ;;  %v1976_v14 = vadd.f32 %v1518_v5, %v1517_v4  ;;  %v549_v16 = vunpack.c.h.bf16 %v338_v1  ;;  %v550_v19 = vunpack.c.l.bf16 %v339_v6  ;;  %v929_v4 = vld [vmem:[%s3684_s15 + $0xa8] sm:$0xff] }
  0x87   : > { %v551_v20 = vunpack.c.h.bf16 %v339_v6  ;;  %v552_v21 = vunpack.c.l.bf16 %v340_v7  ;;  %v553_v22 = vunpack.c.h.bf16 %v340_v7  ;;  %v1133_v25 = vunpack.c.l.bf16 %v923_v12 }
  0x88   : > { %v1973_v23 = vadd.f32 %v1972_v13, %v1516_v57  ;;  %v1977_v24 = vadd.f32 %v1976_v14, %v1519_v9  ;;  %v1134_v26 = vunpack.c.h.bf16 %v923_v12  ;;  %v1135_v28 = vunpack.c.l.bf16 %v924_v17  ;;  %v344_v57 = vld [vmem:[%s3677_s4 + $0xa8] sm:$0xff]  ;;  %v930_v9 = vld [vmem:[%s3684_s15 + $0xb0] sm:$0xff] }
  0x89   : > { %v1136_v29 = vunpack.c.h.bf16 %v924_v17  ;;  %v1137_v30 = vunpack.c.l.bf16 %v925_v18  ;;  %v1138_v31 = vunpack.c.h.bf16 %v925_v18  ;;  %v1522_v33 = vmul.f32 %v1132_v8, %v547_v3  ;;  %v346_v3 = vld [vmem:[%s3677_s4 + $0xb8] sm:$0xff]  ;;  %v931_v14 = vld [vmem:[%s3684_s15 + $0xb8] sm:$0xff] }
  0x8a   : > { %1974 = vadd.xlane.f32.xlu1 %v1973_v23  ;;  %v1978_v34 = vadd.f32 %v1977_v24, %v1520_v10  ;;  %v1523_v35 = vmul.f32 %v1133_v25, %v548_v15  ;;  %v1524_v36 = vmul.f32 %v1134_v26, %v549_v16  ;;  %v1525_v39 = vmul.f32 %v1135_v28, %v550_v19  ;;  %v347_v23 = vld [vmem:[%s3677_s4 + $0xc0] sm:$0xff]  ;;  %v348_v28 = vld [vmem:[%s3677_s4 + $0xc8] sm:$0xff] }
  0x8b   : > { %v1526_v40 = vmul.f32 %v1136_v29, %v551_v20  ;;  %v1527_v41 = vmul.f32 %v1137_v30, %v552_v21  ;;  %v554_v42 = vunpack.c.l.bf16 %v341_v27  ;;  %v555_v46 = vunpack.c.h.bf16 %v341_v27  ;;  %v349_v29 = vld [vmem:[%s3677_s4 + $0xd0] sm:$0xff] }
  0x8c   : > { %v1979_v44 = vadd.f32 %v1978_v34, %v1521_v11  ;;  %v1983_v45 = vadd.f32 %v1524_v36, %v1523_v35  ;;  %v556_v47 = vunpack.c.l.bf16 %v342_v32  ;;  %v1528_v49 = vmul.f32 %v1138_v31, %v553_v22  ;;  %v932_v34 = vld [vmem:[%s3684_s15 + $0xc0] sm:$0xff] }
  0x8d   : > { %v557_v50 = vunpack.c.h.bf16 %v342_v32  ;;  %v558_v51 = vunpack.c.l.bf16 %v343_v37  ;;  %v1139_v52 = vunpack.c.l.bf16 %v926_v38  ;;  %v1140_v55 = vunpack.c.h.bf16 %v926_v38 }
  0x8e   : > { %v1980_v53 = vadd.f32 %v1979_v44, %v1522_v33  ;;  %v1984_v54 = vadd.f32 %v1983_v45, %v1525_v39  ;;  %v1141_v56 = vunpack.c.l.bf16 %v927_v43  ;;  %v559_v58 = vunpack.c.h.bf16 %v343_v37  ;;  %v933_v39 = vld [vmem:[%s3684_s15 + $0xc8] sm:$0xff] }
  0x8f   : > { %v1142_v59 = vunpack.c.h.bf16 %v927_v43  ;;  %v1143_v60 = vunpack.c.l.bf16 %v928_v48  ;;  %v1529_v61 = vmul.f32 %v1139_v52, %v554_v42  ;;  %v1144_v0 = vunpack.c.h.bf16 %v928_v48 }
  0x90   : > { %1981 = vadd.xlane.f32.xlu0 %v1980_v53  ;;  %v1985_v63 = vadd.f32 %v1984_v54, %v1526_v40  ;;  %v1530_v1 = vmul.f32 %v1140_v55, %v555_v46  ;;  %v1531_v2 = vmul.f32 %v1141_v56, %v556_v47  ;;  %v560_v7 = vunpack.c.l.bf16 %v344_v57  ;;  %v934_v40 = vld [vmem:[%s3684_s15 + $0xd0] sm:$0xff]  ;;  %v350_v53 = vld [vmem:[%s3677_s4 + $0xd8] sm:$0xff] }
  0x91   : > { %v1532_v5 = vmul.f32 %v1142_v59, %v557_v50  ;;  %v1533_v6 = vmul.f32 %v1143_v60, %v558_v51  ;;  %v561_v8 = vunpack.c.h.bf16 %v344_v57  ;;  %v562_v12 = vunpack.c.l.bf16 %v345_v62  ;;  %v352_v59 = vld [vmem:[%s3677_s4 + $0xe8] sm:$0xff] }
  0x92   : > { %v1986_v10 = vadd.f32 %v1985_v63, %v1527_v41  ;;  %v1990_v11 = vadd.f32 %v1530_v1, %v1529_v61  ;;  %v563_v13 = vunpack.c.h.bf16 %v345_v62  ;;  %v564_v15 = vunpack.c.l.bf16 %v346_v3 }
  0x93   : > { %v565_v16 = vunpack.c.h.bf16 %v346_v3  ;;  %v1145_v17 = vunpack.c.l.bf16 %v929_v4  ;;  %v1146_v18 = vunpack.c.h.bf16 %v929_v4  ;;  %v1147_v21 = vunpack.c.l.bf16 %v930_v9 }
  0x94   : > { %v1987_v19 = vadd.f32 %v1986_v10, %v1528_v49  ;;  %v1991_v20 = vadd.f32 %v1990_v11, %v1531_v2  ;;  %v1148_v22 = vunpack.c.h.bf16 %v930_v9  ;;  %v1149_v24 = vunpack.c.l.bf16 %v931_v14 }
  0x95   : > { %v1150_v25 = vunpack.c.h.bf16 %v931_v14  ;;  %v1535_v26 = vmul.f32 %v1145_v17, %v560_v7  ;;  %v1536_v27 = vmul.f32 %v1146_v18, %v561_v8  ;;  %v1534_v30 = vmul.f32 %v1144_v0, %v559_v58  ;;  %v351_v58 = vld [vmem:[%s3677_s4 + $0xe0] sm:$0xff]  ;;  %v935_v0 = vld [vmem:[%s3684_s15 + $0xd8] sm:$0xff] }
  0x96   : > { %1988 = vadd.xlane.f32.xlu1 %v1987_v19  ;;  %v1992_v31 = vadd.f32 %v1991_v20, %v1532_v5  ;;  %v1537_v32 = vmul.f32 %v1147_v21, %v562_v12  ;;  %v1538_v33 = vmul.f32 %v1148_v22, %v563_v13  ;;  %v1539_v35 = vmul.f32 %v1149_v24, %v564_v15  ;;  %v936_v5 = vld [vmem:[%s3684_s15 + $0xe0] sm:$0xff]  ;;  %v354_v20 = vld [vmem:[%s3677_s4 + $0xf8] sm:$0xff] }
  0x97   : > { %v1997_v36 = vadd.f32 %v1536_v27, %v1535_v26  ;;  %v566_v37 = vunpack.c.l.bf16 %v347_v23  ;;  %v567_v38 = vunpack.c.h.bf16 %v347_v23  ;;  %v568_v42 = vunpack.c.l.bf16 %v348_v28  ;;  %v353_v15 = vld [vmem:[%s3677_s4 + $0xf0] sm:$0xff]  ;;  %v938_v26 = vld [vmem:[%s3684_s15 + $0xf0] sm:$0xff] }
  0x98   : > { %v1993_v41 = vadd.f32 %v1992_v31, %v1533_v6  ;;  %v569_v43 = vunpack.c.h.bf16 %v348_v28  ;;  %v570_v44 = vunpack.c.l.bf16 %v349_v29  ;;  %v1540_v45 = vmul.f32 %v1150_v25, %v565_v16  ;;  %v937_v6 = vld [vmem:[%s3684_s15 + $0xe8] sm:$0xff]  ;;  %v355_v25 = vld [vmem:[%s3677_s4 + $0x100] sm:$0xff]  ;;  %v939_v31 = vld [vmem:[%s3684_s15 + $0xf8] sm:$0xff] }
  0x99   : > { %v1998_v46 = vadd.f32 %v1997_v36, %v1537_v32  ;;  %v1151_v47 = vunpack.c.l.bf16 %v932_v34  ;;  %v1152_v48 = vunpack.c.h.bf16 %v932_v34  ;;  %v1153_v50 = vunpack.c.l.bf16 %v933_v39  ;;  %v940_v36 = vld [vmem:[%s3684_s15 + $0x100] sm:$0xff] }
  0x9a   : > { %v1994_v49 = vadd.f32 %v1993_v41, %v1534_v30  ;;  %v1154_v51 = vunpack.c.h.bf16 %v933_v39  ;;  %v1155_v52 = vunpack.c.l.bf16 %v934_v40  ;;  %v571_v55 = vunpack.c.h.bf16 %v349_v29 }
  0x9b   : > { %v1999_v54 = vadd.f32 %v1998_v46, %v1538_v33  ;;  %v1541_v56 = vmul.f32 %v1151_v47, %v566_v37  ;;  %v1542_v57 = vmul.f32 %v1152_v48, %v567_v38  ;;  %v1156_v60 = vunpack.c.h.bf16 %v934_v40 }
  0x9c   : > { %1995 = vadd.xlane.f32.xlu0 %v1994_v49  ;;  %v1543_v61 = vmul.f32 %v1153_v50, %v568_v42  ;;  %v1544_v62 = vmul.f32 %v1154_v51, %v569_v43  ;;  %v1545_v63 = vmul.f32 %v1155_v52, %v570_v44  ;;  %v572_v3 = vunpack.c.l.bf16 %v350_v53  ;;  %v357_v50 = vld [vmem:[%s3677_s4 + $0x110] sm:$0xff] }
  0x9d   : > { %v2000_v1 = vadd.f32 %v1999_v54, %v1539_v35  ;;  %v2004_v2 = vadd.f32 %v1542_v57, %v1541_v56  ;;  %v573_v4 = vunpack.c.h.bf16 %v350_v53  ;;  %v574_v7 = vunpack.c.l.bf16 %v351_v58  ;;  %v941_v56 = vld [vmem:[%s3684_s15 + $0x108] sm:$0xff] }
  0x9e   : > { %v575_v8 = vunpack.c.h.bf16 %v351_v58  ;;  %v576_v9 = vunpack.c.l.bf16 %v352_v59  ;;  %v577_v10 = vunpack.c.h.bf16 %v352_v59  ;;  %v1157_v13 = vunpack.c.l.bf16 %v935_v0 }
  0x9f   : > { %v2001_v11 = vadd.f32 %v2000_v1, %v1540_v45  ;;  %v2005_v12 = vadd.f32 %v2004_v2, %v1543_v61  ;;  %v1158_v14 = vunpack.c.h.bf16 %v935_v0  ;;  %v1159_v16 = vunpack.c.l.bf16 %v936_v5  ;;  %v356_v45 = vld [vmem:[%s3677_s4 + $0x108] sm:$0xff]  ;;  %v942_v61 = vld [vmem:[%s3684_s15 + $0x110] sm:$0xff] }
  0xa0   : > { %v1160_v17 = vunpack.c.h.bf16 %v936_v5  ;;  %v1161_v18 = vunpack.c.l.bf16 %v937_v6  ;;  %v1162_v19 = vunpack.c.h.bf16 %v937_v6  ;;  %v1546_v21 = vmul.f32 %v1156_v60, %v571_v55  ;;  %v358_v55 = vld [vmem:[%s3677_s4 + $0x118] sm:$0xff]  ;;  %v943_v2 = vld [vmem:[%s3684_s15 + $0x118] sm:$0xff] }
  0xa1   : > { %2002 = vadd.xlane.f32.xlu1 %v2001_v11  ;;  %v2006_v22 = vadd.f32 %v2005_v12, %v1544_v62  ;;  %v1547_v23 = vmul.f32 %v1157_v13, %v572_v3  ;;  %v1548_v24 = vmul.f32 %v1158_v14, %v573_v4  ;;  %v1549_v27 = vmul.f32 %v1159_v16, %v574_v7  ;;  %v359_v11 = vld [vmem:[%s3677_s4 + $0x120] sm:$0xff]  ;;  %v360_v16 = vld [vmem:[%s3677_s4 + $0x128] sm:$0xff] }
  0xa2   : > { %v1550_v28 = vmul.f32 %v1160_v17, %v575_v8  ;;  %v1551_v29 = vmul.f32 %v1161_v18, %v576_v9  ;;  %v578_v30 = vunpack.c.l.bf16 %v353_v15  ;;  %v579_v34 = vunpack.c.h.bf16 %v353_v15  ;;  %v361_v17 = vld [vmem:[%s3677_s4 + $0x130] sm:$0xff] }
  0xa3   : > { %v2007_v32 = vadd.f32 %v2006_v22, %v1545_v63  ;;  %v2011_v33 = vadd.f32 %v1548_v24, %v1547_v23  ;;  %v580_v35 = vunpack.c.l.bf16 %v354_v20  ;;  %v1552_v37 = vmul.f32 %v1162_v19, %v577_v10  ;;  %v944_v22 = vld [vmem:[%s3684_s15 + $0x120] sm:$0xff] }
  0xa4   : > { %v581_v38 = vunpack.c.h.bf16 %v354_v20  ;;  %v582_v39 = vunpack.c.l.bf16 %v355_v25  ;;  %v1163_v40 = vunpack.c.l.bf16 %v938_v26  ;;  %v1164_v43 = vunpack.c.h.bf16 %v938_v26 }
  0xa5   : > { %v2008_v41 = vadd.f32 %v2007_v32, %v1546_v21  ;;  %v2012_v42 = vadd.f32 %v2011_v33, %v1549_v27  ;;  %v1165_v44 = vunpack.c.l.bf16 %v939_v31  ;;  %v583_v46 = vunpack.c.h.bf16 %v355_v25  ;;  %v945_v27 = vld [vmem:[%s3684_s15 + $0x128] sm:$0xff] }
  0xa6   : > { %v1166_v47 = vunpack.c.h.bf16 %v939_v31  ;;  %v1167_v48 = vunpack.c.l.bf16 %v940_v36  ;;  %v1553_v49 = vmul.f32 %v1163_v40, %v578_v30  ;;  %v1168_v52 = vunpack.c.h.bf16 %v940_v36 }
  0xa7   : > { %2009 = vadd.xlane.f32.xlu0 %v2008_v41  ;;  %v2013_v51 = vadd.f32 %v2012_v42, %v1550_v28  ;;  %v1554_v53 = vmul.f32 %v1164_v43, %v579_v34  ;;  %v1555_v54 = vmul.f32 %v1165_v44, %v580_v35  ;;  %v584_v59 = vunpack.c.l.bf16 %v356_v45  ;;  %v946_v28 = vld [vmem:[%s3684_s15 + $0x130] sm:$0xff]  ;;  %v362_v41 = vld [vmem:[%s3677_s4 + $0x138] sm:$0xff] }
  0xa8   : > { %v1556_v57 = vmul.f32 %v1166_v47, %v581_v38  ;;  %v1557_v58 = vmul.f32 %v1167_v48, %v582_v39  ;;  %v585_v60 = vunpack.c.h.bf16 %v356_v45  ;;  %v586_v0 = vunpack.c.l.bf16 %v357_v50  ;;  %v364_v47 = vld [vmem:[%s3677_s4 + $0x148] sm:$0xff] }
  0xa9   : > { %v2014_v62 = vadd.f32 %v2013_v51, %v1551_v29  ;;  %v2018_v63 = vadd.f32 %v1554_v53, %v1553_v49  ;;  %v587_v1 = vunpack.c.h.bf16 %v357_v50  ;;  %v588_v3 = vunpack.c.l.bf16 %v358_v55 }
  0xaa   : > { %v589_v4 = vunpack.c.h.bf16 %v358_v55  ;;  %v1169_v5 = vunpack.c.l.bf16 %v941_v56  ;;  %v1170_v6 = vunpack.c.h.bf16 %v941_v56  ;;  %v1171_v9 = vunpack.c.l.bf16 %v942_v61 }
  0xab   : > { %v2015_v7 = vadd.f32 %v2014_v62, %v1552_v37  ;;  %v2019_v8 = vadd.f32 %v2018_v63, %v1555_v54  ;;  %v1172_v10 = vunpack.c.h.bf16 %v942_v61  ;;  %v1173_v12 = vunpack.c.l.bf16 %v943_v2 }
  0xac   : > { %v1174_v13 = vunpack.c.h.bf16 %v943_v2  ;;  %v1559_v14 = vmul.f32 %v1169_v5, %v584_v59  ;;  %v1560_v15 = vmul.f32 %v1170_v6, %v585_v60  ;;  %v1558_v18 = vmul.f32 %v1168_v52, %v583_v46  ;;  %v363_v46 = vld [vmem:[%s3677_s4 + $0x140] sm:$0xff]  ;;  %v947_v52 = vld [vmem:[%s3684_s15 + $0x138] sm:$0xff] }
  0xad   : > { %2016 = vadd.xlane.f32.xlu1 %v2015_v7  ;;  %v2020_v19 = vadd.f32 %v2019_v8, %v1556_v57  ;;  %v1561_v20 = vmul.f32 %v1171_v9, %v586_v0  ;;  %v1562_v21 = vmul.f32 %v1172_v10, %v587_v1  ;;  %v1563_v23 = vmul.f32 %v1173_v12, %v588_v3  ;;  %v948_v57 = vld [vmem:[%s3684_s15 + $0x140] sm:$0xff]  ;;  %v366_v8 = vld [vmem:[%s3677_s4 + $0x158] sm:$0xff] }
  0xae   : > { %v2025_v24 = vadd.f32 %v1560_v15, %v1559_v14  ;;  %v590_v25 = vunpack.c.l.bf16 %v359_v11  ;;  %v591_v26 = vunpack.c.h.bf16 %v359_v11  ;;  %v592_v30 = vunpack.c.l.bf16 %v360_v16  ;;  %v365_v3 = vld [vmem:[%s3677_s4 + $0x150] sm:$0xff]  ;;  %v950_v14 = vld [vmem:[%s3684_s15 + $0x150] sm:$0xff] }
  0xaf   : > { %v2021_v29 = vadd.f32 %v2020_v19, %v1557_v58  ;;  %v593_v31 = vunpack.c.h.bf16 %v360_v16  ;;  %v594_v32 = vunpack.c.l.bf16 %v361_v17  ;;  %v1564_v33 = vmul.f32 %v1174_v13, %v589_v4  ;;  %v949_v58 = vld [vmem:[%s3684_s15 + $0x148] sm:$0xff]  ;;  %v367_v13 = vld [vmem:[%s3677_s4 + $0x160] sm:$0xff]  ;;  %v951_v19 = vld [vmem:[%s3684_s15 + $0x158] sm:$0xff] }
  0xb0   : > { %v2026_v34 = vadd.f32 %v2025_v24, %v1561_v20  ;;  %v1175_v35 = vunpack.c.l.bf16 %v944_v22  ;;  %v1176_v36 = vunpack.c.h.bf16 %v944_v22  ;;  %v1177_v38 = vunpack.c.l.bf16 %v945_v27  ;;  %v952_v24 = vld [vmem:[%s3684_s15 + $0x160] sm:$0xff] }
  0xb1   : > { %v2022_v37 = vadd.f32 %v2021_v29, %v1558_v18  ;;  %v1178_v39 = vunpack.c.h.bf16 %v945_v27  ;;  %v1179_v40 = vunpack.c.l.bf16 %v946_v28  ;;  %v595_v43 = vunpack.c.h.bf16 %v361_v17 }
  0xb2   : > { %v2027_v42 = vadd.f32 %v2026_v34, %v1562_v21  ;;  %v1565_v44 = vmul.f32 %v1175_v35, %v590_v25  ;;  %v1566_v45 = vmul.f32 %v1176_v36, %v591_v26  ;;  %v1180_v48 = vunpack.c.h.bf16 %v946_v28 }
  0xb3   : > { %2023 = vadd.xlane.f32.xlu0 %v2022_v37  ;;  %v1567_v49 = vmul.f32 %v1177_v38, %v592_v30  ;;  %v1568_v50 = vmul.f32 %v1178_v39, %v593_v31  ;;  %v1569_v51 = vmul.f32 %v1179_v40, %v594_v32  ;;  %v596_v55 = vunpack.c.l.bf16 %v362_v41  ;;  %v369_v38 = vld [vmem:[%s3677_s4 + $0x170] sm:$0xff] }
  0xb4   : > { %v2028_v53 = vadd.f32 %v2027_v42, %v1563_v23  ;;  %v2032_v54 = vadd.f32 %v1566_v45, %v1565_v44  ;;  %v597_v56 = vunpack.c.h.bf16 %v362_v41  ;;  %v598_v59 = vunpack.c.l.bf16 %v363_v46  ;;  %v953_v44 = vld [vmem:[%s3684_s15 + $0x168] sm:$0xff] }
  0xb5   : > { %v599_v60 = vunpack.c.h.bf16 %v363_v46  ;;  %v600_v61 = vunpack.c.l.bf16 %v364_v47  ;;  %v601_v62 = vunpack.c.h.bf16 %v364_v47  ;;  %v1181_v1 = vunpack.c.l.bf16 %v947_v52 }
  0xb6   : > { %v2029_v63 = vadd.f32 %v2028_v53, %v1564_v33  ;;  %v2033_v0 = vadd.f32 %v2032_v54, %v1567_v49  ;;  %v1182_v2 = vunpack.c.h.bf16 %v947_v52  ;;  %v1183_v4 = vunpack.c.l.bf16 %v948_v57  ;;  %v368_v33 = vld [vmem:[%s3677_s4 + $0x168] sm:$0xff]  ;;  %v954_v49 = vld [vmem:[%s3684_s15 + $0x170] sm:$0xff] }
  0xb7   : > { %v1184_v5 = vunpack.c.h.bf16 %v948_v57  ;;  %v1185_v6 = vunpack.c.l.bf16 %v949_v58  ;;  %v1186_v7 = vunpack.c.h.bf16 %v949_v58  ;;  %v1570_v9 = vmul.f32 %v1180_v48, %v595_v43  ;;  %v370_v43 = vld [vmem:[%s3677_s4 + $0x178] sm:$0xff]  ;;  %v955_v54 = vld [vmem:[%s3684_s15 + $0x178] sm:$0xff] }
  0xb8   : > { %2030 = vadd.xlane.f32.xlu1 %v2029_v63  ;;  %v2034_v10 = vadd.f32 %v2033_v0, %v1568_v50  ;;  %v1571_v11 = vmul.f32 %v1181_v1, %v596_v55  ;;  %v1572_v12 = vmul.f32 %v1182_v2, %v597_v56  ;;  %v1573_v15 = vmul.f32 %v1183_v4, %v598_v59  ;;  %v371_v63 = vld [vmem:[%s3677_s4 + $0x180] sm:$0xff]  ;;  %v372_v4 = vld [vmem:[%s3677_s4 + $0x188] sm:$0xff] }
  0xb9   : > { %v1574_v16 = vmul.f32 %v1184_v5, %v599_v60  ;;  %v1575_v17 = vmul.f32 %v1185_v6, %v600_v61  ;;  %v602_v18 = vunpack.c.l.bf16 %v365_v3  ;;  %v603_v22 = vunpack.c.h.bf16 %v365_v3  ;;  %v373_v5 = vld [vmem:[%s3677_s4 + $0x190] sm:$0xff] }
  0xba   : > { %v2035_v20 = vadd.f32 %v2034_v10, %v1569_v51  ;;  %v2039_v21 = vadd.f32 %v1572_v12, %v1571_v11  ;;  %v604_v23 = vunpack.c.l.bf16 %v366_v8  ;;  %v1576_v25 = vmul.f32 %v1186_v7, %v601_v62  ;;  %v956_v10 = vld [vmem:[%s3684_s15 + $0x180] sm:$0xff] }
  0xbb   : > { %v605_v26 = vunpack.c.h.bf16 %v366_v8  ;;  %v606_v27 = vunpack.c.l.bf16 %v367_v13  ;;  %v1187_v28 = vunpack.c.l.bf16 %v950_v14  ;;  %v1188_v31 = vunpack.c.h.bf16 %v950_v14 }
  0xbc   : > { %v2036_v29 = vadd.f32 %v2035_v20, %v1570_v9  ;;  %v2040_v30 = vadd.f32 %v2039_v21, %v1573_v15  ;;  %v1189_v32 = vunpack.c.l.bf16 %v951_v19  ;;  %v607_v34 = vunpack.c.h.bf16 %v367_v13  ;;  %v957_v15 = vld [vmem:[%s3684_s15 + $0x188] sm:$0xff] }
  0xbd   : > { %v1190_v35 = vunpack.c.h.bf16 %v951_v19  ;;  %v1191_v36 = vunpack.c.l.bf16 %v952_v24  ;;  %v1577_v37 = vmul.f32 %v1187_v28, %v602_v18  ;;  %v1192_v40 = vunpack.c.h.bf16 %v952_v24 }
  0xbe   : > { %2037 = vadd.xlane.f32.xlu0 %v2036_v29  ;;  %v2041_v39 = vadd.f32 %v2040_v30, %v1574_v16  ;;  %v1578_v41 = vmul.f32 %v1188_v31, %v603_v22  ;;  %v1579_v42 = vmul.f32 %v1189_v32, %v604_v23  ;;  %v608_v47 = vunpack.c.l.bf16 %v368_v33  ;;  %v958_v16 = vld [vmem:[%s3684_s15 + $0x190] sm:$0xff]  ;;  %v374_v29 = vld [vmem:[%s3677_s4 + $0x198] sm:$0xff] }
  0xbf   : > { %v1580_v45 = vmul.f32 %v1190_v35, %v605_v26  ;;  %v1581_v46 = vmul.f32 %v1191_v36, %v606_v27  ;;  %v609_v48 = vunpack.c.h.bf16 %v368_v33  ;;  %v610_v52 = vunpack.c.l.bf16 %v369_v38  ;;  %v376_v35 = vld [vmem:[%s3677_s4 + $0x1a8] sm:$0xff] }
  0xc0   : > { %v2042_v50 = vadd.f32 %v2041_v39, %v1575_v17  ;;  %v2046_v51 = vadd.f32 %v1578_v41, %v1577_v37  ;;  %v611_v53 = vunpack.c.h.bf16 %v369_v38  ;;  %v612_v55 = vunpack.c.l.bf16 %v370_v43 }
  0xc1   : > { %v613_v56 = vunpack.c.h.bf16 %v370_v43  ;;  %v1193_v57 = vunpack.c.l.bf16 %v953_v44  ;;  %v1194_v58 = vunpack.c.h.bf16 %v953_v44  ;;  %v1195_v61 = vunpack.c.l.bf16 %v954_v49 }
  0xc2   : > { %v2043_v59 = vadd.f32 %v2042_v50, %v1576_v25  ;;  %v2047_v60 = vadd.f32 %v2046_v51, %v1579_v42  ;;  %v1196_v62 = vunpack.c.h.bf16 %v954_v49  ;;  %v1197_v0 = vunpack.c.l.bf16 %v955_v54 }
  0xc3   : > { %v1198_v1 = vunpack.c.h.bf16 %v955_v54  ;;  %v1583_v2 = vmul.f32 %v1193_v57, %v608_v47  ;;  %v1584_v3 = vmul.f32 %v1194_v58, %v609_v48  ;;  %v1582_v6 = vmul.f32 %v1192_v40, %v607_v34  ;;  %v375_v34 = vld [vmem:[%s3677_s4 + $0x1a0] sm:$0xff]  ;;  %v959_v40 = vld [vmem:[%s3684_s15 + $0x198] sm:$0xff] }
  0xc4   : > { %2044 = vadd.xlane.f32.xlu1 %v2043_v59  ;;  %v2048_v7 = vadd.f32 %v2047_v60, %v1580_v45  ;;  %v1585_v8 = vmul.f32 %v1195_v61, %v610_v52  ;;  %v1586_v9 = vmul.f32 %v1196_v62, %v611_v53  ;;  %v1587_v11 = vmul.f32 %v1197_v0, %v612_v55  ;;  %v960_v45 = vld [vmem:[%s3684_s15 + $0x1a0] sm:$0xff]  ;;  %v378_v60 = vld [vmem:[%s3677_s4 + $0x1b8] sm:$0xff] }
  0xc5   : > { %v2053_v12 = vadd.f32 %v1584_v3, %v1583_v2  ;;  %v614_v13 = vunpack.c.l.bf16 %v371_v63  ;;  %v615_v14 = vunpack.c.h.bf16 %v371_v63  ;;  %v616_v18 = vunpack.c.l.bf16 %v372_v4  ;;  %v377_v55 = vld [vmem:[%s3677_s4 + $0x1b0] sm:$0xff]  ;;  %v962_v2 = vld [vmem:[%s3684_s15 + $0x1b0] sm:$0xff] }
  0xc6   : > { %v2049_v17 = vadd.f32 %v2048_v7, %v1581_v46  ;;  %v617_v19 = vunpack.c.h.bf16 %v372_v4  ;;  %v618_v20 = vunpack.c.l.bf16 %v373_v5  ;;  %v1588_v21 = vmul.f32 %v1198_v1, %v613_v56  ;;  %v961_v46 = vld [vmem:[%s3684_s15 + $0x1a8] sm:$0xff]  ;;  %v379_v1 = vld [vmem:[%s3677_s4 + $0x1c0] sm:$0xff]  ;;  %v963_v7 = vld [vmem:[%s3684_s15 + $0x1b8] sm:$0xff] }
  0xc7   : > { %v2054_v22 = vadd.f32 %v2053_v12, %v1585_v8  ;;  %v1199_v23 = vunpack.c.l.bf16 %v956_v10  ;;  %v1200_v24 = vunpack.c.h.bf16 %v956_v10  ;;  %v1201_v26 = vunpack.c.l.bf16 %v957_v15  ;;  %v964_v12 = vld [vmem:[%s3684_s15 + $0x1c0] sm:$0xff] }
  0xc8   : > { %v2050_v25 = vadd.f32 %v2049_v17, %v1582_v6  ;;  %v1202_v27 = vunpack.c.h.bf16 %v957_v15  ;;  %v1203_v28 = vunpack.c.l.bf16 %v958_v16  ;;  %v619_v31 = vunpack.c.h.bf16 %v373_v5 }
  0xc9   : > { %v2055_v30 = vadd.f32 %v2054_v22, %v1586_v9  ;;  %v1589_v32 = vmul.f32 %v1199_v23, %v614_v13  ;;  %v1590_v33 = vmul.f32 %v1200_v24, %v615_v14  ;;  %v1204_v36 = vunpack.c.h.bf16 %v958_v16 }
  0xca   : > { %2051 = vadd.xlane.f32.xlu0 %v2050_v25  ;;  %v1591_v37 = vmul.f32 %v1201_v26, %v616_v18  ;;  %v1592_v38 = vmul.f32 %v1202_v27, %v617_v19  ;;  %v1593_v39 = vmul.f32 %v1203_v28, %v618_v20  ;;  %v620_v43 = vunpack.c.l.bf16 %v374_v29  ;;  %v381_v26 = vld [vmem:[%s3677_s4 + $0x1d0] sm:$0xff] }
  0xcb   : > { %v2056_v41 = vadd.f32 %v2055_v30, %v1587_v11  ;;  %v2060_v42 = vadd.f32 %v1590_v33, %v1589_v32  ;;  %v621_v44 = vunpack.c.h.bf16 %v374_v29  ;;  %v622_v47 = vunpack.c.l.bf16 %v375_v34  ;;  %v965_v32 = vld [vmem:[%s3684_s15 + $0x1c8] sm:$0xff] }
  0xcc   : > { %v623_v48 = vunpack.c.h.bf16 %v375_v34  ;;  %v624_v49 = vunpack.c.l.bf16 %v376_v35  ;;  %v625_v50 = vunpack.c.h.bf16 %v376_v35  ;;  %v1205_v53 = vunpack.c.l.bf16 %v959_v40 }
  0xcd   : > { %v2057_v51 = vadd.f32 %v2056_v41, %v1588_v21  ;;  %v2061_v52 = vadd.f32 %v2060_v42, %v1591_v37  ;;  %v1206_v54 = vunpack.c.h.bf16 %v959_v40  ;;  %v1207_v56 = vunpack.c.l.bf16 %v960_v45  ;;  %v380_v21 = vld [vmem:[%s3677_s4 + $0x1c8] sm:$0xff]  ;;  %v966_v37 = vld [vmem:[%s3684_s15 + $0x1d0] sm:$0xff] }
  0xce   : > { %v1208_v57 = vunpack.c.h.bf16 %v960_v45  ;;  %v1209_v58 = vunpack.c.l.bf16 %v961_v46  ;;  %v1210_v59 = vunpack.c.h.bf16 %v961_v46  ;;  %v1594_v61 = vmul.f32 %v1204_v36, %v619_v31  ;;  %v382_v31 = vld [vmem:[%s3677_s4 + $0x1d8] sm:$0xff]  ;;  %v967_v42 = vld [vmem:[%s3684_s15 + $0x1d8] sm:$0xff] }
  0xcf   : > { %2058 = vadd.xlane.f32.xlu1 %v2057_v51  ;;  %v2062_v62 = vadd.f32 %v2061_v52, %v1592_v38  ;;  %v1595_v63 = vmul.f32 %v1205_v53, %v620_v43  ;;  %v1596_v0 = vmul.f32 %v1206_v54, %v621_v44  ;;  %v1597_v3 = vmul.f32 %v1207_v56, %v622_v47  ;;  %v383_v51 = vld [vmem:[%s3677_s4 + $0x1e0] sm:$0xff]  ;;  %v384_v56 = vld [vmem:[%s3677_s4 + $0x1e8] sm:$0xff] }
  0xd0   : > { %v1598_v4 = vmul.f32 %v1208_v57, %v623_v48  ;;  %v1599_v5 = vmul.f32 %v1209_v58, %v624_v49  ;;  %v626_v6 = vunpack.c.l.bf16 %v377_v55  ;;  %v627_v10 = vunpack.c.h.bf16 %v377_v55  ;;  %v385_v57 = vld [vmem:[%s3677_s4 + $0x1f0] sm:$0xff] }
  0xd1   : > { %v2063_v8 = vadd.f32 %v2062_v62, %v1593_v39  ;;  %v2067_v9 = vadd.f32 %v1596_v0, %v1595_v63  ;;  %v628_v11 = vunpack.c.l.bf16 %v378_v60  ;;  %v1600_v13 = vmul.f32 %v1210_v59, %v625_v50  ;;  %v968_v62 = vld [vmem:[%s3684_s15 + $0x1e0] sm:$0xff] }
  0xd2   : > { %v629_v14 = vunpack.c.h.bf16 %v378_v60  ;;  %v630_v15 = vunpack.c.l.bf16 %v379_v1  ;;  %v1211_v16 = vunpack.c.l.bf16 %v962_v2  ;;  %v1212_v19 = vunpack.c.h.bf16 %v962_v2 }
  0xd3   : > { %v2064_v17 = vadd.f32 %v2063_v8, %v1594_v61  ;;  %v2068_v18 = vadd.f32 %v2067_v9, %v1597_v3  ;;  %v1213_v20 = vunpack.c.l.bf16 %v963_v7  ;;  %v631_v22 = vunpack.c.h.bf16 %v379_v1  ;;  %v969_v3 = vld [vmem:[%s3684_s15 + $0x1e8] sm:$0xff] }
  0xd4   : > { %v1214_v23 = vunpack.c.h.bf16 %v963_v7  ;;  %v1215_v24 = vunpack.c.l.bf16 %v964_v12  ;;  %v1601_v25 = vmul.f32 %v1211_v16, %v626_v6  ;;  %v1216_v28 = vunpack.c.h.bf16 %v964_v12 }
  0xd5   : > { %2065 = vadd.xlane.f32.xlu0 %v2064_v17  ;;  %v2069_v27 = vadd.f32 %v2068_v18, %v1598_v4  ;;  %v1602_v29 = vmul.f32 %v1212_v19, %v627_v10  ;;  %v1603_v30 = vmul.f32 %v1213_v20, %v628_v11  ;;  %v632_v35 = vunpack.c.l.bf16 %v380_v21  ;;  %v970_v4 = vld [vmem:[%s3684_s15 + $0x1f0] sm:$0xff]  ;;  %v386_v17 = vld [vmem:[%s3677_s4 + $0x1f8] sm:$0xff] }
  0xd6   : > { %v1604_v33 = vmul.f32 %v1214_v23, %v629_v14  ;;  %v1605_v34 = vmul.f32 %v1215_v24, %v630_v15  ;;  %v633_v36 = vunpack.c.h.bf16 %v380_v21  ;;  %v634_v40 = vunpack.c.l.bf16 %v381_v26  ;;  %v388_v23 = vld [vmem:[%s3677_s4 + $0x208] sm:$0xff] }
  0xd7   : > { %v2070_v38 = vadd.f32 %v2069_v27, %v1599_v5  ;;  %v2074_v39 = vadd.f32 %v1602_v29, %v1601_v25  ;;  %v635_v41 = vunpack.c.h.bf16 %v381_v26  ;;  %v636_v43 = vunpack.c.l.bf16 %v382_v31 }
  0xd8   : > { %v637_v44 = vunpack.c.h.bf16 %v382_v31  ;;  %v1217_v45 = vunpack.c.l.bf16 %v965_v32  ;;  %v1218_v46 = vunpack.c.h.bf16 %v965_v32  ;;  %v1219_v49 = vunpack.c.l.bf16 %v966_v37 }
  0xd9   : > { %v2071_v47 = vadd.f32 %v2070_v38, %v1600_v13  ;;  %v2075_v48 = vadd.f32 %v2074_v39, %v1603_v30  ;;  %v1220_v50 = vunpack.c.h.bf16 %v966_v37  ;;  %v1221_v52 = vunpack.c.l.bf16 %v967_v42 }
  0xda   : > { %v1222_v53 = vunpack.c.h.bf16 %v967_v42  ;;  %v1607_v54 = vmul.f32 %v1217_v45, %v632_v35  ;;  %v1608_v55 = vmul.f32 %v1218_v46, %v633_v36  ;;  %v1606_v58 = vmul.f32 %v1216_v28, %v631_v22  ;;  %v387_v22 = vld [vmem:[%s3677_s4 + $0x200] sm:$0xff]  ;;  %v971_v28 = vld [vmem:[%s3684_s15 + $0x1f8] sm:$0xff] }
  0xdb   : > { %2072 = vadd.xlane.f32.xlu1 %v2071_v47  ;;  %v2076_v59 = vadd.f32 %v2075_v48, %v1604_v33  ;;  %v1609_v60 = vmul.f32 %v1219_v49, %v634_v40  ;;  %v1610_v61 = vmul.f32 %v1220_v50, %v635_v41  ;;  %v1611_v63 = vmul.f32 %v1221_v52, %v636_v43  ;;  %v972_v33 = vld [vmem:[%s3684_s15 + $0x200] sm:$0xff]  ;;  %v390_v48 = vld [vmem:[%s3677_s4 + $0x218] sm:$0xff] }
  0xdc   : > { %v2081_v0 = vadd.f32 %v1608_v55, %v1607_v54  ;;  %v638_v1 = vunpack.c.l.bf16 %v383_v51  ;;  %v639_v2 = vunpack.c.h.bf16 %v383_v51  ;;  %v640_v6 = vunpack.c.l.bf16 %v384_v56  ;;  %v389_v43 = vld [vmem:[%s3677_s4 + $0x210] sm:$0xff]  ;;  %v974_v54 = vld [vmem:[%s3684_s15 + $0x210] sm:$0xff] }
  0xdd   : > { %v2077_v5 = vadd.f32 %v2076_v59, %v1605_v34  ;;  %v641_v7 = vunpack.c.h.bf16 %v384_v56  ;;  %v642_v8 = vunpack.c.l.bf16 %v385_v57  ;;  %v1612_v9 = vmul.f32 %v1222_v53, %v637_v44  ;;  %v973_v34 = vld [vmem:[%s3684_s15 + $0x208] sm:$0xff]  ;;  %v391_v53 = vld [vmem:[%s3677_s4 + $0x220] sm:$0xff]  ;;  %v975_v59 = vld [vmem:[%s3684_s15 + $0x218] sm:$0xff] }
  0xde   : > { %v2082_v10 = vadd.f32 %v2081_v0, %v1609_v60  ;;  %v1223_v11 = vunpack.c.l.bf16 %v968_v62  ;;  %v1224_v12 = vunpack.c.h.bf16 %v968_v62  ;;  %v1225_v14 = vunpack.c.l.bf16 %v969_v3  ;;  %v976_v0 = vld [vmem:[%s3684_s15 + $0x220] sm:$0xff] }
  0xdf   : > { %v2078_v13 = vadd.f32 %v2077_v5, %v1606_v58  ;;  %v1226_v15 = vunpack.c.h.bf16 %v969_v3  ;;  %v1227_v16 = vunpack.c.l.bf16 %v970_v4  ;;  %v643_v19 = vunpack.c.h.bf16 %v385_v57 }
  0xe0   : > { %v2083_v18 = vadd.f32 %v2082_v10, %v1610_v61  ;;  %v1613_v20 = vmul.f32 %v1223_v11, %v638_v1  ;;  %v1614_v21 = vmul.f32 %v1224_v12, %v639_v2  ;;  %v1228_v24 = vunpack.c.h.bf16 %v970_v4 }
  0xe1   : > { %2079 = vadd.xlane.f32.xlu0 %v2078_v13  ;;  %v1615_v25 = vmul.f32 %v1225_v14, %v640_v6  ;;  %v1616_v26 = vmul.f32 %v1226_v15, %v641_v7  ;;  %v1617_v27 = vmul.f32 %v1227_v16, %v642_v8  ;;  %v644_v31 = vunpack.c.l.bf16 %v386_v17  ;;  %v393_v14 = vld [vmem:[%s3677_s4 + $0x230] sm:$0xff] }
  0xe2   : > { %v2084_v29 = vadd.f32 %v2083_v18, %v1611_v63  ;;  %v2088_v30 = vadd.f32 %v1614_v21, %v1613_v20  ;;  %v645_v32 = vunpack.c.h.bf16 %v386_v17  ;;  %v646_v35 = vunpack.c.l.bf16 %v387_v22  ;;  %v977_v20 = vld [vmem:[%s3684_s15 + $0x228] sm:$0xff] }
  0xe3   : > { %v647_v36 = vunpack.c.h.bf16 %v387_v22  ;;  %v648_v37 = vunpack.c.l.bf16 %v388_v23  ;;  %v649_v38 = vunpack.c.h.bf16 %v388_v23  ;;  %v1229_v41 = vunpack.c.l.bf16 %v971_v28 }
  0xe4   : > { %v2085_v39 = vadd.f32 %v2084_v29, %v1612_v9  ;;  %v2089_v40 = vadd.f32 %v2088_v30, %v1615_v25  ;;  %v1230_v42 = vunpack.c.h.bf16 %v971_v28  ;;  %v1231_v44 = vunpack.c.l.bf16 %v972_v33  ;;  %v392_v9 = vld [vmem:[%s3677_s4 + $0x228] sm:$0xff]  ;;  %v978_v25 = vld [vmem:[%s3684_s15 + $0x230] sm:$0xff] }
  0xe5   : > { %v1232_v45 = vunpack.c.h.bf16 %v972_v33  ;;  %v1233_v46 = vunpack.c.l.bf16 %v973_v34  ;;  %v1234_v47 = vunpack.c.h.bf16 %v973_v34  ;;  %v1618_v49 = vmul.f32 %v1228_v24, %v643_v19  ;;  %v394_v19 = vld [vmem:[%s3677_s4 + $0x238] sm:$0xff]  ;;  %v979_v30 = vld [vmem:[%s3684_s15 + $0x238] sm:$0xff] }
  0xe6   : > { %2086 = vadd.xlane.f32.xlu1 %v2085_v39  ;;  %v2090_v50 = vadd.f32 %v2089_v40, %v1616_v26  ;;  %v1619_v51 = vmul.f32 %v1229_v41, %v644_v31  ;;  %v1620_v52 = vmul.f32 %v1230_v42, %v645_v32  ;;  %v1621_v55 = vmul.f32 %v1231_v44, %v646_v35  ;;  %v395_v39 = vld [vmem:[%s3677_s4 + $0x240] sm:$0xff]  ;;  %v396_v44 = vld [vmem:[%s3677_s4 + $0x248] sm:$0xff] }
  0xe7   : > { %v1622_v56 = vmul.f32 %v1232_v45, %v647_v36  ;;  %v1623_v57 = vmul.f32 %v1233_v46, %v648_v37  ;;  %v650_v58 = vunpack.c.l.bf16 %v389_v43  ;;  %v651_v62 = vunpack.c.h.bf16 %v389_v43  ;;  %v397_v45 = vld [vmem:[%s3677_s4 + $0x250] sm:$0xff] }
  0xe8   : > { %v2091_v60 = vadd.f32 %v2090_v50, %v1617_v27  ;;  %v2095_v61 = vadd.f32 %v1620_v52, %v1619_v51  ;;  %v652_v63 = vunpack.c.l.bf16 %v390_v48  ;;  %v1624_v1 = vmul.f32 %v1234_v47, %v649_v38  ;;  %v980_v50 = vld [vmem:[%s3684_s15 + $0x240] sm:$0xff] }
  0xe9   : > { %v653_v2 = vunpack.c.h.bf16 %v390_v48  ;;  %v654_v3 = vunpack.c.l.bf16 %v391_v53  ;;  %v1235_v4 = vunpack.c.l.bf16 %v974_v54  ;;  %v1236_v7 = vunpack.c.h.bf16 %v974_v54 }
  0xea   : > { %v2092_v5 = vadd.f32 %v2091_v60, %v1618_v49  ;;  %v2096_v6 = vadd.f32 %v2095_v61, %v1621_v55  ;;  %v1237_v8 = vunpack.c.l.bf16 %v975_v59  ;;  %v655_v10 = vunpack.c.h.bf16 %v391_v53  ;;  %v981_v55 = vld [vmem:[%s3684_s15 + $0x248] sm:$0xff] }
  0xeb   : > { %v1238_v11 = vunpack.c.h.bf16 %v975_v59  ;;  %v1239_v12 = vunpack.c.l.bf16 %v976_v0  ;;  %v1625_v13 = vmul.f32 %v1235_v4, %v650_v58  ;;  %v1240_v16 = vunpack.c.h.bf16 %v976_v0 }
  0xec   : > { %2093 = vadd.xlane.f32.xlu0 %v2092_v5  ;;  %v2097_v15 = vadd.f32 %v2096_v6, %v1622_v56  ;;  %v1626_v17 = vmul.f32 %v1236_v7, %v651_v62  ;;  %v1627_v18 = vmul.f32 %v1237_v8, %v652_v63  ;;  %v656_v23 = vunpack.c.l.bf16 %v392_v9  ;;  %v982_v56 = vld [vmem:[%s3684_s15 + $0x250] sm:$0xff]  ;;  %v398_v5 = vld [vmem:[%s3677_s4 + $0x258] sm:$0xff] }
  0xed   : > { %v1628_v21 = vmul.f32 %v1238_v11, %v653_v2  ;;  %v1629_v22 = vmul.f32 %v1239_v12, %v654_v3  ;;  %v657_v24 = vunpack.c.h.bf16 %v392_v9  ;;  %v658_v28 = vunpack.c.l.bf16 %v393_v14  ;;  %v400_v11 = vld [vmem:[%s3677_s4 + $0x268] sm:$0xff] }
  0xee   : > { %v2098_v26 = vadd.f32 %v2097_v15, %v1623_v57  ;;  %v2102_v27 = vadd.f32 %v1626_v17, %v1625_v13  ;;  %v659_v29 = vunpack.c.h.bf16 %v393_v14  ;;  %v660_v31 = vunpack.c.l.bf16 %v394_v19 }
  0xef   : > { %v661_v32 = vunpack.c.h.bf16 %v394_v19  ;;  %v1241_v33 = vunpack.c.l.bf16 %v977_v20  ;;  %v1242_v34 = vunpack.c.h.bf16 %v977_v20  ;;  %v1243_v37 = vunpack.c.l.bf16 %v978_v25 }
  0xf0   : > { %v2099_v35 = vadd.f32 %v2098_v26, %v1624_v1  ;;  %v2103_v36 = vadd.f32 %v2102_v27, %v1627_v18  ;;  %v1244_v38 = vunpack.c.h.bf16 %v978_v25  ;;  %v1245_v40 = vunpack.c.l.bf16 %v979_v30 }
  0xf1   : > { %v1246_v41 = vunpack.c.h.bf16 %v979_v30  ;;  %v1631_v42 = vmul.f32 %v1241_v33, %v656_v23  ;;  %v1632_v43 = vmul.f32 %v1242_v34, %v657_v24  ;;  %v1630_v46 = vmul.f32 %v1240_v16, %v655_v10  ;;  %v399_v10 = vld [vmem:[%s3677_s4 + $0x260] sm:$0xff]  ;;  %v983_v16 = vld [vmem:[%s3684_s15 + $0x258] sm:$0xff] }
  0xf2   : > { %2100 = vadd.xlane.f32.xlu1 %v2099_v35  ;;  %v2104_v47 = vadd.f32 %v2103_v36, %v1628_v21  ;;  %v1633_v48 = vmul.f32 %v1243_v37, %v658_v28  ;;  %v1634_v49 = vmul.f32 %v1244_v38, %v659_v29  ;;  %v1635_v51 = vmul.f32 %v1245_v40, %v660_v31  ;;  %v984_v21 = vld [vmem:[%s3684_s15 + $0x260] sm:$0xff]  ;;  %v402_v36 = vld [vmem:[%s3677_s4 + $0x278] sm:$0xff] }
  0xf3   : > { %v2109_v52 = vadd.f32 %v1632_v43, %v1631_v42  ;;  %v662_v53 = vunpack.c.l.bf16 %v395_v39  ;;  %v663_v54 = vunpack.c.h.bf16 %v395_v39  ;;  %v664_v58 = vunpack.c.l.bf16 %v396_v44  ;;  %v401_v31 = vld [vmem:[%s3677_s4 + $0x270] sm:$0xff]  ;;  %v986_v42 = vld [vmem:[%s3684_s15 + $0x270] sm:$0xff] }
  0xf4   : > { %v2105_v57 = vadd.f32 %v2104_v47, %v1629_v22  ;;  %v665_v59 = vunpack.c.h.bf16 %v396_v44  ;;  %v666_v60 = vunpack.c.l.bf16 %v397_v45  ;;  %v1636_v61 = vmul.f32 %v1246_v41, %v661_v32  ;;  %v985_v22 = vld [vmem:[%s3684_s15 + $0x268] sm:$0xff]  ;;  %v403_v41 = vld [vmem:[%s3677_s4 + $0x280] sm:$0xff]  ;;  %v987_v47 = vld [vmem:[%s3684_s15 + $0x278] sm:$0xff] }
  0xf5   : > { %v2110_v62 = vadd.f32 %v2109_v52, %v1633_v48  ;;  %v1247_v63 = vunpack.c.l.bf16 %v980_v50  ;;  %v1248_v0 = vunpack.c.h.bf16 %v980_v50  ;;  %v1249_v2 = vunpack.c.l.bf16 %v981_v55  ;;  %v988_v52 = vld [vmem:[%s3684_s15 + $0x280] sm:$0xff] }
  0xf6   : > { %v2106_v1 = vadd.f32 %v2105_v57, %v1630_v46  ;;  %v1250_v3 = vunpack.c.h.bf16 %v981_v55  ;;  %v1251_v4 = vunpack.c.l.bf16 %v982_v56  ;;  %v667_v7 = vunpack.c.h.bf16 %v397_v45 }
  0xf7   : > { %v2111_v6 = vadd.f32 %v2110_v62, %v1634_v49  ;;  %v1637_v8 = vmul.f32 %v1247_v63, %v662_v53  ;;  %v1638_v9 = vmul.f32 %v1248_v0, %v663_v54  ;;  %v1252_v12 = vunpack.c.h.bf16 %v982_v56 }
  0xf8   : > { %2107 = vadd.xlane.f32.xlu0 %v2106_v1  ;;  %v1639_v13 = vmul.f32 %v1249_v2, %v664_v58  ;;  %v1640_v14 = vmul.f32 %v1250_v3, %v665_v59  ;;  %v1641_v15 = vmul.f32 %v1251_v4, %v666_v60  ;;  %v668_v19 = vunpack.c.l.bf16 %v398_v5  ;;  %v405_v2 = vld [vmem:[%s3677_s4 + $0x290] sm:$0xff] }
  0xf9   : > { %v2112_v17 = vadd.f32 %v2111_v6, %v1635_v51  ;;  %v2116_v18 = vadd.f32 %v1638_v9, %v1637_v8  ;;  %v669_v20 = vunpack.c.h.bf16 %v398_v5  ;;  %v670_v23 = vunpack.c.l.bf16 %v399_v10  ;;  %v989_v8 = vld [vmem:[%s3684_s15 + $0x288] sm:$0xff] }
  0xfa   : > { %v671_v24 = vunpack.c.h.bf16 %v399_v10  ;;  %v672_v25 = vunpack.c.l.bf16 %v400_v11  ;;  %v673_v26 = vunpack.c.h.bf16 %v400_v11  ;;  %v1253_v29 = vunpack.c.l.bf16 %v983_v16 }
  0xfb   : > { %v2113_v27 = vadd.f32 %v2112_v17, %v1636_v61  ;;  %v2117_v28 = vadd.f32 %v2116_v18, %v1639_v13  ;;  %v1254_v30 = vunpack.c.h.bf16 %v983_v16  ;;  %v1255_v32 = vunpack.c.l.bf16 %v984_v21  ;;  %v404_v61 = vld [vmem:[%s3677_s4 + $0x288] sm:$0xff]  ;;  %v990_v13 = vld [vmem:[%s3684_s15 + $0x290] sm:$0xff] }
  0xfc   : > { %v1256_v33 = vunpack.c.h.bf16 %v984_v21  ;;  %v1257_v34 = vunpack.c.l.bf16 %v985_v22  ;;  %v1258_v35 = vunpack.c.h.bf16 %v985_v22  ;;  %v1642_v37 = vmul.f32 %v1252_v12, %v667_v7  ;;  %v406_v7 = vld [vmem:[%s3677_s4 + $0x298] sm:$0xff]  ;;  %v991_v18 = vld [vmem:[%s3684_s15 + $0x298] sm:$0xff] }
  0xfd   : > { %2114 = vadd.xlane.f32.xlu1 %v2113_v27  ;;  %v2118_v38 = vadd.f32 %v2117_v28, %v1640_v14  ;;  %v1643_v39 = vmul.f32 %v1253_v29, %v668_v19  ;;  %v1644_v40 = vmul.f32 %v1254_v30, %v669_v20  ;;  %v1645_v43 = vmul.f32 %v1255_v32, %v670_v23  ;;  %v407_v27 = vld [vmem:[%s3677_s4 + $0x2a0] sm:$0xff]  ;;  %v408_v32 = vld [vmem:[%s3677_s4 + $0x2a8] sm:$0xff] }
  0xfe   : > { %v1646_v44 = vmul.f32 %v1256_v33, %v671_v24  ;;  %v1647_v45 = vmul.f32 %v1257_v34, %v672_v25  ;;  %v674_v46 = vunpack.c.l.bf16 %v401_v31  ;;  %v675_v50 = vunpack.c.h.bf16 %v401_v31  ;;  %v409_v33 = vld [vmem:[%s3677_s4 + $0x2b0] sm:$0xff] }
  0xff   : > { %v2119_v48 = vadd.f32 %v2118_v38, %v1641_v15  ;;  %v2123_v49 = vadd.f32 %v1644_v40, %v1643_v39  ;;  %v676_v51 = vunpack.c.l.bf16 %v402_v36  ;;  %v1648_v53 = vmul.f32 %v1258_v35, %v673_v26  ;;  %v992_v38 = vld [vmem:[%s3684_s15 + $0x2a0] sm:$0xff] }
 0x100   : > { %v677_v54 = vunpack.c.h.bf16 %v402_v36  ;;  %v678_v55 = vunpack.c.l.bf16 %v403_v41  ;;  %v1259_v56 = vunpack.c.l.bf16 %v986_v42  ;;  %v1260_v59 = vunpack.c.h.bf16 %v986_v42 }
 0x101   : > { %v2120_v57 = vadd.f32 %v2119_v48, %v1642_v37  ;;  %v2124_v58 = vadd.f32 %v2123_v49, %v1645_v43  ;;  %v1261_v60 = vunpack.c.l.bf16 %v987_v47  ;;  %v679_v62 = vunpack.c.h.bf16 %v403_v41  ;;  %v993_v43 = vld [vmem:[%s3684_s15 + $0x2a8] sm:$0xff] }
 0x102   : > { %v1262_v63 = vunpack.c.h.bf16 %v987_v47  ;;  %v1263_v0 = vunpack.c.l.bf16 %v988_v52  ;;  %v1649_v1 = vmul.f32 %v1259_v56, %v674_v46  ;;  %v1264_v4 = vunpack.c.h.bf16 %v988_v52 }
 0x103   : > { %2121 = vadd.xlane.f32.xlu0 %v2120_v57  ;;  %v2125_v3 = vadd.f32 %v2124_v58, %v1646_v44  ;;  %v1650_v5 = vmul.f32 %v1260_v59, %v675_v50  ;;  %v1651_v6 = vmul.f32 %v1261_v60, %v676_v51  ;;  %v680_v11 = vunpack.c.l.bf16 %v404_v61  ;;  %v994_v44 = vld [vmem:[%s3684_s15 + $0x2b0] sm:$0xff]  ;;  %v410_v57 = vld [vmem:[%s3677_s4 + $0x2b8] sm:$0xff] }
 0x104   : > { %v1652_v9 = vmul.f32 %v1262_v63, %v677_v54  ;;  %v1653_v10 = vmul.f32 %v1263_v0, %v678_v55  ;;  %v681_v12 = vunpack.c.h.bf16 %v404_v61  ;;  %v682_v16 = vunpack.c.l.bf16 %v405_v2  ;;  %v412_v63 = vld [vmem:[%s3677_s4 + $0x2c8] sm:$0xff] }
 0x105   : > { %v2126_v14 = vadd.f32 %v2125_v3, %v1647_v45  ;;  %v2130_v15 = vadd.f32 %v1650_v5, %v1649_v1  ;;  %v683_v17 = vunpack.c.h.bf16 %v405_v2  ;;  %v684_v19 = vunpack.c.l.bf16 %v406_v7 }
 0x106   : > { %v685_v20 = vunpack.c.h.bf16 %v406_v7  ;;  %v1265_v21 = vunpack.c.l.bf16 %v989_v8  ;;  %v1266_v22 = vunpack.c.h.bf16 %v989_v8  ;;  %v1267_v25 = vunpack.c.l.bf16 %v990_v13 }
 0x107   : > { %v2127_v23 = vadd.f32 %v2126_v14, %v1648_v53  ;;  %v2131_v24 = vadd.f32 %v2130_v15, %v1651_v6  ;;  %v1268_v26 = vunpack.c.h.bf16 %v990_v13  ;;  %v1269_v28 = vunpack.c.l.bf16 %v991_v18 }
 0x108   : > { %v1270_v29 = vunpack.c.h.bf16 %v991_v18  ;;  %v1655_v30 = vmul.f32 %v1265_v21, %v680_v11  ;;  %v1656_v31 = vmul.f32 %v1266_v22, %v681_v12  ;;  %v1654_v34 = vmul.f32 %v1264_v4, %v679_v62  ;;  %v411_v62 = vld [vmem:[%s3677_s4 + $0x2c0] sm:$0xff]  ;;  %v995_v4 = vld [vmem:[%s3684_s15 + $0x2b8] sm:$0xff] }
 0x109   : > { %2128 = vadd.xlane.f32.xlu1 %v2127_v23  ;;  %v2132_v35 = vadd.f32 %v2131_v24, %v1652_v9  ;;  %v1657_v36 = vmul.f32 %v1267_v25, %v682_v16  ;;  %v1658_v37 = vmul.f32 %v1268_v26, %v683_v17  ;;  %v1659_v39 = vmul.f32 %v1269_v28, %v684_v19  ;;  %v996_v9 = vld [vmem:[%s3684_s15 + $0x2c0] sm:$0xff]  ;;  %v414_v24 = vld [vmem:[%s3677_s4 + $0x2d8] sm:$0xff] }
 0x10a   : > { %v2137_v40 = vadd.f32 %v1656_v31, %v1655_v30  ;;  %v686_v41 = vunpack.c.l.bf16 %v407_v27  ;;  %v687_v42 = vunpack.c.h.bf16 %v407_v27  ;;  %v688_v46 = vunpack.c.l.bf16 %v408_v32  ;;  %v413_v19 = vld [vmem:[%s3677_s4 + $0x2d0] sm:$0xff]  ;;  %v998_v30 = vld [vmem:[%s3684_s15 + $0x2d0] sm:$0xff] }
 0x10b   : > { %v2133_v45 = vadd.f32 %v2132_v35, %v1653_v10  ;;  %v689_v47 = vunpack.c.h.bf16 %v408_v32  ;;  %v690_v48 = vunpack.c.l.bf16 %v409_v33  ;;  %v1660_v49 = vmul.f32 %v1270_v29, %v685_v20  ;;  %v997_v10 = vld [vmem:[%s3684_s15 + $0x2c8] sm:$0xff]  ;;  %v415_v29 = vld [vmem:[%s3677_s4 + $0x2e0] sm:$0xff]  ;;  %v999_v35 = vld [vmem:[%s3684_s15 + $0x2d8] sm:$0xff] }
 0x10c   : > { %v2138_v50 = vadd.f32 %v2137_v40, %v1657_v36  ;;  %v1271_v51 = vunpack.c.l.bf16 %v992_v38  ;;  %v1272_v52 = vunpack.c.h.bf16 %v992_v38  ;;  %v1273_v54 = vunpack.c.l.bf16 %v993_v43  ;;  %v1000_v40 = vld [vmem:[%s3684_s15 + $0x2e0] sm:$0xff] }
 0x10d   : > { %v2134_v53 = vadd.f32 %v2133_v45, %v1654_v34  ;;  %v1274_v55 = vunpack.c.h.bf16 %v993_v43  ;;  %v1275_v56 = vunpack.c.l.bf16 %v994_v44  ;;  %v691_v59 = vunpack.c.h.bf16 %v409_v33 }
 0x10e   : > { %v2139_v58 = vadd.f32 %v2138_v50, %v1658_v37  ;;  %v1661_v60 = vmul.f32 %v1271_v51, %v686_v41  ;;  %v1662_v61 = vmul.f32 %v1272_v52, %v687_v42  ;;  %v1276_v0 = vunpack.c.h.bf16 %v994_v44 }
 0x10f   : > { %2135 = vadd.xlane.f32.xlu0 %v2134_v53  ;;  %v1663_v1 = vmul.f32 %v1273_v54, %v688_v46  ;;  %v1664_v2 = vmul.f32 %v1274_v55, %v689_v47  ;;  %v1665_v3 = vmul.f32 %v1275_v56, %v690_v48  ;;  %v692_v7 = vunpack.c.l.bf16 %v410_v57  ;;  %v417_v54 = vld [vmem:[%s3677_s4 + $0x2f0] sm:$0xff] }
 0x110   : > { %v2140_v5 = vadd.f32 %v2139_v58, %v1659_v39  ;;  %v2144_v6 = vadd.f32 %v1662_v61, %v1661_v60  ;;  %v693_v8 = vunpack.c.h.bf16 %v410_v57  ;;  %v694_v11 = vunpack.c.l.bf16 %v411_v62  ;;  %v1001_v60 = vld [vmem:[%s3684_s15 + $0x2e8] sm:$0xff] }
 0x111   : > { %v695_v12 = vunpack.c.h.bf16 %v411_v62  ;;  %v696_v13 = vunpack.c.l.bf16 %v412_v63  ;;  %v697_v14 = vunpack.c.h.bf16 %v412_v63  ;;  %v1277_v17 = vunpack.c.l.bf16 %v995_v4 }
 0x112   : > { %v2141_v15 = vadd.f32 %v2140_v5, %v1660_v49  ;;  %v2145_v16 = vadd.f32 %v2144_v6, %v1663_v1  ;;  %v1278_v18 = vunpack.c.h.bf16 %v995_v4  ;;  %v1279_v20 = vunpack.c.l.bf16 %v996_v9  ;;  %v416_v49 = vld [vmem:[%s3677_s4 + $0x2e8] sm:$0xff]  ;;  %v1002_v1 = vld [vmem:[%s3684_s15 + $0x2f0] sm:$0xff] }
 0x113   : > { %v1280_v21 = vunpack.c.h.bf16 %v996_v9  ;;  %v1281_v22 = vunpack.c.l.bf16 %v997_v10  ;;  %v1282_v23 = vunpack.c.h.bf16 %v997_v10  ;;  %v1666_v25 = vmul.f32 %v1276_v0, %v691_v59  ;;  %v418_v59 = vld [vmem:[%s3677_s4 + $0x2f8] sm:$0xff]  ;;  %v1003_v6 = vld [vmem:[%s3684_s15 + $0x2f8] sm:$0xff] }
 0x114   : > { %2142 = vadd.xlane.f32.xlu1 %v2141_v15  ;;  %v2146_v26 = vadd.f32 %v2145_v16, %v1664_v2  ;;  %v1667_v27 = vmul.f32 %v1277_v17, %v692_v7  ;;  %v1668_v28 = vmul.f32 %v1278_v18, %v693_v8  ;;  %v1669_v31 = vmul.f32 %v1279_v20, %v694_v11  ;;  %v419_v15 = vld [vmem:[%s3677_s4 + $0x300] sm:$0xff]  ;;  %v420_v20 = vld [vmem:[%s3677_s4 + $0x308] sm:$0xff] }
 0x115   : > { %v1670_v32 = vmul.f32 %v1280_v21, %v695_v12  ;;  %v1671_v33 = vmul.f32 %v1281_v22, %v696_v13  ;;  %v698_v34 = vunpack.c.l.bf16 %v413_v19  ;;  %v699_v38 = vunpack.c.h.bf16 %v413_v19  ;;  %v421_v21 = vld [vmem:[%s3677_s4 + $0x310] sm:$0xff] }
 0x116   : > { %v2147_v36 = vadd.f32 %v2146_v26, %v1665_v3  ;;  %v2151_v37 = vadd.f32 %v1668_v28, %v1667_v27  ;;  %v700_v39 = vunpack.c.l.bf16 %v414_v24  ;;  %v1672_v41 = vmul.f32 %v1282_v23, %v697_v14  ;;  %v1004_v26 = vld [vmem:[%s3684_s15 + $0x300] sm:$0xff] }
 0x117   : > { %v701_v42 = vunpack.c.h.bf16 %v414_v24  ;;  %v702_v43 = vunpack.c.l.bf16 %v415_v29  ;;  %v1283_v44 = vunpack.c.l.bf16 %v998_v30  ;;  %v1284_v47 = vunpack.c.h.bf16 %v998_v30 }
 0x118   : > { %v2148_v45 = vadd.f32 %v2147_v36, %v1666_v25  ;;  %v2152_v46 = vadd.f32 %v2151_v37, %v1669_v31  ;;  %v1285_v48 = vunpack.c.l.bf16 %v999_v35  ;;  %v703_v50 = vunpack.c.h.bf16 %v415_v29  ;;  %v1005_v31 = vld [vmem:[%s3684_s15 + $0x308] sm:$0xff] }
 0x119   : > { %v1286_v51 = vunpack.c.h.bf16 %v999_v35  ;;  %v1287_v52 = vunpack.c.l.bf16 %v1000_v40  ;;  %v1673_v53 = vmul.f32 %v1283_v44, %v698_v34  ;;  %v1288_v56 = vunpack.c.h.bf16 %v1000_v40 }
 0x11a   : > { %2149 = vadd.xlane.f32.xlu0 %v2148_v45  ;;  %v2153_v55 = vadd.f32 %v2152_v46, %v1670_v32  ;;  %v1674_v57 = vmul.f32 %v1284_v47, %v699_v38  ;;  %v1675_v58 = vmul.f32 %v1285_v48, %v700_v39  ;;  %v704_v63 = vunpack.c.l.bf16 %v416_v49  ;;  %v1006_v32 = vld [vmem:[%s3684_s15 + $0x310] sm:$0xff]  ;;  %v422_v45 = vld [vmem:[%s3677_s4 + $0x318] sm:$0xff] }
 0x11b   : > { %v1676_v61 = vmul.f32 %v1286_v51, %v701_v42  ;;  %v1677_v62 = vmul.f32 %v1287_v52, %v702_v43  ;;  %v705_v0 = vunpack.c.h.bf16 %v416_v49  ;;  %v706_v4 = vunpack.c.l.bf16 %v417_v54  ;;  %v424_v51 = vld [vmem:[%s3677_s4 + $0x328] sm:$0xff] }
 0x11c   : > { %v2154_v2 = vadd.f32 %v2153_v55, %v1671_v33  ;;  %v2158_v3 = vadd.f32 %v1674_v57, %v1673_v53  ;;  %v707_v5 = vunpack.c.h.bf16 %v417_v54  ;;  %v708_v7 = vunpack.c.l.bf16 %v418_v59 }
 0x11d   : > { %v709_v8 = vunpack.c.h.bf16 %v418_v59  ;;  %v1289_v9 = vunpack.c.l.bf16 %v1001_v60  ;;  %v1290_v10 = vunpack.c.h.bf16 %v1001_v60  ;;  %v1291_v13 = vunpack.c.l.bf16 %v1002_v1 }
 0x11e   : > { %v2155_v11 = vadd.f32 %v2154_v2, %v1672_v41  ;;  %v2159_v12 = vadd.f32 %v2158_v3, %v1675_v58  ;;  %v1292_v14 = vunpack.c.h.bf16 %v1002_v1  ;;  %v1293_v16 = vunpack.c.l.bf16 %v1003_v6 }
 0x11f   : > { %v1294_v17 = vunpack.c.h.bf16 %v1003_v6  ;;  %v1679_v18 = vmul.f32 %v1289_v9, %v704_v63  ;;  %v1680_v19 = vmul.f32 %v1290_v10, %v705_v0  ;;  %v1678_v22 = vmul.f32 %v1288_v56, %v703_v50  ;;  %v423_v50 = vld [vmem:[%s3677_s4 + $0x320] sm:$0xff]  ;;  %v1007_v56 = vld [vmem:[%s3684_s15 + $0x318] sm:$0xff] }
 0x120   : > { %2156 = vadd.xlane.f32.xlu1 %v2155_v11  ;;  %v2160_v23 = vadd.f32 %v2159_v12, %v1676_v61  ;;  %v1681_v24 = vmul.f32 %v1291_v13, %v706_v4  ;;  %v1682_v25 = vmul.f32 %v1292_v14, %v707_v5  ;;  %v1683_v27 = vmul.f32 %v1293_v16, %v708_v7  ;;  %v1008_v61 = vld [vmem:[%s3684_s15 + $0x320] sm:$0xff]  ;;  %v426_v12 = vld [vmem:[%s3677_s4 + $0x338] sm:$0xff] }
 0x121   : > { %v2165_v28 = vadd.f32 %v1680_v19, %v1679_v18  ;;  %v710_v29 = vunpack.c.l.bf16 %v419_v15  ;;  %v711_v30 = vunpack.c.h.bf16 %v419_v15  ;;  %v712_v34 = vunpack.c.l.bf16 %v420_v20  ;;  %v425_v7 = vld [vmem:[%s3677_s4 + $0x330] sm:$0xff]  ;;  %v1010_v18 = vld [vmem:[%s3684_s15 + $0x330] sm:$0xff] }
 0x122   : > { %v2161_v33 = vadd.f32 %v2160_v23, %v1677_v62  ;;  %v713_v35 = vunpack.c.h.bf16 %v420_v20  ;;  %v714_v36 = vunpack.c.l.bf16 %v421_v21  ;;  %v1684_v37 = vmul.f32 %v1294_v17, %v709_v8  ;;  %v1009_v62 = vld [vmem:[%s3684_s15 + $0x328] sm:$0xff]  ;;  %v427_v17 = vld [vmem:[%s3677_s4 + $0x340] sm:$0xff]  ;;  %v1011_v23 = vld [vmem:[%s3684_s15 + $0x338] sm:$0xff] }
 0x123   : > { %v2166_v38 = vadd.f32 %v2165_v28, %v1681_v24  ;;  %v1295_v39 = vunpack.c.l.bf16 %v1004_v26  ;;  %v1296_v40 = vunpack.c.h.bf16 %v1004_v26  ;;  %v1297_v42 = vunpack.c.l.bf16 %v1005_v31  ;;  %v1012_v28 = vld [vmem:[%s3684_s15 + $0x340] sm:$0xff] }
 0x124   : > { %v2162_v41 = vadd.f32 %v2161_v33, %v1678_v22  ;;  %v1298_v43 = vunpack.c.h.bf16 %v1005_v31  ;;  %v1299_v44 = vunpack.c.l.bf16 %v1006_v32  ;;  %v715_v47 = vunpack.c.h.bf16 %v421_v21 }
 0x125   : > { %v2167_v46 = vadd.f32 %v2166_v38, %v1682_v25  ;;  %v1685_v48 = vmul.f32 %v1295_v39, %v710_v29  ;;  %v1686_v49 = vmul.f32 %v1296_v40, %v711_v30  ;;  %v1300_v52 = vunpack.c.h.bf16 %v1006_v32 }
 0x126   : > { %2163 = vadd.xlane.f32.xlu0 %v2162_v41  ;;  %v1687_v53 = vmul.f32 %v1297_v42, %v712_v34  ;;  %v1688_v54 = vmul.f32 %v1298_v43, %v713_v35  ;;  %v1689_v55 = vmul.f32 %v1299_v44, %v714_v36  ;;  %v716_v59 = vunpack.c.l.bf16 %v422_v45  ;;  %v429_v42 = vld [vmem:[%s3677_s4 + $0x350] sm:$0xff] }
 0x127   : > { %v2168_v57 = vadd.f32 %v2167_v46, %v1683_v27  ;;  %v2172_v58 = vadd.f32 %v1686_v49, %v1685_v48  ;;  %v717_v60 = vunpack.c.h.bf16 %v422_v45  ;;  %v718_v63 = vunpack.c.l.bf16 %v423_v50  ;;  %v1013_v48 = vld [vmem:[%s3684_s15 + $0x348] sm:$0xff] }
 0x128   : > { %v719_v0 = vunpack.c.h.bf16 %v423_v50  ;;  %v720_v1 = vunpack.c.l.bf16 %v424_v51  ;;  %v721_v2 = vunpack.c.h.bf16 %v424_v51  ;;  %v1301_v5 = vunpack.c.l.bf16 %v1007_v56 }
 0x129   : > { %v2169_v3 = vadd.f32 %v2168_v57, %v1684_v37  ;;  %v2173_v4 = vadd.f32 %v2172_v58, %v1687_v53  ;;  %v1302_v6 = vunpack.c.h.bf16 %v1007_v56  ;;  %v1303_v8 = vunpack.c.l.bf16 %v1008_v61  ;;  %v428_v37 = vld [vmem:[%s3677_s4 + $0x348] sm:$0xff]  ;;  %v1014_v53 = vld [vmem:[%s3684_s15 + $0x350] sm:$0xff] }
 0x12a   : > { %v1304_v9 = vunpack.c.h.bf16 %v1008_v61  ;;  %v1305_v10 = vunpack.c.l.bf16 %v1009_v62  ;;  %v1306_v11 = vunpack.c.h.bf16 %v1009_v62  ;;  %v1690_v13 = vmul.f32 %v1300_v52, %v715_v47  ;;  %v430_v47 = vld [vmem:[%s3677_s4 + $0x358] sm:$0xff]  ;;  %v1015_v58 = vld [vmem:[%s3684_s15 + $0x358] sm:$0xff] }
 0x12b   : > { %2170 = vadd.xlane.f32.xlu1 %v2169_v3  ;;  %v2174_v14 = vadd.f32 %v2173_v4, %v1688_v54  ;;  %v1691_v15 = vmul.f32 %v1301_v5, %v716_v59  ;;  %v1692_v16 = vmul.f32 %v1302_v6, %v717_v60  ;;  %v1693_v19 = vmul.f32 %v1303_v8, %v718_v63  ;;  %v431_v3 = vld [vmem:[%s3677_s4 + $0x360] sm:$0xff]  ;;  %v432_v8 = vld [vmem:[%s3677_s4 + $0x368] sm:$0xff] }
 0x12c   : > { %v1694_v20 = vmul.f32 %v1304_v9, %v719_v0  ;;  %v1695_v21 = vmul.f32 %v1305_v10, %v720_v1  ;;  %v722_v22 = vunpack.c.l.bf16 %v425_v7  ;;  %v723_v26 = vunpack.c.h.bf16 %v425_v7  ;;  %v433_v9 = vld [vmem:[%s3677_s4 + $0x370] sm:$0xff] }
 0x12d   : > { %v2175_v24 = vadd.f32 %v2174_v14, %v1689_v55  ;;  %v2179_v25 = vadd.f32 %v1692_v16, %v1691_v15  ;;  %v724_v27 = vunpack.c.l.bf16 %v426_v12  ;;  %v1696_v29 = vmul.f32 %v1306_v11, %v721_v2  ;;  %v1016_v14 = vld [vmem:[%s3684_s15 + $0x360] sm:$0xff] }
 0x12e   : > { %v725_v30 = vunpack.c.h.bf16 %v426_v12  ;;  %v726_v31 = vunpack.c.l.bf16 %v427_v17  ;;  %v1307_v32 = vunpack.c.l.bf16 %v1010_v18  ;;  %v1308_v35 = vunpack.c.h.bf16 %v1010_v18 }
 0x12f   : > { %v2176_v33 = vadd.f32 %v2175_v24, %v1690_v13  ;;  %v2180_v34 = vadd.f32 %v2179_v25, %v1693_v19  ;;  %v1309_v36 = vunpack.c.l.bf16 %v1011_v23  ;;  %v727_v38 = vunpack.c.h.bf16 %v427_v17  ;;  %v1017_v19 = vld [vmem:[%s3684_s15 + $0x368] sm:$0xff] }
 0x130   : > { %v1310_v39 = vunpack.c.h.bf16 %v1011_v23  ;;  %v1311_v40 = vunpack.c.l.bf16 %v1012_v28  ;;  %v1697_v41 = vmul.f32 %v1307_v32, %v722_v22  ;;  %v1312_v44 = vunpack.c.h.bf16 %v1012_v28 }
 0x131   : > { %2177 = vadd.xlane.f32.xlu0 %v2176_v33  ;;  %v2181_v43 = vadd.f32 %v2180_v34, %v1694_v20  ;;  %v1698_v45 = vmul.f32 %v1308_v35, %v723_v26  ;;  %v1699_v46 = vmul.f32 %v1309_v36, %v724_v27  ;;  %v728_v51 = vunpack.c.l.bf16 %v428_v37  ;;  %v1018_v20 = vld [vmem:[%s3684_s15 + $0x370] sm:$0xff]  ;;  %v434_v33 = vld [vmem:[%s3677_s4 + $0x378] sm:$0xff] }
 0x132   : > { %v1700_v49 = vmul.f32 %v1310_v39, %v725_v30  ;;  %v1701_v50 = vmul.f32 %v1311_v40, %v726_v31  ;;  %v729_v52 = vunpack.c.h.bf16 %v428_v37  ;;  %v730_v56 = vunpack.c.l.bf16 %v429_v42  ;;  %v436_v39 = vld [vmem:[%s3677_s4 + $0x388] sm:$0xff] }
 0x133   : > { %v2182_v54 = vadd.f32 %v2181_v43, %v1695_v21  ;;  %v2186_v55 = vadd.f32 %v1698_v45, %v1697_v41  ;;  %v731_v57 = vunpack.c.h.bf16 %v429_v42  ;;  %v732_v59 = vunpack.c.l.bf16 %v430_v47 }
 0x134   : > { %v733_v60 = vunpack.c.h.bf16 %v430_v47  ;;  %v1313_v61 = vunpack.c.l.bf16 %v1013_v48  ;;  %v1314_v62 = vunpack.c.h.bf16 %v1013_v48  ;;  %v1315_v1 = vunpack.c.l.bf16 %v1014_v53 }
 0x135   : > { %v2183_v63 = vadd.f32 %v2182_v54, %v1696_v29  ;;  %v2187_v0 = vadd.f32 %v2186_v55, %v1699_v46  ;;  %v1316_v2 = vunpack.c.h.bf16 %v1014_v53  ;;  %v1317_v4 = vunpack.c.l.bf16 %v1015_v58 }
 0x136   : > { %v1318_v5 = vunpack.c.h.bf16 %v1015_v58  ;;  %v1703_v6 = vmul.f32 %v1313_v61, %v728_v51  ;;  %v1704_v7 = vmul.f32 %v1314_v62, %v729_v52  ;;  %v1702_v10 = vmul.f32 %v1312_v44, %v727_v38  ;;  %v435_v38 = vld [vmem:[%s3677_s4 + $0x380] sm:$0xff]  ;;  %v1019_v44 = vld [vmem:[%s3684_s15 + $0x378] sm:$0xff] }
 0x137   : > { %2184 = vadd.xlane.f32.xlu1 %v2183_v63  ;;  %v2188_v11 = vadd.f32 %v2187_v0, %v1700_v49  ;;  %v1705_v12 = vmul.f32 %v1315_v1, %v730_v56  ;;  %v1706_v13 = vmul.f32 %v1316_v2, %v731_v57  ;;  %v1707_v15 = vmul.f32 %v1317_v4, %v732_v59  ;;  %v1020_v49 = vld [vmem:[%s3684_s15 + $0x380] sm:$0xff]  ;;  %v438_v0 = vld [vmem:[%s3677_s4 + $0x398] sm:$0xff] }
 0x138   : > { %v2193_v16 = vadd.f32 %v1704_v7, %v1703_v6  ;;  %v734_v17 = vunpack.c.l.bf16 %v431_v3  ;;  %v735_v18 = vunpack.c.h.bf16 %v431_v3  ;;  %v736_v22 = vunpack.c.l.bf16 %v432_v8  ;;  %v437_v59 = vld [vmem:[%s3677_s4 + $0x390] sm:$0xff]  ;;  %v1022_v6 = vld [vmem:[%s3684_s15 + $0x390] sm:$0xff] }
 0x139   : > { %v2189_v21 = vadd.f32 %v2188_v11, %v1701_v50  ;;  %v737_v23 = vunpack.c.h.bf16 %v432_v8  ;;  %v738_v24 = vunpack.c.l.bf16 %v433_v9  ;;  %v1708_v25 = vmul.f32 %v1318_v5, %v733_v60  ;;  %v1021_v50 = vld [vmem:[%s3684_s15 + $0x388] sm:$0xff]  ;;  %v439_v5 = vld [vmem:[%s3677_s4 + $0x3a0] sm:$0xff]  ;;  %v1023_v11 = vld [vmem:[%s3684_s15 + $0x398] sm:$0xff] }
 0x13a   : > { %v2194_v26 = vadd.f32 %v2193_v16, %v1705_v12  ;;  %v1319_v27 = vunpack.c.l.bf16 %v1016_v14  ;;  %v1320_v28 = vunpack.c.h.bf16 %v1016_v14  ;;  %v1321_v30 = vunpack.c.l.bf16 %v1017_v19  ;;  %v1024_v16 = vld [vmem:[%s3684_s15 + $0x3a0] sm:$0xff] }
 0x13b   : > { %v2190_v29 = vadd.f32 %v2189_v21, %v1702_v10  ;;  %v1322_v31 = vunpack.c.h.bf16 %v1017_v19  ;;  %v1323_v32 = vunpack.c.l.bf16 %v1018_v20  ;;  %v739_v35 = vunpack.c.h.bf16 %v433_v9 }
 0x13c   : > { %v2195_v34 = vadd.f32 %v2194_v26, %v1706_v13  ;;  %v1709_v36 = vmul.f32 %v1319_v27, %v734_v17  ;;  %v1710_v37 = vmul.f32 %v1320_v28, %v735_v18  ;;  %v1324_v40 = vunpack.c.h.bf16 %v1018_v20 }
 0x13d   : > { %2191 = vadd.xlane.f32.xlu0 %v2190_v29  ;;  %v1711_v41 = vmul.f32 %v1321_v30, %v736_v22  ;;  %v1712_v42 = vmul.f32 %v1322_v31, %v737_v23  ;;  %v1713_v43 = vmul.f32 %v1323_v32, %v738_v24  ;;  %v740_v47 = vunpack.c.l.bf16 %v434_v33  ;;  %v441_v30 = vld [vmem:[%s3677_s4 + $0x3b0] sm:$0xff] }
 0x13e   : > { %v2196_v45 = vadd.f32 %v2195_v34, %v1707_v15  ;;  %v2200_v46 = vadd.f32 %v1710_v37, %v1709_v36  ;;  %v741_v48 = vunpack.c.h.bf16 %v434_v33  ;;  %v742_v51 = vunpack.c.l.bf16 %v435_v38  ;;  %v1025_v36 = vld [vmem:[%s3684_s15 + $0x3a8] sm:$0xff] }
 0x13f   : > { %v743_v52 = vunpack.c.h.bf16 %v435_v38  ;;  %v744_v53 = vunpack.c.l.bf16 %v436_v39  ;;  %v745_v54 = vunpack.c.h.bf16 %v436_v39  ;;  %v1325_v57 = vunpack.c.l.bf16 %v1019_v44 }
 0x140   : > { %v2197_v55 = vadd.f32 %v2196_v45, %v1708_v25  ;;  %v2201_v56 = vadd.f32 %v2200_v46, %v1711_v41  ;;  %v1326_v58 = vunpack.c.h.bf16 %v1019_v44  ;;  %v1327_v60 = vunpack.c.l.bf16 %v1020_v49  ;;  %v440_v25 = vld [vmem:[%s3677_s4 + $0x3a8] sm:$0xff]  ;;  %v1026_v41 = vld [vmem:[%s3684_s15 + $0x3b0] sm:$0xff] }
 0x141   : > { %v1328_v61 = vunpack.c.h.bf16 %v1020_v49  ;;  %v1329_v62 = vunpack.c.l.bf16 %v1021_v50  ;;  %v1330_v63 = vunpack.c.h.bf16 %v1021_v50  ;;  %v1714_v1 = vmul.f32 %v1324_v40, %v739_v35  ;;  %v442_v35 = vld [vmem:[%s3677_s4 + $0x3b8] sm:$0xff]  ;;  %v1027_v46 = vld [vmem:[%s3684_s15 + $0x3b8] sm:$0xff] }
 0x142   : > { %2198 = vadd.xlane.f32.xlu1 %v2197_v55  ;;  %v2202_v2 = vadd.f32 %v2201_v56, %v1712_v42  ;;  %v1715_v3 = vmul.f32 %v1325_v57, %v740_v47  ;;  %v1716_v4 = vmul.f32 %v1326_v58, %v741_v48  ;;  %v1717_v7 = vmul.f32 %v1327_v60, %v742_v51  ;;  %v443_v55 = vld [vmem:[%s3677_s4 + $0x3c0] sm:$0xff]  ;;  %v444_v60 = vld [vmem:[%s3677_s4 + $0x3c8] sm:$0xff] }
 0x143   : > { %v1718_v8 = vmul.f32 %v1328_v61, %v743_v52  ;;  %v1719_v9 = vmul.f32 %v1329_v62, %v744_v53  ;;  %v746_v10 = vunpack.c.l.bf16 %v437_v59  ;;  %v747_v14 = vunpack.c.h.bf16 %v437_v59  ;;  %v445_v61 = vld [vmem:[%s3677_s4 + $0x3d0] sm:$0xff] }
 0x144   : > { %v2203_v12 = vadd.f32 %v2202_v2, %v1713_v43  ;;  %v2207_v13 = vadd.f32 %v1716_v4, %v1715_v3  ;;  %v748_v15 = vunpack.c.l.bf16 %v438_v0  ;;  %v1720_v17 = vmul.f32 %v1330_v63, %v745_v54  ;;  %v1028_v2 = vld [vmem:[%s3684_s15 + $0x3c0] sm:$0xff] }
 0x145   : > { %v749_v18 = vunpack.c.h.bf16 %v438_v0  ;;  %v750_v19 = vunpack.c.l.bf16 %v439_v5  ;;  %v1331_v20 = vunpack.c.l.bf16 %v1022_v6  ;;  %v1332_v23 = vunpack.c.h.bf16 %v1022_v6 }
 0x146   : > { %v2204_v21 = vadd.f32 %v2203_v12, %v1714_v1  ;;  %v2208_v22 = vadd.f32 %v2207_v13, %v1717_v7  ;;  %v1333_v24 = vunpack.c.l.bf16 %v1023_v11  ;;  %v751_v26 = vunpack.c.h.bf16 %v439_v5  ;;  %v1029_v7 = vld [vmem:[%s3684_s15 + $0x3c8] sm:$0xff] }
 0x147   : > { %v1334_v27 = vunpack.c.h.bf16 %v1023_v11  ;;  %v1335_v28 = vunpack.c.l.bf16 %v1024_v16  ;;  %v1721_v29 = vmul.f32 %v1331_v20, %v746_v10  ;;  %v1336_v32 = vunpack.c.h.bf16 %v1024_v16 }
 0x148   : > { %2205 = vadd.xlane.f32.xlu0 %v2204_v21  ;;  %v2209_v31 = vadd.f32 %v2208_v22, %v1718_v8  ;;  %v1722_v33 = vmul.f32 %v1332_v23, %v747_v14  ;;  %v1723_v34 = vmul.f32 %v1333_v24, %v748_v15  ;;  %v752_v39 = vunpack.c.l.bf16 %v440_v25  ;;  %v1030_v8 = vld [vmem:[%s3684_s15 + $0x3d0] sm:$0xff]  ;;  %v446_v21 = vld [vmem:[%s3677_s4 + $0x3d8] sm:$0xff] }
 0x149   : > { %v1724_v37 = vmul.f32 %v1334_v27, %v749_v18  ;;  %v1725_v38 = vmul.f32 %v1335_v28, %v750_v19  ;;  %v753_v40 = vunpack.c.h.bf16 %v440_v25  ;;  %v754_v44 = vunpack.c.l.bf16 %v441_v30  ;;  %v448_v27 = vld [vmem:[%s3677_s4 + $0x3e8] sm:$0xff] }
 0x14a   : > { %v2210_v42 = vadd.f32 %v2209_v31, %v1719_v9  ;;  %v2214_v43 = vadd.f32 %v1722_v33, %v1721_v29  ;;  %v755_v45 = vunpack.c.h.bf16 %v441_v30  ;;  %v756_v47 = vunpack.c.l.bf16 %v442_v35 }
 0x14b   : > { %v757_v48 = vunpack.c.h.bf16 %v442_v35  ;;  %v1337_v49 = vunpack.c.l.bf16 %v1025_v36  ;;  %v1338_v50 = vunpack.c.h.bf16 %v1025_v36  ;;  %v1339_v53 = vunpack.c.l.bf16 %v1026_v41 }
 0x14c   : > { %v2211_v51 = vadd.f32 %v2210_v42, %v1720_v17  ;;  %v2215_v52 = vadd.f32 %v2214_v43, %v1723_v34  ;;  %v1340_v54 = vunpack.c.h.bf16 %v1026_v41  ;;  %v1341_v56 = vunpack.c.l.bf16 %v1027_v46 }
 0x14d   : > { %v1342_v57 = vunpack.c.h.bf16 %v1027_v46  ;;  %v1727_v58 = vmul.f32 %v1337_v49, %v752_v39  ;;  %v1728_v59 = vmul.f32 %v1338_v50, %v753_v40  ;;  %v1726_v62 = vmul.f32 %v1336_v32, %v751_v26  ;;  %v447_v26 = vld [vmem:[%s3677_s4 + $0x3e0] sm:$0xff]  ;;  %v1031_v32 = vld [vmem:[%s3684_s15 + $0x3d8] sm:$0xff] }
 0x14e   : > { %2212 = vadd.xlane.f32.xlu1 %v2211_v51  ;;  %v2216_v63 = vadd.f32 %v2215_v52, %v1724_v37  ;;  %v1729_v0 = vmul.f32 %v1339_v53, %v754_v44  ;;  %v1730_v1 = vmul.f32 %v1340_v54, %v755_v45  ;;  %v1731_v3 = vmul.f32 %v1341_v56, %v756_v47  ;;  %v1032_v37 = vld [vmem:[%s3684_s15 + $0x3e0] sm:$0xff]  ;;  %v450_v52 = vld [vmem:[%s3677_s4 + $0x3f8] sm:$0xff] }
 0x14f   : > { %v2221_v4 = vadd.f32 %v1728_v59, %v1727_v58  ;;  %v758_v5 = vunpack.c.l.bf16 %v443_v55  ;;  %v759_v6 = vunpack.c.h.bf16 %v443_v55  ;;  %v760_v10 = vunpack.c.l.bf16 %v444_v60  ;;  %v449_v47 = vld [vmem:[%s3677_s4 + $0x3f0] sm:$0xff]  ;;  %v1034_v58 = vld [vmem:[%s3684_s15 + $0x3f0] sm:$0xff] }
 0x150   : > { %v2217_v9 = vadd.f32 %v2216_v63, %v1725_v38  ;;  %v761_v11 = vunpack.c.h.bf16 %v444_v60  ;;  %v762_v12 = vunpack.c.l.bf16 %v445_v61  ;;  %v1732_v13 = vmul.f32 %v1342_v57, %v757_v48  ;;  %v1033_v38 = vld [vmem:[%s3684_s15 + $0x3e8] sm:$0xff]  ;;  %v451_v57 = vld [vmem:[%s3677_s4 + $0x400] sm:$0xff]  ;;  %v1035_v63 = vld [vmem:[%s3684_s15 + $0x3f8] sm:$0xff] }
 0x151   : > { %v2222_v14 = vadd.f32 %v2221_v4, %v1729_v0  ;;  %v1343_v15 = vunpack.c.l.bf16 %v1028_v2  ;;  %v1344_v16 = vunpack.c.h.bf16 %v1028_v2  ;;  %v1345_v18 = vunpack.c.l.bf16 %v1029_v7  ;;  %v1036_v4 = vld [vmem:[%s3684_s15 + $0x400] sm:$0xff] }
 0x152   : > { %v2218_v17 = vadd.f32 %v2217_v9, %v1726_v62  ;;  %v1346_v19 = vunpack.c.h.bf16 %v1029_v7  ;;  %v1347_v20 = vunpack.c.l.bf16 %v1030_v8  ;;  %v763_v23 = vunpack.c.h.bf16 %v445_v61 }
 0x153   : > { %v2223_v22 = vadd.f32 %v2222_v14, %v1730_v1  ;;  %v1733_v24 = vmul.f32 %v1343_v15, %v758_v5  ;;  %v1734_v25 = vmul.f32 %v1344_v16, %v759_v6  ;;  %v1348_v28 = vunpack.c.h.bf16 %v1030_v8 }
 0x154   : > { %2219 = vadd.xlane.f32.xlu0 %v2218_v17  ;;  %v1735_v29 = vmul.f32 %v1345_v18, %v760_v10  ;;  %v1736_v30 = vmul.f32 %v1346_v19, %v761_v11  ;;  %v1737_v31 = vmul.f32 %v1347_v20, %v762_v12  ;;  %v764_v35 = vunpack.c.l.bf16 %v446_v21  ;;  %v453_v18 = vld [vmem:[%s3677_s4 + $0x410] sm:$0xff] }
 0x155   : > { %v2224_v33 = vadd.f32 %v2223_v22, %v1731_v3  ;;  %v2228_v34 = vadd.f32 %v1734_v25, %v1733_v24  ;;  %v765_v36 = vunpack.c.h.bf16 %v446_v21  ;;  %v766_v39 = vunpack.c.l.bf16 %v447_v26  ;;  %v1037_v24 = vld [vmem:[%s3684_s15 + $0x408] sm:$0xff] }
 0x156   : > { %v767_v40 = vunpack.c.h.bf16 %v447_v26  ;;  %v768_v41 = vunpack.c.l.bf16 %v448_v27  ;;  %v769_v42 = vunpack.c.h.bf16 %v448_v27  ;;  %v1349_v45 = vunpack.c.l.bf16 %v1031_v32 }
 0x157   : > { %v2225_v43 = vadd.f32 %v2224_v33, %v1732_v13  ;;  %v2229_v44 = vadd.f32 %v2228_v34, %v1735_v29  ;;  %v1350_v46 = vunpack.c.h.bf16 %v1031_v32  ;;  %v1351_v48 = vunpack.c.l.bf16 %v1032_v37  ;;  %v452_v13 = vld [vmem:[%s3677_s4 + $0x408] sm:$0xff]  ;;  %v1038_v29 = vld [vmem:[%s3684_s15 + $0x410] sm:$0xff] }
 0x158   : > { %v1352_v49 = vunpack.c.h.bf16 %v1032_v37  ;;  %v1353_v50 = vunpack.c.l.bf16 %v1033_v38  ;;  %v1354_v51 = vunpack.c.h.bf16 %v1033_v38  ;;  %v1738_v53 = vmul.f32 %v1348_v28, %v763_v23  ;;  %v454_v23 = vld [vmem:[%s3677_s4 + $0x418] sm:$0xff]  ;;  %v1039_v34 = vld [vmem:[%s3684_s15 + $0x418] sm:$0xff] }
 0x159   : > { %2226 = vadd.xlane.f32.xlu1 %v2225_v43  ;;  %v2230_v54 = vadd.f32 %v2229_v44, %v1736_v30  ;;  %v1739_v55 = vmul.f32 %v1349_v45, %v764_v35  ;;  %v1740_v56 = vmul.f32 %v1350_v46, %v765_v36  ;;  %v1741_v59 = vmul.f32 %v1351_v48, %v766_v39  ;;  %v455_v43 = vld [vmem:[%s3677_s4 + $0x420] sm:$0xff]  ;;  %v456_v48 = vld [vmem:[%s3677_s4 + $0x428] sm:$0xff] }
 0x15a   : > { %v1742_v60 = vmul.f32 %v1352_v49, %v767_v40  ;;  %v1743_v61 = vmul.f32 %v1353_v50, %v768_v41  ;;  %v770_v62 = vunpack.c.l.bf16 %v449_v47  ;;  %v771_v2 = vunpack.c.h.bf16 %v449_v47  ;;  %v457_v49 = vld [vmem:[%s3677_s4 + $0x430] sm:$0xff] }
 0x15b   : > { %v2231_v0 = vadd.f32 %v2230_v54, %v1737_v31  ;;  %v2235_v1 = vadd.f32 %v1740_v56, %v1739_v55  ;;  %v772_v3 = vunpack.c.l.bf16 %v450_v52  ;;  %v1744_v5 = vmul.f32 %v1354_v51, %v769_v42  ;;  %v1040_v54 = vld [vmem:[%s3684_s15 + $0x420] sm:$0xff] }
 0x15c   : > { %v773_v6 = vunpack.c.h.bf16 %v450_v52  ;;  %v774_v7 = vunpack.c.l.bf16 %v451_v57  ;;  %v1355_v8 = vunpack.c.l.bf16 %v1034_v58  ;;  %v1356_v11 = vunpack.c.h.bf16 %v1034_v58 }
 0x15d   : > { %v2232_v9 = vadd.f32 %v2231_v0, %v1738_v53  ;;  %v2236_v10 = vadd.f32 %v2235_v1, %v1741_v59  ;;  %v1357_v12 = vunpack.c.l.bf16 %v1035_v63  ;;  %v775_v14 = vunpack.c.h.bf16 %v451_v57  ;;  %v1041_v59 = vld [vmem:[%s3684_s15 + $0x428] sm:$0xff] }
 0x15e   : > { %v1358_v15 = vunpack.c.h.bf16 %v1035_v63  ;;  %v1359_v16 = vunpack.c.l.bf16 %v1036_v4  ;;  %v1745_v17 = vmul.f32 %v1355_v8, %v770_v62  ;;  %v1360_v20 = vunpack.c.h.bf16 %v1036_v4 }
 0x15f   : > { %2233 = vadd.xlane.f32.xlu0 %v2232_v9  ;;  %v2237_v19 = vadd.f32 %v2236_v10, %v1742_v60  ;;  %v1746_v21 = vmul.f32 %v1356_v11, %v771_v2  ;;  %v1747_v22 = vmul.f32 %v1357_v12, %v772_v3  ;;  %v776_v27 = vunpack.c.l.bf16 %v452_v13  ;;  %v1042_v60 = vld [vmem:[%s3684_s15 + $0x430] sm:$0xff]  ;;  %v458_v9 = vld [vmem:[%s3677_s4 + $0x438] sm:$0xff] }
 0x160   : > { %v1748_v25 = vmul.f32 %v1358_v15, %v773_v6  ;;  %v1749_v26 = vmul.f32 %v1359_v16, %v774_v7  ;;  %v777_v28 = vunpack.c.h.bf16 %v452_v13  ;;  %v778_v32 = vunpack.c.l.bf16 %v453_v18  ;;  %v460_v15 = vld [vmem:[%s3677_s4 + $0x448] sm:$0xff] }
 0x161   : > { %v2238_v30 = vadd.f32 %v2237_v19, %v1743_v61  ;;  %v2242_v31 = vadd.f32 %v1746_v21, %v1745_v17  ;;  %v779_v33 = vunpack.c.h.bf16 %v453_v18  ;;  %v780_v35 = vunpack.c.l.bf16 %v454_v23 }
 0x162   : > { %v781_v36 = vunpack.c.h.bf16 %v454_v23  ;;  %v1361_v37 = vunpack.c.l.bf16 %v1037_v24  ;;  %v1362_v38 = vunpack.c.h.bf16 %v1037_v24  ;;  %v1363_v41 = vunpack.c.l.bf16 %v1038_v29 }
 0x163   : > { %v2239_v39 = vadd.f32 %v2238_v30, %v1744_v5  ;;  %v2243_v40 = vadd.f32 %v2242_v31, %v1747_v22  ;;  %v1364_v42 = vunpack.c.h.bf16 %v1038_v29  ;;  %v1365_v44 = vunpack.c.l.bf16 %v1039_v34 }
 0x164   : > { %v1366_v45 = vunpack.c.h.bf16 %v1039_v34  ;;  %v1751_v46 = vmul.f32 %v1361_v37, %v776_v27  ;;  %v1752_v47 = vmul.f32 %v1362_v38, %v777_v28  ;;  %v1750_v50 = vmul.f32 %v1360_v20, %v775_v14  ;;  %v459_v14 = vld [vmem:[%s3677_s4 + $0x440] sm:$0xff]  ;;  %v1043_v20 = vld [vmem:[%s3684_s15 + $0x438] sm:$0xff] }
 0x165   : > { %2240 = vadd.xlane.f32.xlu1 %v2239_v39  ;;  %v2244_v51 = vadd.f32 %v2243_v40, %v1748_v25  ;;  %v1753_v52 = vmul.f32 %v1363_v41, %v778_v32  ;;  %v1754_v53 = vmul.f32 %v1364_v42, %v779_v33  ;;  %v1755_v55 = vmul.f32 %v1365_v44, %v780_v35  ;;  %v1044_v25 = vld [vmem:[%s3684_s15 + $0x440] sm:$0xff]  ;;  %v462_v40 = vld [vmem:[%s3677_s4 + $0x458] sm:$0xff] }
 0x166   : > { %v2249_v56 = vadd.f32 %v1752_v47, %v1751_v46  ;;  %v782_v57 = vunpack.c.l.bf16 %v455_v43  ;;  %v783_v58 = vunpack.c.h.bf16 %v455_v43  ;;  %v784_v62 = vunpack.c.l.bf16 %v456_v48  ;;  %v461_v35 = vld [vmem:[%s3677_s4 + $0x450] sm:$0xff]  ;;  %v1046_v46 = vld [vmem:[%s3684_s15 + $0x450] sm:$0xff] }
 0x167   : > { %v2245_v61 = vadd.f32 %v2244_v51, %v1749_v26  ;;  %v785_v63 = vunpack.c.h.bf16 %v456_v48  ;;  %v786_v0 = vunpack.c.l.bf16 %v457_v49  ;;  %v1756_v1 = vmul.f32 %v1366_v45, %v781_v36  ;;  %v1045_v26 = vld [vmem:[%s3684_s15 + $0x448] sm:$0xff]  ;;  %v463_v45 = vld [vmem:[%s3677_s4 + $0x460] sm:$0xff]  ;;  %v1047_v51 = vld [vmem:[%s3684_s15 + $0x458] sm:$0xff] }
 0x168   : > { %v2250_v2 = vadd.f32 %v2249_v56, %v1753_v52  ;;  %v1367_v3 = vunpack.c.l.bf16 %v1040_v54  ;;  %v1368_v4 = vunpack.c.h.bf16 %v1040_v54  ;;  %v1369_v6 = vunpack.c.l.bf16 %v1041_v59  ;;  %v1048_v56 = vld [vmem:[%s3684_s15 + $0x460] sm:$0xff] }
 0x169   : > { %v2246_v5 = vadd.f32 %v2245_v61, %v1750_v50  ;;  %v1370_v7 = vunpack.c.h.bf16 %v1041_v59  ;;  %v1371_v8 = vunpack.c.l.bf16 %v1042_v60  ;;  %v787_v11 = vunpack.c.h.bf16 %v457_v49 }
 0x16a   : > { %v2251_v10 = vadd.f32 %v2250_v2, %v1754_v53  ;;  %v1757_v12 = vmul.f32 %v1367_v3, %v782_v57  ;;  %v1758_v13 = vmul.f32 %v1368_v4, %v783_v58  ;;  %v1372_v16 = vunpack.c.h.bf16 %v1042_v60 }
 0x16b   : > { %2247 = vadd.xlane.f32.xlu0 %v2246_v5  ;;  %v1759_v17 = vmul.f32 %v1369_v6, %v784_v62  ;;  %v1760_v18 = vmul.f32 %v1370_v7, %v785_v63  ;;  %v1761_v19 = vmul.f32 %v1371_v8, %v786_v0  ;;  %v788_v23 = vunpack.c.l.bf16 %v458_v9  ;;  %v465_v6 = vld [vmem:[%s3677_s4 + $0x470] sm:$0xff] }
 0x16c   : > { %v2252_v21 = vadd.f32 %v2251_v10, %v1755_v55  ;;  %v2256_v22 = vadd.f32 %v1758_v13, %v1757_v12  ;;  %v789_v24 = vunpack.c.h.bf16 %v458_v9  ;;  %v790_v27 = vunpack.c.l.bf16 %v459_v14  ;;  %v1049_v12 = vld [vmem:[%s3684_s15 + $0x468] sm:$0xff] }
 0x16d   : > { %v791_v28 = vunpack.c.h.bf16 %v459_v14  ;;  %v792_v29 = vunpack.c.l.bf16 %v460_v15  ;;  %v793_v30 = vunpack.c.h.bf16 %v460_v15  ;;  %v1373_v33 = vunpack.c.l.bf16 %v1043_v20 }
 0x16e   : > { %v2253_v31 = vadd.f32 %v2252_v21, %v1756_v1  ;;  %v2257_v32 = vadd.f32 %v2256_v22, %v1759_v17  ;;  %v1374_v34 = vunpack.c.h.bf16 %v1043_v20  ;;  %v1375_v36 = vunpack.c.l.bf16 %v1044_v25  ;;  %v464_v1 = vld [vmem:[%s3677_s4 + $0x468] sm:$0xff]  ;;  %v1050_v17 = vld [vmem:[%s3684_s15 + $0x470] sm:$0xff] }
 0x16f   : > { %v1376_v37 = vunpack.c.h.bf16 %v1044_v25  ;;  %v1377_v38 = vunpack.c.l.bf16 %v1045_v26  ;;  %v1378_v39 = vunpack.c.h.bf16 %v1045_v26  ;;  %v1762_v41 = vmul.f32 %v1372_v16, %v787_v11  ;;  %v466_v11 = vld [vmem:[%s3677_s4 + $0x478] sm:$0xff]  ;;  %v1051_v22 = vld [vmem:[%s3684_s15 + $0x478] sm:$0xff] }
 0x170   : > { %2254 = vadd.xlane.f32.xlu1 %v2253_v31  ;;  %v2258_v42 = vadd.f32 %v2257_v32, %v1760_v18  ;;  %v1763_v43 = vmul.f32 %v1373_v33, %v788_v23  ;;  %v1764_v44 = vmul.f32 %v1374_v34, %v789_v24  ;;  %v1765_v47 = vmul.f32 %v1375_v36, %v790_v27  ;;  %v467_v31 = vld [vmem:[%s3677_s4 + $0x480] sm:$0xff]  ;;  %v468_v36 = vld [vmem:[%s3677_s4 + $0x488] sm:$0xff] }
 0x171   : > { %v1766_v48 = vmul.f32 %v1376_v37, %v791_v28  ;;  %v1767_v49 = vmul.f32 %v1377_v38, %v792_v29  ;;  %v794_v50 = vunpack.c.l.bf16 %v461_v35  ;;  %v795_v54 = vunpack.c.h.bf16 %v461_v35  ;;  %v3981_v37 = vld [vmem:[%s3677_s4 + $0x490] sm:$0xff]  ;;  %v3983_v38 = vpop.xlane.xlu0 %1953 }
 0x172   : > { %v2259_v52 = vadd.f32 %v2258_v42, %v1761_v19  ;;  %v2263_v53 = vadd.f32 %v1764_v44, %v1763_v43  ;;  %v796_v55 = vunpack.c.l.bf16 %v462_v40  ;;  %v1768_v57 = vmul.f32 %v1378_v39, %v793_v30  ;;  %v1052_v43 = vld [vmem:[%s3684_s15 + $0x480] sm:$0xff] }
 0x173   : > { %v797_v58 = vunpack.c.h.bf16 %v462_v40  ;;  %v798_v59 = vunpack.c.l.bf16 %v463_v45  ;;  %v1379_v60 = vunpack.c.l.bf16 %v1046_v46  ;;  %v1380_v63 = vunpack.c.h.bf16 %v1046_v46 }
 0x174   : > { %v2260_v61 = vadd.f32 %v2259_v52, %v1762_v41  ;;  %v2264_v62 = vadd.f32 %v2263_v53, %v1765_v47  ;;  %v1381_v0 = vunpack.c.l.bf16 %v1047_v51  ;;  %v799_v2 = vunpack.c.h.bf16 %v463_v45 }
 0x175   : > { %v1382_v3 = vunpack.c.h.bf16 %v1047_v51  ;;  %v1383_v4 = vunpack.c.l.bf16 %v1048_v56  ;;  %v1769_v5 = vmul.f32 %v1379_v60, %v794_v50  ;;  %v1384_v8 = vunpack.c.h.bf16 %v1048_v56 }
 0x176   : > { %2261 = vadd.xlane.f32.xlu0 %v2260_v61  ;;  %v2265_v7 = vadd.f32 %v2264_v62, %v1766_v48  ;;  %v1770_v9 = vmul.f32 %v1380_v63, %v795_v54  ;;  %v1771_v10 = vmul.f32 %v1381_v0, %v796_v55  ;;  %v800_v15 = vunpack.c.l.bf16 %v464_v1  ;;  %v1053_v48 = vld [vmem:[%s3684_s15 + $0x488] sm:$0xff] }
 0x177   : > { %v1772_v13 = vmul.f32 %v1382_v3, %v797_v58  ;;  %v1773_v14 = vmul.f32 %v1383_v4, %v798_v59  ;;  %v801_v16 = vunpack.c.h.bf16 %v464_v1  ;;  %v802_v20 = vunpack.c.l.bf16 %v465_v6  ;;  %v3989_v58 = vpop.xlane.xlu1 %1967  ;;  %v470_v63 = vld [vmem:[%s3677_s4 + $0x498] sm:$0xff]  ;;  %v471_v4 = vld [vmem:[%s3677_s4 + $0x4a0] sm:$0xff] }
 0x178   : > { %v2266_v18 = vadd.f32 %v2265_v7, %v1767_v49  ;;  %v2270_v19 = vadd.f32 %v1770_v9, %v1769_v5  ;;  %v803_v21 = vunpack.c.h.bf16 %v465_v6  ;;  %v804_v23 = vunpack.c.l.bf16 %v466_v11  ;;  %v1054_v49 = vld [vmem:[%s3684_s15 + $0x490] sm:$0xff]  ;;  %v472_v5 = vld [vmem:[%s3677_s4 + $0x4a8] sm:$0xff]  ;;  %v3995_v6 = vpop.xlane.xlu0 %1960 }
 0x179   : > { %v805_v24 = vunpack.c.h.bf16 %v466_v11  ;;  %v1385_v25 = vunpack.c.l.bf16 %v1049_v12  ;;  %v1386_v26 = vunpack.c.h.bf16 %v1049_v12  ;;  %v1387_v29 = vunpack.c.l.bf16 %v1050_v17  ;;  %v1055_v11 = vld [vmem:[%s3684_s15 + $0x498] sm:$0xff] }
 0x17a   : > { %v2267_v27 = vadd.f32 %v2266_v18, %v1768_v57  ;;  %v2271_v28 = vadd.f32 %v2270_v19, %v1771_v10  ;;  %v1388_v30 = vunpack.c.h.bf16 %v1050_v17  ;;  %v1389_v32 = vunpack.c.l.bf16 %v1051_v22  ;;  %v1057_v17 = vld [vmem:[%s3684_s15 + $0x4a8] sm:$0xff] }
 0x17b   : > { %v1390_v33 = vunpack.c.h.bf16 %v1051_v22  ;;  %v1775_v34 = vmul.f32 %v1385_v25, %v800_v15  ;;  %v1776_v35 = vmul.f32 %v1386_v26, %v801_v16  ;;  %v1774_v39 = vmul.f32 %v1384_v8, %v799_v2  ;;  %v1056_v16 = vld [vmem:[%s3684_s15 + $0x4a0] sm:$0xff] }
 0x17c   : > { %2268 = vadd.xlane.f32.xlu1 %v2267_v27  ;;  %v2272_v40 = vadd.f32 %v2271_v28, %v1772_v13  ;;  %v1777_v41 = vmul.f32 %v1387_v29, %v802_v20  ;;  %v1778_v42 = vmul.f32 %v1388_v30, %v803_v21  ;;  %v1779_v44 = vmul.f32 %v1389_v32, %v804_v23  ;;  %v473_v26 = vld [vmem:[%s3677_s4 + $0x4b0] sm:$0xff]  ;;  %v4001_v27 = vpop.xlane.xlu1 %1974  ;;  %v474_v32 = vld [vmem:[%s3677_s4 + $0x4b8] sm:$0xff] }
 0x17d   : > { %v2277_v45 = vadd.f32 %v1776_v35, %v1775_v34  ;;  %v806_v46 = vunpack.c.l.bf16 %v467_v31  ;;  %v807_v47 = vunpack.c.h.bf16 %v467_v31  ;;  %v808_v51 = vunpack.c.l.bf16 %v468_v36 }
 0x17e   : > { %v2273_v50 = vadd.f32 %v2272_v40, %v1773_v14  ;;  %v809_v52 = vunpack.c.h.bf16 %v468_v36  ;;  %v810_v53 = vunpack.c.l.bf16 %v3981_v37  ;;  %v1780_v54 = vmul.f32 %v1390_v33, %v805_v24  ;;  %v4008_v40 = vpop.xlane.xlu0 %1981 }
 0x17f   : > { %v2278_v55 = vadd.f32 %v2277_v45, %v1777_v41  ;;  %v1391_v56 = vunpack.c.l.bf16 %v1052_v43  ;;  %v1392_v57 = vunpack.c.h.bf16 %v1052_v43  ;;  %v1393_v60 = vunpack.c.l.bf16 %v1053_v48  ;;  %v1059_v45 = vld [vmem:[%s3684_s15 + $0x4b8] sm:$0xff] }
 0x180   : > { %v2274_v59 = vadd.f32 %v2273_v50, %v1774_v39  ;;  %v1394_v61 = vunpack.c.h.bf16 %v1053_v48  ;;  %v1395_v62 = vunpack.c.l.bf16 %v1054_v49  ;;  %v811_v1 = vunpack.c.h.bf16 %v3981_v37  ;;  %v4005_v37 = vld [vmem:[%s3677_s4 + $0x4c0] sm:$0xff]  ;;  %v1060_v50 = vld [vmem:[%s3684_s15 + $0x4c0] sm:$0xff] }
 0x181   : > { %v2279_v0 = vadd.f32 %v2278_v55, %v1778_v42  ;;  %v1781_v2 = vmul.f32 %v1391_v56, %v806_v46  ;;  %v1782_v3 = vmul.f32 %v1392_v57, %v807_v47  ;;  %v1396_v7 = vunpack.c.h.bf16 %v1054_v49  ;;  %v1058_v39 = vld [vmem:[%s3684_s15 + $0x4b0] sm:$0xff] }
 0x182   : > { %2275 = vadd.xlane.f32.xlu0 %v2274_v59  ;;  %v1783_v8 = vmul.f32 %v1393_v60, %v808_v51  ;;  %v1784_v9 = vmul.f32 %v1394_v61, %v809_v52  ;;  %v1785_v10 = vmul.f32 %v1395_v62, %v810_v53  ;;  %v812_v14 = vunpack.c.l.bf16 %v470_v63  ;;  %v476_v60 = vld [vmem:[%s3677_s4 + $0x4c8] sm:$0xff]  ;;  %v4014_v61 = vpop.xlane.xlu1 %1988 }
 0x183   : > { %v2280_v12 = vadd.f32 %v2279_v0, %v1779_v44  ;;  %v2284_v13 = vadd.f32 %v1782_v3, %v1781_v2  ;;  %v813_v15 = vunpack.c.h.bf16 %v470_v63  ;;  %v814_v18 = vunpack.c.l.bf16 %v471_v4  ;;  %v477_v2 = vld [vmem:[%s3677_s4 + $0x4d0] sm:$0xff] }
 0x184   : > { %v815_v19 = vunpack.c.h.bf16 %v471_v4  ;;  %v816_v20 = vunpack.c.l.bf16 %v472_v5  ;;  %v817_v21 = vunpack.c.h.bf16 %v472_v5  ;;  %v1397_v24 = vunpack.c.l.bf16 %v1055_v11 }
 0x185   : > { %v2281_v22 = vadd.f32 %v2280_v12, %v1780_v54  ;;  %v2285_v23 = vadd.f32 %v2284_v13, %v1783_v8  ;;  %v1398_v25 = vunpack.c.h.bf16 %v1055_v11  ;;  %v1399_v28 = vunpack.c.l.bf16 %v1056_v16  ;;  %v478_v8 = vld [vmem:[%s3677_s4 + $0x4d8] sm:$0xff] }
 0x186   : > { %v1400_v29 = vunpack.c.h.bf16 %v1056_v16  ;;  %v1401_v30 = vunpack.c.l.bf16 %v1057_v17  ;;  %v1402_v31 = vunpack.c.h.bf16 %v1057_v17  ;;  %v1786_v33 = vmul.f32 %v1396_v7, %v811_v1 }
 0x187   : > { %2282 = vadd.xlane.f32.xlu1 %v2281_v22  ;;  %v2286_v34 = vadd.f32 %v2285_v23, %v1784_v9  ;;  %v1787_v35 = vmul.f32 %v1397_v24, %v812_v14  ;;  %v1788_v36 = vmul.f32 %v1398_v25, %v813_v15  ;;  %v1789_v41 = vmul.f32 %v1399_v28, %v814_v18  ;;  %v1061_v9 = vld [vmem:[%s3684_s15 + $0x4c8] sm:$0xff]  ;;  %v1062_v15 = vld [vmem:[%s3684_s15 + $0x4d0] sm:$0xff] }
 0x188   : > { %v1790_v42 = vmul.f32 %v1400_v29, %v815_v19  ;;  %v1791_v43 = vmul.f32 %v1401_v30, %v816_v20  ;;  %v818_v44 = vunpack.c.l.bf16 %v473_v26  ;;  %v819_v48 = vunpack.c.h.bf16 %v473_v26  ;;  %v1063_v20 = vld [vmem:[%s3684_s15 + $0x4d8] sm:$0xff]  ;;  %v479_v30 = vld [vmem:[%s3677_s4 + $0x4e0] sm:$0xff] }
 0x189   : > { %v2287_v46 = vadd.f32 %v2286_v34, %v1785_v10  ;;  %v2291_v47 = vadd.f32 %v1788_v36, %v1787_v35  ;;  %v820_v49 = vunpack.c.l.bf16 %v474_v32  ;;  %v1792_v51 = vmul.f32 %v1402_v31, %v817_v21  ;;  %v4020_v10 = vpop.xlane.xlu0 %1995  ;;  %v4025_v31 = vpop.xlane.xlu1 %2002  ;;  %v480_v36 = vld [vmem:[%s3677_s4 + $0x4e8] sm:$0xff] }
 0x18a   : > { %v821_v52 = vunpack.c.h.bf16 %v474_v32  ;;  %v822_v53 = vunpack.c.l.bf16 %v4005_v37  ;;  %v1403_v54 = vunpack.c.l.bf16 %v1058_v39  ;;  %v1404_v57 = vunpack.c.h.bf16 %v1058_v39 }
 0x18b   : > { %v2288_v55 = vadd.f32 %v2287_v46, %v1786_v33  ;;  %v2292_v56 = vadd.f32 %v2291_v47, %v1789_v41  ;;  %v1405_v59 = vunpack.c.l.bf16 %v1059_v45  ;;  %v823_v62 = vunpack.c.h.bf16 %v4005_v37  ;;  %v4029_v37 = vld [vmem:[%s3677_s4 + $0x4f0] sm:$0xff] }
 0x18c   : > { %v1406_v63 = vunpack.c.h.bf16 %v1059_v45  ;;  %v1407_v0 = vunpack.c.l.bf16 %v1060_v50  ;;  %v1793_v1 = vmul.f32 %v1403_v54, %v818_v44  ;;  %v1408_v4 = vunpack.c.h.bf16 %v1060_v50  ;;  %v1064_v44 = vld [vmem:[%s3684_s15 + $0x4e0] sm:$0xff]  ;;  %v1065_v50 = vld [vmem:[%s3684_s15 + $0x4e8] sm:$0xff] }
 0x18d   : > { %2289 = vadd.xlane.f32.xlu0 %v2288_v55  ;;  %v2293_v3 = vadd.f32 %v2292_v56, %v1790_v42  ;;  %v1794_v5 = vmul.f32 %v1404_v57, %v819_v48  ;;  %v1795_v7 = vmul.f32 %v1405_v59, %v820_v49  ;;  %v824_v13 = vunpack.c.l.bf16 %v476_v60  ;;  %v4032_v45 = vpop.xlane.xlu0 %2009 }
 0x18e   : > { %v1796_v11 = vmul.f32 %v1406_v63, %v821_v52  ;;  %v1797_v12 = vmul.f32 %v1407_v0, %v822_v53  ;;  %v825_v14 = vunpack.c.h.bf16 %v476_v60  ;;  %v826_v18 = vunpack.c.l.bf16 %v477_v2 }
 0x18f   : > { %v2294_v16 = vadd.f32 %v2293_v3, %v1791_v43  ;;  %v2298_v17 = vadd.f32 %v1794_v5, %v1793_v1  ;;  %v827_v19 = vunpack.c.h.bf16 %v477_v2  ;;  %v828_v21 = vunpack.c.l.bf16 %v478_v8  ;;  %v482_v2 = vld [vmem:[%s3677_s4 + $0x4f8] sm:$0xff]  ;;  %v4038_v3 = vpop.xlane.xlu1 %2016 }
 0x190   : > { %v829_v22 = vunpack.c.h.bf16 %v478_v8  ;;  %v1409_v23 = vunpack.c.l.bf16 %v1061_v9  ;;  %v1410_v24 = vunpack.c.h.bf16 %v1061_v9  ;;  %v1411_v28 = vunpack.c.l.bf16 %v1062_v15  ;;  %v483_v9 = vld [vmem:[%s3677_s4 + $0x500] sm:$0xff] }
 0x191   : > { %v2295_v25 = vadd.f32 %v2294_v16, %v1792_v51  ;;  %v2299_v26 = vadd.f32 %v2298_v17, %v1795_v7  ;;  %v1412_v29 = vunpack.c.h.bf16 %v1062_v15  ;;  %v1413_v32 = vunpack.c.l.bf16 %v1063_v20  ;;  %v1066_v51 = vld [vmem:[%s3684_s15 + $0x4f0] sm:$0xff]  ;;  %v1067_v16 = vld [vmem:[%s3684_s15 + $0x4f8] sm:$0xff]  ;;  %v4044_v17 = vpop.xlane.xlu0 %2023 }
 0x192   : > { %v1414_v33 = vunpack.c.h.bf16 %v1063_v20  ;;  %v1799_v34 = vmul.f32 %v1409_v23, %v824_v13  ;;  %v1800_v35 = vmul.f32 %v1410_v24, %v825_v14  ;;  %v1798_v39 = vmul.f32 %v1408_v4, %v823_v62  ;;  %v1069_v23 = vld [vmem:[%s3684_s15 + $0x508] sm:$0xff] }
 0x193   : > { %2296 = vadd.xlane.f32.xlu1 %v2295_v25  ;;  %v2300_v41 = vadd.f32 %v2299_v26, %v1796_v11  ;;  %v1801_v42 = vmul.f32 %v1411_v28, %v826_v18  ;;  %v1802_v43 = vmul.f32 %v1412_v29, %v827_v19  ;;  %v1803_v46 = vmul.f32 %v1413_v32, %v828_v21  ;;  %v484_v11 = vld [vmem:[%s3677_s4 + $0x508] sm:$0xff] }
 0x194   : > { %v2305_v47 = vadd.f32 %v1800_v35, %v1799_v34  ;;  %v830_v48 = vunpack.c.l.bf16 %v479_v30  ;;  %v831_v49 = vunpack.c.h.bf16 %v479_v30  ;;  %v832_v53 = vunpack.c.l.bf16 %v480_v36  ;;  %v485_v34 = vld [vmem:[%s3677_s4 + $0x510] sm:$0xff] }
 0x195   : > { %v2301_v52 = vadd.f32 %v2300_v41, %v1797_v12  ;;  %v833_v54 = vunpack.c.h.bf16 %v480_v36  ;;  %v834_v55 = vunpack.c.l.bf16 %v4029_v37  ;;  %v1804_v56 = vmul.f32 %v1414_v33, %v829_v22  ;;  %v1068_v22 = vld [vmem:[%s3684_s15 + $0x500] sm:$0xff]  ;;  %v486_v41 = vld [vmem:[%s3677_s4 + $0x518] sm:$0xff] }
 0x196   : > { %v2306_v57 = vadd.f32 %v2305_v47, %v1801_v42  ;;  %v1415_v59 = vunpack.c.l.bf16 %v1064_v44  ;;  %v1416_v60 = vunpack.c.h.bf16 %v1064_v44  ;;  %v1417_v63 = vunpack.c.l.bf16 %v1065_v50  ;;  %v4050_v42 = vpop.xlane.xlu1 %2030 }
 0x197   : > { %v2302_v62 = vadd.f32 %v2301_v52, %v1798_v39  ;;  %v1418_v0 = vunpack.c.h.bf16 %v1065_v50  ;;  %v1419_v1 = vunpack.c.l.bf16 %v1066_v51  ;;  %v835_v5 = vunpack.c.h.bf16 %v4029_v37 }
 0x198   : > { %v2307_v4 = vadd.f32 %v2306_v57, %v1802_v43  ;;  %v1805_v7 = vmul.f32 %v1415_v59, %v830_v48  ;;  %v1806_v8 = vmul.f32 %v1416_v60, %v831_v49  ;;  %v1420_v12 = vunpack.c.h.bf16 %v1066_v51  ;;  %v4053_v48 = vld [vmem:[%s3677_s4 + $0x520] sm:$0xff] }
 0x199   : > { %2303 = vadd.xlane.f32.xlu0 %v2302_v62  ;;  %v1807_v13 = vmul.f32 %v1417_v63, %v832_v53  ;;  %v1808_v14 = vmul.f32 %v1418_v0, %v833_v54  ;;  %v1809_v15 = vmul.f32 %v1419_v1, %v834_v55  ;;  %v836_v20 = vunpack.c.l.bf16 %v482_v2  ;;  %v1070_v49 = vld [vmem:[%s3684_s15 + $0x510] sm:$0xff]  ;;  %v1071_v54 = vld [vmem:[%s3684_s15 + $0x518] sm:$0xff]  ;;  %v4057_v55 = vpop.xlane.xlu0 %2037  ;;  %v1072_v62 = vld [vmem:[%s3684_s15 + $0x520] sm:$0xff] }
 0x19a   : > { %v2308_v18 = vadd.f32 %v2307_v4, %v1803_v46  ;;  %v2312_v19 = vadd.f32 %v1806_v8, %v1805_v7  ;;  %v837_v21 = vunpack.c.h.bf16 %v482_v2  ;;  %v838_v24 = vunpack.c.l.bf16 %v483_v9 }
 0x19b   : > { %v839_v25 = vunpack.c.h.bf16 %v483_v9  ;;  %v840_v26 = vunpack.c.l.bf16 %v484_v11  ;;  %v841_v28 = vunpack.c.h.bf16 %v484_v11  ;;  %v1421_v32 = vunpack.c.l.bf16 %v1067_v16  ;;  %v488_v9 = vld [vmem:[%s3677_s4 + $0x528] sm:$0xff] }
 0x19c   : > { %v2309_v29 = vadd.f32 %v2308_v18, %v1804_v56  ;;  %v2313_v30 = vadd.f32 %v2312_v19, %v1807_v13  ;;  %v1422_v33 = vunpack.c.h.bf16 %v1067_v16  ;;  %v1423_v35 = vunpack.c.l.bf16 %v1068_v22  ;;  %v4064_v16 = vpop.xlane.xlu1 %2044 }
 0x19d   : > { %v1424_v36 = vunpack.c.h.bf16 %v1068_v22  ;;  %v1425_v37 = vunpack.c.l.bf16 %v1069_v23  ;;  %v1426_v39 = vunpack.c.h.bf16 %v1069_v23  ;;  %v1810_v43 = vmul.f32 %v1420_v12, %v835_v5  ;;  %v490_v22 = vld [vmem:[%s3677_s4 + $0x538] sm:$0xff] }
 0x19e   : > { %2310 = vadd.xlane.f32.xlu1 %v2309_v29  ;;  %v2314_v44 = vadd.f32 %v2313_v30, %v1808_v14  ;;  %v1811_v46 = vmul.f32 %v1421_v32, %v836_v20  ;;  %v1812_v47 = vmul.f32 %v1422_v33, %v837_v21  ;;  %v1813_v50 = vmul.f32 %v1423_v35, %v838_v24  ;;  %v1073_v23 = vld [vmem:[%s3684_s15 + $0x528] sm:$0xff]  ;;  %v1074_v29 = vld [vmem:[%s3684_s15 + $0x530] sm:$0xff]  ;;  %v4069_v30 = vpop.xlane.xlu0 %2051 }
 0x19f   : > { %v1814_v51 = vmul.f32 %v1424_v36, %v839_v25  ;;  %v1815_v52 = vmul.f32 %v1425_v37, %v840_v26  ;;  %v842_v53 = vunpack.c.l.bf16 %v485_v34  ;;  %v843_v59 = vunpack.c.h.bf16 %v485_v34  ;;  %v1075_v36 = vld [vmem:[%s3684_s15 + $0x538] sm:$0xff] }
 0x1a0   : > { %v2315_v56 = vadd.f32 %v2314_v44, %v1809_v15  ;;  %v2319_v57 = vadd.f32 %v1812_v47, %v1811_v46  ;;  %v844_v60 = vunpack.c.l.bf16 %v486_v41  ;;  %v1816_v63 = vmul.f32 %v1426_v39, %v841_v28  ;;  %v489_v15 = vld [vmem:[%s3677_s4 + $0x530] sm:$0xff] }
 0x1a1   : > { %v845_v0 = vunpack.c.h.bf16 %v486_v41  ;;  %v846_v1 = vunpack.c.l.bf16 %v4053_v48  ;;  %v1427_v2 = vunpack.c.l.bf16 %v1070_v49  ;;  %v1428_v7 = vunpack.c.h.bf16 %v1070_v49  ;;  %v491_v49 = vld [vmem:[%s3677_s4 + $0x540] sm:$0xff] }
 0x1a2   : > { %v2316_v4 = vadd.f32 %v2315_v56, %v1810_v43  ;;  %v2320_v5 = vadd.f32 %v2319_v57, %v1813_v50  ;;  %v1429_v8 = vunpack.c.l.bf16 %v1071_v54  ;;  %v847_v11 = vunpack.c.h.bf16 %v4053_v48  ;;  %v4075_v56 = vld [vmem:[%s3677_s4 + $0x550] sm:$0xff]  ;;  %v4077_v57 = vpop.xlane.xlu1 %2058 }
 0x1a3   : > { %v1430_v12 = vunpack.c.h.bf16 %v1071_v54  ;;  %v1431_v13 = vunpack.c.l.bf16 %v1072_v62  ;;  %v1817_v14 = vmul.f32 %v1427_v2, %v842_v53  ;;  %v1432_v19 = vunpack.c.h.bf16 %v1072_v62  ;;  %v492_v54 = vld [vmem:[%s3677_s4 + $0x548] sm:$0xff] }
 0x1a4   : > { %2317 = vadd.xlane.f32.xlu0 %v2316_v4  ;;  %v2321_v18 = vadd.f32 %v2320_v5, %v1814_v51  ;;  %v1818_v20 = vmul.f32 %v1428_v7, %v843_v59  ;;  %v1819_v21 = vmul.f32 %v1429_v8, %v844_v60  ;;  %v848_v26 = vunpack.c.l.bf16 %v488_v9  ;;  %v1077_v7 = vld [vmem:[%s3684_s15 + $0x548] sm:$0xff]  ;;  %v1078_v8 = vld [vmem:[%s3684_s15 + $0x550] sm:$0xff] }
 0x1a5   : > { %v1820_v24 = vmul.f32 %v1430_v12, %v845_v0  ;;  %v1821_v25 = vmul.f32 %v1431_v13, %v846_v1  ;;  %v849_v28 = vunpack.c.h.bf16 %v488_v9  ;;  %v850_v34 = vunpack.c.l.bf16 %v489_v15  ;;  %v1076_v0 = vld [vmem:[%s3684_s15 + $0x540] sm:$0xff]  ;;  %v4082_v9 = vpop.xlane.xlu0 %2065 }
 0x1a6   : > { %v2322_v32 = vadd.f32 %v2321_v18, %v1815_v52  ;;  %v2326_v33 = vadd.f32 %v1818_v20, %v1817_v14  ;;  %v851_v35 = vunpack.c.h.bf16 %v489_v15  ;;  %v852_v37 = vunpack.c.l.bf16 %v490_v22 }
 0x1a7   : > { %v853_v39 = vunpack.c.h.bf16 %v490_v22  ;;  %v1433_v41 = vunpack.c.l.bf16 %v1073_v23  ;;  %v1434_v43 = vunpack.c.h.bf16 %v1073_v23  ;;  %v1435_v47 = vunpack.c.l.bf16 %v1074_v29 }
 0x1a8   : > { %v2323_v44 = vadd.f32 %v2322_v32, %v1816_v63  ;;  %v2327_v46 = vadd.f32 %v2326_v33, %v1819_v21  ;;  %v1436_v48 = vunpack.c.h.bf16 %v1074_v29  ;;  %v1437_v50 = vunpack.c.l.bf16 %v1075_v36  ;;  %v495_v33 = vld [vmem:[%s3677_s4 + $0x560] sm:$0xff] }
 0x1a9   : > { %v1438_v51 = vunpack.c.h.bf16 %v1075_v36  ;;  %v1823_v52 = vmul.f32 %v1433_v41, %v848_v26  ;;  %v1824_v53 = vmul.f32 %v1434_v43, %v849_v28  ;;  %v1822_v59 = vmul.f32 %v1432_v19, %v847_v11  ;;  %v494_v26 = vld [vmem:[%s3677_s4 + $0x558] sm:$0xff]  ;;  %v1079_v43 = vld [vmem:[%s3684_s15 + $0x558] sm:$0xff] }
 0x1aa   : > { %2324 = vadd.xlane.f32.xlu1 %v2323_v44  ;;  %v2328_v60 = vadd.f32 %v2327_v46, %v1820_v24  ;;  %v1825_v62 = vmul.f32 %v1435_v47, %v850_v34  ;;  %v1826_v63 = vmul.f32 %v1436_v48, %v851_v35  ;;  %v1827_v1 = vmul.f32 %v1437_v50, %v852_v37  ;;  %v496_v34 = vld [vmem:[%s3677_s4 + $0x568] sm:$0xff]  ;;  %v4089_v35 = vpop.xlane.xlu1 %2072  ;;  %v1081_v50 = vld [vmem:[%s3684_s15 + $0x568] sm:$0xff] }
 0x1ab   : > { %v2333_v2 = vadd.f32 %v1824_v53, %v1823_v52  ;;  %v854_v4 = vunpack.c.l.bf16 %v491_v49  ;;  %v855_v5 = vunpack.c.h.bf16 %v491_v49  ;;  %v856_v13 = vunpack.c.l.bf16 %v492_v54  ;;  %v1080_v49 = vld [vmem:[%s3684_s15 + $0x560] sm:$0xff] }
 0x1ac   : > { %v2329_v12 = vadd.f32 %v2328_v60, %v1821_v25  ;;  %v857_v14 = vunpack.c.h.bf16 %v492_v54  ;;  %v858_v11 = vunpack.c.l.bf16 %v4075_v56  ;;  %v1828_v15 = vmul.f32 %v1438_v51, %v853_v39  ;;  %v4094_v51 = vpop.xlane.xlu0 %2079 }
 0x1ad   : > { %v2334_v18 = vadd.f32 %v2333_v2, %v1825_v62  ;;  %v1439_v19 = vunpack.c.l.bf16 %v1076_v0  ;;  %v1440_v20 = vunpack.c.h.bf16 %v1076_v0  ;;  %v1441_v22 = vunpack.c.l.bf16 %v1077_v7  ;;  %v497_v0 = vld [vmem:[%s3677_s4 + $0x570] sm:$0xff] }
 0x1ae   : > { %v2330_v21 = vadd.f32 %v2329_v12, %v1822_v59  ;;  %v1442_v23 = vunpack.c.h.bf16 %v1077_v7  ;;  %v1443_v24 = vunpack.c.l.bf16 %v1078_v8  ;;  %v859_v29 = vunpack.c.h.bf16 %v4075_v56  ;;  %v498_v7 = vld [vmem:[%s3677_s4 + $0x578] sm:$0xff] }
 0x1af   : > { %v2335_v28 = vadd.f32 %v2334_v18, %v1826_v63  ;;  %v1829_v25 = vmul.f32 %v1439_v19, %v854_v4  ;;  %v1830_v32 = vmul.f32 %v1440_v20, %v855_v5  ;;  %v1444_v36 = vunpack.c.h.bf16 %v1078_v8  ;;  %v4102_v18 = vpop.xlane.xlu1 %2086 }
 0x1b0   : > { %2331 = vadd.xlane.f32.xlu0 %v2330_v21  ;;  %v1831_v37 = vmul.f32 %v1441_v22, %v856_v13  ;;  %v1832_v39 = vmul.f32 %v1442_v23, %v857_v14  ;;  %v1833_v41 = vmul.f32 %v1443_v24, %v858_v11  ;;  %v860_v47 = vunpack.c.l.bf16 %v494_v26  ;;  %v4099_v11 = vld [vmem:[%s3677_s4 + $0x580] sm:$0xff]  ;;  %v1083_v23 = vld [vmem:[%s3684_s15 + $0x578] sm:$0xff] }
 0x1b1   : > { %v2336_v44 = vadd.f32 %v2335_v28, %v1827_v1  ;;  %v2340_v46 = vadd.f32 %v1830_v32, %v1829_v25  ;;  %v861_v48 = vunpack.c.h.bf16 %v494_v26  ;;  %v862_v52 = vunpack.c.l.bf16 %v495_v33  ;;  %v4106_v32 = vpop.xlane.xlu0 %2093 }
 0x1b2   : > { %v863_v53 = vunpack.c.h.bf16 %v495_v33  ;;  %v864_v54 = vunpack.c.l.bf16 %v496_v34  ;;  %v865_v56 = vunpack.c.h.bf16 %v496_v34  ;;  %v1445_v62 = vunpack.c.l.bf16 %v1079_v43 }
 0x1b3   : > { %v2337_v59 = vadd.f32 %v2336_v44, %v1828_v15  ;;  %v2341_v60 = vadd.f32 %v2340_v46, %v1831_v37  ;;  %v1446_v63 = vunpack.c.h.bf16 %v1079_v43  ;;  %v1447_v1 = vunpack.c.l.bf16 %v1080_v49  ;;  %v1082_v15 = vld [vmem:[%s3684_s15 + $0x570] sm:$0xff] }
 0x1b4   : > { %v1448_v2 = vunpack.c.h.bf16 %v1080_v49  ;;  %v1449_v4 = vunpack.c.l.bf16 %v1081_v50  ;;  %v1450_v5 = vunpack.c.h.bf16 %v1081_v50  ;;  %v1834_v8 = vmul.f32 %v1444_v36, %v859_v29  ;;  %v1084_v29 = vld [vmem:[%s3684_s15 + $0x580] sm:$0xff] }
 0x1b5   : > { %2338 = vadd.xlane.f32.xlu1 %v2337_v59  ;;  %v2342_v12 = vadd.f32 %v2341_v60, %v1832_v39  ;;  %v1835_v13 = vmul.f32 %v1445_v62, %v860_v47  ;;  %v1836_v14 = vmul.f32 %v1446_v63, %v861_v48  ;;  %v1837_v19 = vmul.f32 %v1447_v1, %v862_v52  ;;  %v500_v47 = vld [vmem:[%s3677_s4 + $0x588] sm:$0xff]  ;;  %v501_v52 = vld [vmem:[%s3677_s4 + $0x590] sm:$0xff]  ;;  %v502_v60 = vld [vmem:[%s3677_s4 + $0x598] sm:$0xff]  ;;  %v4114_v63 = vpop.xlane.xlu1 %2100 }
 0x1b6   : > { %v1838_v20 = vmul.f32 %v1448_v2, %v863_v53  ;;  %v1839_v21 = vmul.f32 %v1449_v4, %v864_v54  ;;  %v866_v22 = vunpack.c.l.bf16 %v497_v0  ;;  %v867_v28 = vunpack.c.h.bf16 %v497_v0  ;;  %v1085_v62 = vld [vmem:[%s3684_s15 + $0x588] sm:$0xff] }
 0x1b7   : > { %v2343_v24 = vadd.f32 %v2342_v12, %v1833_v41  ;;  %v2347_v26 = vadd.f32 %v1836_v14, %v1835_v13  ;;  %v868_v25 = vunpack.c.l.bf16 %v498_v7  ;;  %v1840_v33 = vmul.f32 %v1450_v5, %v865_v56  ;;  %v1086_v5 = vld [vmem:[%s3684_s15 + $0x590] sm:$0xff]  ;;  %v1087_v14 = vld [vmem:[%s3684_s15 + $0x598] sm:$0xff] }
 0x1b8   : > { %v869_v34 = vunpack.c.h.bf16 %v498_v7  ;;  %v870_v36 = vunpack.c.l.bf16 %v4099_v11  ;;  %v1451_v37 = vunpack.c.l.bf16 %v1082_v15  ;;  %v1452_v44 = vunpack.c.h.bf16 %v1082_v15 }
 0x1b9   : > { %v2344_v39 = vadd.f32 %v2343_v24, %v1834_v8  ;;  %v2348_v43 = vadd.f32 %v2347_v26, %v1837_v19  ;;  %v1453_v46 = vunpack.c.l.bf16 %v1083_v23  ;;  %v871_v41 = vunpack.c.h.bf16 %v4099_v11  ;;  %v4118_v11 = vpop.xlane.xlu0 %2107 }
 0x1ba   : > { %v1454_v48 = vunpack.c.h.bf16 %v1083_v23  ;;  %v1455_v49 = vunpack.c.l.bf16 %v1084_v29  ;;  %v1841_v50 = vmul.f32 %v1451_v37, %v866_v22  ;;  %v1456_v54 = vunpack.c.h.bf16 %v1084_v29  ;;  %v504_v37 = vld [vmem:[%s3677_s4 + $0x5a8] sm:$0xff] }
 0x1bb   : > { %2345 = vadd.xlane.f32.xlu0 %v2344_v39  ;;  %v2349_v53 = vadd.f32 %v2348_v43, %v1838_v20  ;;  %v1842_v56 = vmul.f32 %v1452_v44, %v867_v28  ;;  %v1843_v59 = vmul.f32 %v1453_v46, %v868_v25  ;;  %v872_v2 = vunpack.c.l.bf16 %v500_v47  ;;  %v503_v25 = vld [vmem:[%s3677_s4 + $0x5a0] sm:$0xff]  ;;  %v4123_v39 = vld [vmem:[%s3677_s4 + $0x5b0] sm:$0xff] }
 0x1bc   : > { %v1844_v0 = vmul.f32 %v1454_v48, %v869_v34  ;;  %v1845_v1 = vmul.f32 %v1455_v49, %v870_v36  ;;  %v873_v4 = vunpack.c.h.bf16 %v500_v47  ;;  %v874_v12 = vunpack.c.l.bf16 %v501_v52  ;;  %v4126_v48 = vpop.xlane.xlu1 %2114 }
 0x1bd   : > { %v2350_v7 = vadd.f32 %v2349_v53, %v1839_v21  ;;  %v2354_v8 = vadd.f32 %v1842_v56, %v1841_v50  ;;  %v875_v13 = vunpack.c.h.bf16 %v501_v52  ;;  %v876_v15 = vunpack.c.l.bf16 %v502_v60  ;;  %v1089_v56 = vld [vmem:[%s3684_s15 + $0x5a8] sm:$0xff] }
 0x1be   : > { %v877_v19 = vunpack.c.h.bf16 %v502_v60  ;;  %v1457_v20 = vunpack.c.l.bf16 %v1085_v62  ;;  %v1458_v22 = vunpack.c.h.bf16 %v1085_v62  ;;  %v1459_v26 = vunpack.c.l.bf16 %v1086_v5 }
 0x1bf   : > { %v2351_v23 = vadd.f32 %v2350_v7, %v1840_v33  ;;  %v2355_v24 = vadd.f32 %v2354_v8, %v1843_v59  ;;  %v1460_v28 = vunpack.c.h.bf16 %v1086_v5  ;;  %v1461_v29 = vunpack.c.l.bf16 %v1087_v14  ;;  %v1088_v33 = vld [vmem:[%s3684_s15 + $0x5a0] sm:$0xff]  ;;  %v1090_v59 = vld [vmem:[%s3684_s15 + $0x5b0] sm:$0xff] }
 0x1c0   : > { %v1462_v21 = vunpack.c.h.bf16 %v1087_v14  ;;  %v1847_v34 = vmul.f32 %v1457_v20, %v872_v2  ;;  %v1848_v36 = vmul.f32 %v1458_v22, %v873_v4  ;;  %v1846_v43 = vmul.f32 %v1456_v54, %v871_v41  ;;  %v4131_v41 = vpop.xlane.xlu0 %2121 }
 0x1c1   : > { %2352 = vadd.xlane.f32.xlu1 %v2351_v23  ;;  %v2356_v44 = vadd.f32 %v2355_v24, %v1844_v0  ;;  %v1849_v46 = vmul.f32 %v1459_v26, %v874_v12  ;;  %v1850_v47 = vmul.f32 %v1460_v28, %v875_v13  ;;  %v1851_v49 = vmul.f32 %v1461_v29, %v876_v15  ;;  %v506_v15 = vld [vmem:[%s3677_s4 + $0x5b8] sm:$0xff]  ;;  %v507_v24 = vld [vmem:[%s3677_s4 + $0x5c0] sm:$0xff]  ;;  %v508_v26 = vld [vmem:[%s3677_s4 + $0x5c8] sm:$0xff] }
 0x1c2   : > { %v2361_v50 = vadd.f32 %v1848_v36, %v1847_v34  ;;  %v878_v52 = vunpack.c.l.bf16 %v503_v25  ;;  %v879_v53 = vunpack.c.h.bf16 %v503_v25  ;;  %v880_v62 = vunpack.c.l.bf16 %v504_v37  ;;  %v4138_v34 = vpop.xlane.xlu1 %2128 }
 0x1c3   : > { %v2357_v60 = vadd.f32 %v2356_v44, %v1845_v1  ;;  %v881_v2 = vunpack.c.h.bf16 %v504_v37  ;;  %v882_v4 = vunpack.c.l.bf16 %v4123_v39  ;;  %v1852_v54 = vmul.f32 %v1462_v21, %v877_v19  ;;  %v1091_v21 = vld [vmem:[%s3684_s15 + $0x5b8] sm:$0xff] }
 0x1c4   : > { %v2362_v0 = vadd.f32 %v2361_v50, %v1849_v46  ;;  %v1463_v5 = vunpack.c.l.bf16 %v1088_v33  ;;  %v1464_v7 = vunpack.c.h.bf16 %v1088_v33  ;;  %v1465_v12 = vunpack.c.l.bf16 %v1089_v56  ;;  %v1093_v46 = vld [vmem:[%s3684_s15 + $0x5c8] sm:$0xff] }
 0x1c5   : > { %v2358_v8 = vadd.f32 %v2357_v60, %v1846_v43  ;;  %v1466_v13 = vunpack.c.h.bf16 %v1089_v56  ;;  %v1467_v14 = vunpack.c.l.bf16 %v1090_v59  ;;  %v883_v1 = vunpack.c.h.bf16 %v4123_v39  ;;  %v1092_v39 = vld [vmem:[%s3684_s15 + $0x5c0] sm:$0xff] }
 0x1c6   : > { %v2363_v20 = vadd.f32 %v2362_v0, %v1850_v47  ;;  %v1853_v22 = vmul.f32 %v1463_v5, %v878_v52  ;;  %v1854_v23 = vmul.f32 %v1464_v7, %v879_v53  ;;  %v1468_v19 = vunpack.c.h.bf16 %v1090_v59  ;;  %v4142_v53 = vpop.xlane.xlu0 %2135  ;;  %v510_v7 = vld [vmem:[%s3677_s4 + $0x5d8] sm:$0xff] }
 0x1c7   : > { %2359 = vadd.xlane.f32.xlu0 %v2358_v8  ;;  %v1855_v28 = vmul.f32 %v1465_v12, %v880_v62  ;;  %v1856_v25 = vmul.f32 %v1466_v13, %v881_v2  ;;  %v1857_v29 = vmul.f32 %v1467_v14, %v882_v4  ;;  %v884_v43 = vunpack.c.l.bf16 %v506_v15  ;;  %v509_v2 = vld [vmem:[%s3677_s4 + $0x5d0] sm:$0xff] }
 0x1c8   : > { %v2364_v36 = vadd.f32 %v2363_v20, %v1851_v49  ;;  %v2368_v37 = vadd.f32 %v1854_v23, %v1853_v22  ;;  %v885_v44 = vunpack.c.h.bf16 %v506_v15  ;;  %v886_v47 = vunpack.c.l.bf16 %v507_v24  ;;  %v4147_v15 = vld [vmem:[%s3677_s4 + $0x5e0] sm:$0xff] }
 0x1c9   : > { %v887_v33 = vunpack.c.h.bf16 %v507_v24  ;;  %v888_v50 = vunpack.c.l.bf16 %v508_v26  ;;  %v889_v52 = vunpack.c.h.bf16 %v508_v26  ;;  %v1469_v60 = vunpack.c.l.bf16 %v1091_v21  ;;  %v1095_v26 = vld [vmem:[%s3684_s15 + $0x5d8] sm:$0xff] }
 0x1ca   : > { %v2365_v56 = vadd.f32 %v2364_v36, %v1852_v54  ;;  %v2369_v59 = vadd.f32 %v2368_v37, %v1855_v28  ;;  %v1470_v62 = vunpack.c.h.bf16 %v1091_v21  ;;  %v1471_v49 = vunpack.c.l.bf16 %v1092_v39  ;;  %v1094_v54 = vld [vmem:[%s3684_s15 + $0x5d0] sm:$0xff]  ;;  %v4151_v28 = vpop.xlane.xlu1 %2142 }
 0x1cb   : > { %v1472_v4 = vunpack.c.h.bf16 %v1092_v39  ;;  %v1473_v0 = vunpack.c.l.bf16 %v1093_v46  ;;  %v1474_v5 = vunpack.c.h.bf16 %v1093_v46  ;;  %v1858_v8 = vmul.f32 %v1468_v19, %v883_v1  ;;  %v1096_v1 = vld [vmem:[%s3684_s15 + $0x5e0] sm:$0xff]  ;;  %v4155_v46 = vpop.xlane.xlu0 %2149 }
 0x1cc   : > { %2366 = vadd.xlane.f32.xlu1 %v2365_v56  ;;  %v2370_v12 = vadd.f32 %v2369_v59, %v1856_v25  ;;  %v1859_v13 = vmul.f32 %v1469_v60, %v884_v43  ;;  %v1860_v14 = vmul.f32 %v1470_v62, %v885_v44  ;;  %v1861_v20 = vmul.f32 %v1471_v49, %v886_v47  ;;  %v512_v59 = vld [vmem:[%s3677_s4 + $0x5e8] sm:$0xff] }
 0x1cd   : > { %v1862_v22 = vmul.f32 %v1472_v4, %v887_v33  ;;  %v1863_v23 = vmul.f32 %v1473_v0, %v888_v50  ;;  %v890_v24 = vunpack.c.l.bf16 %v509_v2  ;;  %v891_v37 = vunpack.c.h.bf16 %v509_v2 }
 0x1ce   : > { %v2371_v21 = vadd.f32 %v2370_v12, %v1857_v29  ;;  %v2375_v36 = vadd.f32 %v1860_v14, %v1859_v13  ;;  %v892_v39 = vunpack.c.l.bf16 %v510_v7  ;;  %v1864_v19 = vmul.f32 %v1474_v5, %v889_v52  ;;  %v513_v52 = vld [vmem:[%s3677_s4 + $0x5f0] sm:$0xff] }
 0x1cf   : > { %v893_v25 = vunpack.c.h.bf16 %v510_v7  ;;  %v894_v43 = vunpack.c.l.bf16 %v4147_v15  ;;  %v1475_v44 = vunpack.c.l.bf16 %v1094_v54  ;;  %v1476_v50 = vunpack.c.h.bf16 %v1094_v54  ;;  %v514_v7 = vld [vmem:[%s3677_s4 + $0x5f8] sm:$0xff] }
 0x1d0   : > { %v2372_v47 = vadd.f32 %v2371_v21, %v1858_v8  ;;  %v2376_v33 = vadd.f32 %v2375_v36, %v1861_v20  ;;  %v1477_v56 = vunpack.c.l.bf16 %v1095_v26  ;;  %v895_v29 = vunpack.c.h.bf16 %v4147_v15  ;;  %v1097_v8 = vld [vmem:[%s3684_s15 + $0x5e8] sm:$0xff]  ;;  %v1098_v20 = vld [vmem:[%s3684_s15 + $0x5f0] sm:$0xff]  ;;  %v4163_v15 = vpop.xlane.xlu1 %2156 }
 0x1d1   : > { %v1478_v60 = vunpack.c.h.bf16 %v1095_v26  ;;  %v1479_v62 = vunpack.c.l.bf16 %v1096_v1  ;;  %v1865_v2 = vmul.f32 %v1475_v44, %v890_v24  ;;  %v1480_v4 = vunpack.c.h.bf16 %v1096_v1  ;;  %4816 = vst [vmem:[#allocation10_spill] sm:$0xff] %v4163_v15 }
 0x1d2   : > { %2373 = vadd.xlane.f32.xlu0 %v2372_v47  ;;  %v2377_v49 = vadd.f32 %v2376_v33, %v1862_v22  ;;  %v1866_v0 = vmul.f32 %v1476_v50, %v891_v37  ;;  %v1867_v5 = vmul.f32 %v1477_v56, %v892_v39  ;;  %v896_v14 = vunpack.c.l.bf16 %v512_v59  ;;  %v1099_v22 = vld [vmem:[%s3684_s15 + $0x5f8] sm:$0xff]  ;;  %v4166_v47 = vpop.xlane.xlu0 %2163  ;;  %v515_v56 = vld [vmem:[%s3677_s4 + $0x600] sm:$0xff] }
 0x1d3   : > { %v1868_v12 = vmul.f32 %v1478_v60, %v893_v25  ;;  %v1869_v13 = vmul.f32 %v1479_v62, %v894_v43  ;;  %v897_v54 = vunpack.c.h.bf16 %v512_v59  ;;  %v898_v24 = vunpack.c.l.bf16 %v513_v52  ;;  %4817 = vst [vmem:[#allocation11_spill] sm:$0xff] %v4166_v47 }
 0x1d4   : > { %v2378_v26 = vadd.f32 %v2377_v49, %v1863_v23  ;;  %v2382_v21 = vadd.f32 %v1866_v0, %v1865_v2  ;;  %v899_v36 = vunpack.c.h.bf16 %v513_v52  ;;  %v900_v44 = vunpack.c.l.bf16 %v514_v7  ;;  %v516_v2 = vld [vmem:[%s3677_s4 + $0x608] sm:$0xff] }
 0x1d5   : > { %v901_v1 = vunpack.c.h.bf16 %v514_v7  ;;  %v1481_v37 = vunpack.c.l.bf16 %v1097_v8  ;;  %v1482_v39 = vunpack.c.h.bf16 %v1097_v8  ;;  %v1483_v33 = vunpack.c.l.bf16 %v1098_v20  ;;  %v1100_v7 = vld [vmem:[%s3684_s15 + $0x600] sm:$0xff] }
 0x1d6   : > { %v2379_v25 = vadd.f32 %v2378_v26, %v1864_v19  ;;  %v2383_v43 = vadd.f32 %v2382_v21, %v1867_v5  ;;  %v1484_v50 = vunpack.c.h.bf16 %v1098_v20  ;;  %v1485_v23 = vunpack.c.l.bf16 %v1099_v22  ;;  %v4172_v19 = vld [vmem:[%s3677_s4 + $0x610] sm:$0xff]  ;;  %v1101_v20 = vld [vmem:[%s3684_s15 + $0x608] sm:$0xff]  ;;  %v4175_v21 = vpop.xlane.xlu1 %2170 }
 0x1d7   : > { %v1486_v59 = vunpack.c.h.bf16 %v1099_v22  ;;  %v1871_v60 = vmul.f32 %v1481_v37, %v896_v14  ;;  %v1872_v62 = vmul.f32 %v1482_v39, %v897_v54  ;;  %v1870_v52 = vmul.f32 %v1480_v4, %v895_v29  ;;  %v4180_v37 = vld [vmem:[%s3684_s15 + $0x610] sm:$0xff] }
 0x1d8   : > { %2380 = vadd.xlane.f32.xlu1 %v2379_v25  ;;  %v2384_v49 = vadd.f32 %v2383_v43, %v1868_v12  ;;  %v1873_v0 = vmul.f32 %v1483_v33, %v898_v24  ;;  %v1874_v8 = vmul.f32 %v1484_v50, %v899_v36  ;;  %v902_v5 = vunpack.c.l.bf16 %v515_v56  ;;  %v4182_v36 = vpop.xlane.xlu0 %2177 }
 0x1d9   : > { %v2389_v47 = vadd.f32 %v1872_v62, %v1871_v60  ;;  %v903_v26 = vunpack.c.h.bf16 %v515_v56  ;;  %v1875_v22 = vmul.f32 %v1485_v23, %v900_v44  ;;  %v4177_v14 = vmul.f32 %v1486_v59, %v901_v1 }
 0x1da   : > { %v2385_v15 = vadd.f32 %v2384_v49, %v1869_v13  ;;  %v904_v54 = vunpack.c.l.bf16 %v516_v2  ;;  %v905_v4 = vunpack.c.h.bf16 %v516_v2  ;;  %v1487_v12 = vunpack.c.l.bf16 %v1100_v7  ;;  %v4196_v62 = vpop.xlane.xlu1 %2184 }
 0x1db   : > { %v2390_v29 = vadd.f32 %v2389_v47, %v1873_v0  ;;  %v1488_v24 = vunpack.c.h.bf16 %v1100_v7  ;;  %v906_v25 = vunpack.c.l.bf16 %v4172_v19  ;;  %v1489_v43 = vunpack.c.l.bf16 %v1101_v20 }
 0x1dc   : > { %v2386_v39 = vadd.f32 %v2385_v15, %v1870_v52  ;;  %v1490_v33 = vunpack.c.h.bf16 %v1101_v20  ;;  %v1491_v13 = vunpack.c.l.bf16 %v4180_v37  ;;  %v1877_v44 = vmul.f32 %v1487_v12, %v902_v5  ;;  %v4336_v7 = vpop.xlane.xlu0 %2191 }
 0x1dd   : > { %v2391_v50 = vadd.f32 %v2390_v29, %v1874_v8  ;;  %v1878_v1 = vmul.f32 %v1488_v24, %v903_v26  ;;  %v907_v56 = vunpack.c.h.bf16 %v4172_v19  ;;  %v1492_v47 = vunpack.c.h.bf16 %v4180_v37 }
 0x1de   : > { %2387 = vadd.xlane.f32.xlu0 %v2386_v39  ;;  %v4188_v23 = vmul.f32 %v1489_v43, %v904_v54  ;;  %v4192_v15 = vmul.f32 %v1490_v33, %v905_v4  ;;  %v3521_v2 = vmov 0.0   ;;  %v1881_v49 = vmul.f32 %v1491_v13, %v906_v25  ;;  %v4343_v20 = vpop.xlane.xlu1 %2198 }
 0x1df   : > { %v4190_v59 = vadd.f32 %v2391_v50, %v1875_v22  ;;  %v4194_v60 = vadd.f32 %v1878_v1, %v1877_v44  ;;  %258 = vst.msk [vmem:[#allocation2] sm:$0xff] %vm257_vm0, %v3521_v2  ;;  %259 = vst.msk [vmem:[#allocation2 + $0x8] sm:$0xff] %vm257_vm0, %v3521_v2  ;;  %v1882_v8 = vmul.f32 %v1492_v47, %v907_v56 }
 0x1e0   : > { %260 = vst.msk [vmem:[#allocation2 + $0x10] sm:$0xff] %vm257_vm0, %v3521_v2  ;;  %261 = vst.msk [vmem:[#allocation2 + $0x18] sm:$0xff] %vm257_vm0, %v3521_v2  ;;  %v4345_v4 = vpop.xlane.xlu0 %2205 }
 0x1e1   : > { %262 = vst.msk [vmem:[#allocation2 + $0x20] sm:$0xff] %vm257_vm0, %v3521_v2  ;;  %263 = vst.msk [vmem:[#allocation2 + $0x28] sm:$0xff] %vm257_vm0, %v3521_v2  ;;  %v2393_v52 = vadd.f32 %v4190_v59, %v4177_v14  ;;  %v2397_v0 = vadd.f32 %v4194_v60, %v4188_v23 }
 0x1e2   : > { %264 = vst.msk [vmem:[#allocation2 + $0x30] sm:$0xff] %vm257_vm0, %v3521_v2  ;;  %265 = vst.msk [vmem:[#allocation2 + $0x38] sm:$0xff] %vm257_vm0, %v3521_v2 }
 0x1e3   : > { %266 = vst.msk [vmem:[#allocation2 + $0x40] sm:$0xff] %vm257_vm0, %v3521_v2  ;;  %267 = vst.msk [vmem:[#allocation2 + $0x48] sm:$0xff] %vm257_vm0, %v3521_v2  ;;  %2394 = vadd.xlane.f32.xlu1 %v2393_v52  ;;  %v2398_v5 = vadd.f32 %v2397_v0, %v4192_v15 }
 0x1e4   : > { %268 = vst.msk [vmem:[#allocation2 + $0x50] sm:$0xff] %vm257_vm0, %v3521_v2  ;;  %269 = vst.msk [vmem:[#allocation2 + $0x58] sm:$0xff] %vm257_vm0, %v3521_v2 }
 0x1e5   : > { %270 = vst.msk [vmem:[#allocation2 + $0x60] sm:$0xff] %vm257_vm0, %v3521_v2  ;;  %271 = vst.msk [vmem:[#allocation2 + $0x68] sm:$0xff] %vm257_vm0, %v3521_v2  ;;  %v2399_v26 = vadd.f32 %v2398_v5, %v1881_v49  ;;  %v4380_v5 = vpop.xlane.xlu0 %2219 }
 0x1e6   : > { %272 = vst.msk [vmem:[#allocation2 + $0x70] sm:$0xff] %vm257_vm0, %v3521_v2  ;;  %273 = vst.msk [vmem:[#allocation2 + $0x78] sm:$0xff] %vm257_vm0, %v3521_v2  ;;  %v1883_v14 = vld [vmem:[#allocation2] sm:$0xff]  ;;  %v1884_v29 = vld [vmem:[#allocation2 + $0x8] sm:$0xff] }
 0x1e7   : > { %274 = vst.msk [vmem:[#allocation2 + $0x80] sm:$0xff] %vm257_vm0, %v3521_v2  ;;  %275 = vst.msk [vmem:[#allocation2 + $0x88] sm:$0xff] %vm257_vm0, %v3521_v2  ;;  %v2400_v22 = vadd.f32 %v2399_v26, %v1882_v8  ;;  %v1885_v54 = vld [vmem:[#allocation2 + $0x10] sm:$0xff]  ;;  %v2403_v12 = vadd.f32 %v3983_v38, %v1883_v14  ;;  %v2404_v19 = vadd.f32 %v3995_v6, %v1884_v29  ;;  %v1886_v39 = vld [vmem:[#allocation2 + $0x18] sm:$0xff] }
 0x1e8   : > { %276 = vst.msk [vmem:[#allocation2 + $0x90] sm:$0xff] %vm257_vm0, %v3521_v2  ;;  %277 = vst.msk [vmem:[#allocation2 + $0x98] sm:$0xff] %vm257_vm0, %v3521_v2  ;;  %v2405_v24 = vadd.f32 %v3989_v58, %v1885_v54  ;;  %v1887_v37 = vld [vmem:[#allocation2 + $0x20] sm:$0xff]  ;;  %v1888_v25 = vld [vmem:[#allocation2 + $0x28] sm:$0xff]  ;;  %v2406_v43 = vadd.f32 %v4001_v27, %v1886_v39 }
 0x1e9   : > { %278 = vst.msk [vmem:[#allocation2 + $0xa0] sm:$0xff] %vm257_vm0, %v3521_v2  ;;  %279 = vst.msk [vmem:[#allocation2 + $0xa8] sm:$0xff] %vm257_vm0, %v3521_v2  ;;  %2401 = vadd.xlane.f32.xlu0 %v2400_v22  ;;  %v2407_v33 = vadd.f32 %v4008_v40, %v1887_v37  ;;  %v2408_v50 = vadd.f32 %v4014_v61, %v1888_v25  ;;  %v1889_v13 = vld [vmem:[#allocation2 + $0x30] sm:$0xff]  ;;  %v1890_v44 = vld [vmem:[#allocation2 + $0x38] sm:$0xff] }
 0x1ea   : > { %280 = vst.msk [vmem:[#allocation2 + $0xb0] sm:$0xff] %vm257_vm0, %v3521_v2  ;;  %281 = vst.msk [vmem:[#allocation2 + $0xb8] sm:$0xff] %vm257_vm0, %v3521_v2  ;;  %v1891_v1 = vld [vmem:[#allocation2 + $0x40] sm:$0xff]  ;;  %v2409_v38 = vadd.f32 %v4020_v10, %v1889_v13  ;;  %v2410_v58 = vadd.f32 %v4025_v31, %v1890_v44  ;;  %v1892_v27 = vld [vmem:[#allocation2 + $0x48] sm:$0xff] }
 0x1eb   : > { %282 = vst.msk [vmem:[#allocation2 + $0xc0] sm:$0xff] %vm257_vm0, %v3521_v2  ;;  %283 = vst.msk [vmem:[#allocation2 + $0xc8] sm:$0xff] %vm257_vm0, %v3521_v2  ;;  %v2411_v6 = vadd.f32 %v4032_v45, %v1891_v1  ;;  %v1893_v56 = vld [vmem:[#allocation2 + $0x50] sm:$0xff]  ;;  %v1894_v40 = vld [vmem:[#allocation2 + $0x58] sm:$0xff]  ;;  %v2412_v61 = vadd.f32 %v4038_v3, %v1892_v27  ;;  %v4366_v45 = vpop.xlane.xlu1 %2212 }
 0x1ec   : > { %284 = vst.msk [vmem:[#allocation2 + $0xd0] sm:$0xff] %vm257_vm0, %v3521_v2  ;;  %285 = vst.msk [vmem:[#allocation2 + $0xd8] sm:$0xff] %vm257_vm0, %v3521_v2  ;;  %v2413_v47 = vadd.f32 %v4044_v17, %v1893_v56  ;;  %v2414_v10 = vadd.f32 %v4050_v42, %v1894_v40  ;;  %v1895_v23 = vld [vmem:[#allocation2 + $0x60] sm:$0xff]  ;;  %v1896_v31 = vld [vmem:[#allocation2 + $0x68] sm:$0xff] }
 0x1ed   : > { %286 = vst.msk [vmem:[#allocation2 + $0xe0] sm:$0xff] %vm257_vm0, %v3521_v2  ;;  %287 = vst.msk [vmem:[#allocation2 + $0xe8] sm:$0xff] %vm257_vm0, %v3521_v2  ;;  %v1897_v59 = vld [vmem:[#allocation2 + $0x70] sm:$0xff]  ;;  %v2415_v15 = vadd.f32 %v4057_v55, %v1895_v23  ;;  %v2416_v60 = vadd.f32 %v4064_v16, %v1896_v31  ;;  %v1898_v17 = vld [vmem:[#allocation2 + $0x78] sm:$0xff] }
 0x1ee   : > { %288 = vst.msk [vmem:[#allocation2 + $0xf0] sm:$0xff] %vm257_vm0, %v3521_v2  ;;  %289 = vst.msk [vmem:[#allocation2 + $0xf8] sm:$0xff] %vm257_vm0, %v3521_v2  ;;  %v2417_v3 = vadd.f32 %v4069_v30, %v1897_v59  ;;  %v1900_v42 = vld [vmem:[#allocation2 + $0x88] sm:$0xff]  ;;  %v2418_v52 = vadd.f32 %v4077_v57, %v1898_v17 }
 0x1ef   : > { %290 = vst.msk [vmem:[#allocation2 + $0x100] sm:$0xff] %vm257_vm0, %v3521_v2  ;;  %291 = vst.msk [vmem:[#allocation2 + $0x108] sm:$0xff] %vm257_vm0, %v3521_v2  ;;  %v2420_v0 = vadd.f32 %v4089_v35, %v1900_v42  ;;  %v1901_v55 = vld [vmem:[#allocation2 + $0x90] sm:$0xff]  ;;  %v1902_v8 = vld [vmem:[#allocation2 + $0x98] sm:$0xff] }
 0x1f0   : > { %292 = vst.msk [vmem:[#allocation2 + $0x110] sm:$0xff] %vm257_vm0, %v3521_v2  ;;  %293 = vst.msk [vmem:[#allocation2 + $0x118] sm:$0xff] %vm257_vm0, %v3521_v2  ;;  %v1903_v16 = vld [vmem:[#allocation2 + $0xa0] sm:$0xff]  ;;  %v2421_v30 = vadd.f32 %v4094_v51, %v1901_v55  ;;  %v2422_v26 = vadd.f32 %v4102_v18, %v1902_v8 }
 0x1f1   : > { %294 = vst.msk [vmem:[#allocation2 + $0x120] sm:$0xff] %vm257_vm0, %v3521_v2  ;;  %295 = vst.msk [vmem:[#allocation2 + $0x128] sm:$0xff] %vm257_vm0, %v3521_v2  ;;  %v2423_v57 = vadd.f32 %v4106_v32, %v1903_v16  ;;  %v1905_v22 = vld [vmem:[#allocation2 + $0xb0] sm:$0xff]  ;;  %v1906_v35 = vld [vmem:[#allocation2 + $0xb8] sm:$0xff] }
 0x1f2   : > { %296 = vst.msk [vmem:[#allocation2 + $0x130] sm:$0xff] %vm257_vm0, %v3521_v2  ;;  %297 = vst.msk [vmem:[#allocation2 + $0x138] sm:$0xff] %vm257_vm0, %v3521_v2  ;;  %v2425_v54 = vadd.f32 %v4118_v11, %v1905_v22  ;;  %v2426_v29 = vadd.f32 %v4126_v48, %v1906_v35  ;;  %v1907_v51 = vld [vmem:[#allocation2 + $0xc0] sm:$0xff] }
 0x1f3   : > { %298 = vst.msk [vmem:[#allocation2 + $0x140] sm:$0xff] %vm257_vm0, %v3521_v2  ;;  %299 = vst.msk [vmem:[#allocation2 + $0x148] sm:$0xff] %vm257_vm0, %v3521_v2  ;;  %v1909_v18 = vld [vmem:[#allocation2 + $0xd0] sm:$0xff]  ;;  %v2427_v32 = vadd.f32 %v4131_v41, %v1907_v51 }
 0x1f4   : > { %300 = vst.msk [vmem:[#allocation2 + $0x150] sm:$0xff] %vm257_vm0, %v3521_v2  ;;  %301 = vst.msk [vmem:[#allocation2 + $0x158] sm:$0xff] %vm257_vm0, %v3521_v2  ;;  %v1911_v11 = vld [vmem:[#allocation2 + $0xe0] sm:$0xff]  ;;  %v1912_v39 = vld [vmem:[#allocation2 + $0xe8] sm:$0xff] }
 0x1f5   : > { %302 = vst.msk [vmem:[#allocation2 + $0x160] sm:$0xff] %vm257_vm0, %v3521_v2  ;;  %303 = vst.msk [vmem:[#allocation2 + $0x168] sm:$0xff] %vm257_vm0, %v3521_v2  ;;  %v2431_v41 = vadd.f32 %v4155_v46, %v1911_v11 }
 0x1f6   : > { %304 = vst.msk [vmem:[#allocation2 + $0x170] sm:$0xff] %vm257_vm0, %v3521_v2  ;;  %305 = vst.msk [vmem:[#allocation2 + $0x178] sm:$0xff] %vm257_vm0, %v3521_v2 }
 0x1f7   : > { %306 = vst.msk [vmem:[#allocation2 + $0x180] sm:$0xff] %vm257_vm0, %v3521_v2  ;;  %307 = vst.msk [vmem:[#allocation2 + $0x188] sm:$0xff] %vm257_vm0, %v3521_v2  ;;  %v1918_v51 = vld [vmem:[#allocation2 + $0x118] sm:$0xff] }
 0x1f8   : > { %308 = vst.msk [vmem:[#allocation2 + $0x190] sm:$0xff] %vm257_vm0, %v3521_v2  ;;  %309 = vst.msk [vmem:[#allocation2 + $0x198] sm:$0xff] %vm257_vm0, %v3521_v2 }
 0x1f9   : > { %310 = vst.msk [vmem:[#allocation2 + $0x1a0] sm:$0xff] %vm257_vm0, %v3521_v2  ;;  %311 = vst.msk [vmem:[#allocation2 + $0x1a8] sm:$0xff] %vm257_vm0, %v3521_v2 }
 0x1fa   : > { %312 = vst.msk [vmem:[#allocation2 + $0x1b0] sm:$0xff] %vm257_vm0, %v3521_v2  ;;  %313 = vst.msk [vmem:[#allocation2 + $0x1b8] sm:$0xff] %vm257_vm0, %v3521_v2 }
 0x1fb   : > { %314 = vst.msk [vmem:[#allocation2 + $0x1c0] sm:$0xff] %vm257_vm0, %v3521_v2  ;;  %315 = vst.msk [vmem:[#allocation2 + $0x1c8] sm:$0xff] %vm257_vm0, %v3521_v2 }
 0x1fc   : > { %316 = vst.msk [vmem:[#allocation2 + $0x1d0] sm:$0xff] %vm257_vm0, %v3521_v2  ;;  %317 = vst.msk [vmem:[#allocation2 + $0x1d8] sm:$0xff] %vm257_vm0, %v3521_v2 }
 0x1fd   : > { %318 = vst.msk [vmem:[#allocation2 + $0x1e0] sm:$0xff] %vm257_vm0, %v3521_v2  ;;  %319 = vst.msk [vmem:[#allocation2 + $0x1e8] sm:$0xff] %vm257_vm0, %v3521_v2 }
 0x1fe   : > { %320 = vst.msk [vmem:[#allocation2 + $0x1f0] sm:$0xff] %vm257_vm0, %v3521_v2  ;;  %321 = vst.msk [vmem:[#allocation2 + $0x1f8] sm:$0xff] %vm257_vm0, %v3521_v2 }
 0x1ff   : > { %322 = vst.msk [vmem:[#allocation2 + $0x200] sm:$0xff] %vm257_vm0, %v3521_v2  ;;  %2469 = vst.msk [vmem:[#allocation2] sm:$0xff] %vm257_vm0, %v2403_v12  ;;  %v1899_v2 = vld [vmem:[#allocation2 + $0x80] sm:$0xff]  ;;  %v1908_v12 = vld [vmem:[#allocation2 + $0xc8] sm:$0xff] }
 0x200   : > { %2471 = vst.msk [vmem:[#allocation2 + $0x10] sm:$0xff] %vm257_vm0, %v2405_v24  ;;  %2470 = vst.msk [vmem:[#allocation2 + $0x8] sm:$0xff] %vm257_vm0, %v2404_v19  ;;  %v2419_v49 = vadd.f32 %v4082_v9, %v1899_v2  ;;  %v1904_v9 = vld [vmem:[#allocation2 + $0xa8] sm:$0xff]  ;;  %v2428_v24 = vadd.f32 %v4138_v34, %v1908_v12  ;;  %v1910_v19 = vld [vmem:[#allocation2 + $0xd8] sm:$0xff] }
 0x201   : > { %2472 = vst.msk [vmem:[#allocation2 + $0x18] sm:$0xff] %vm257_vm0, %v2406_v43  ;;  %2473 = vst.msk [vmem:[#allocation2 + $0x20] sm:$0xff] %vm257_vm0, %v2407_v33  ;;  %v2424_v14 = vadd.f32 %v4114_v63, %v1904_v9  ;;  %v2429_v63 = vadd.f32 %v4142_v53, %v1909_v18  ;;  %v2430_v43 = vadd.f32 %v4151_v28, %v1910_v19  ;;  %v4818_v33 = vld [vmem:[#allocation10_spill] sm:$0xff]  ;;  %v4819_v9 = vld [vmem:[#allocation11_spill] sm:$0xff] }
 0x202   : > { %2474 = vst.msk [vmem:[#allocation2 + $0x28] sm:$0xff] %vm257_vm0, %v2408_v50  ;;  %2475 = vst.msk [vmem:[#allocation2 + $0x30] sm:$0xff] %vm257_vm0, %v2409_v38  ;;  %v2432_v34 = vadd.f32 %v4818_v33, %v1912_v39  ;;  %v4406_v50 = vpop.xlane.xlu1 %2226  ;;  %v4430_v38 = vpop.xlane.xlu0 %2233  ;;  %v1921_v19 = vld [vmem:[#allocation2 + $0x130] sm:$0xff]  ;;  %v1922_v39 = vld [vmem:[#allocation2 + $0x138] sm:$0xff] }
 0x203   : > { %2476 = vst.msk [vmem:[#allocation2 + $0x38] sm:$0xff] %vm257_vm0, %v2410_v58  ;;  %2477 = vst.msk [vmem:[#allocation2 + $0x40] sm:$0xff] %vm257_vm0, %v2411_v6 }
 0x204   : > { %2478 = vst.msk [vmem:[#allocation2 + $0x48] sm:$0xff] %vm257_vm0, %v2412_v61  ;;  %2479 = vst.msk [vmem:[#allocation2 + $0x50] sm:$0xff] %vm257_vm0, %v2413_v47 }
 0x205   : > { %2480 = vst.msk [vmem:[#allocation2 + $0x58] sm:$0xff] %vm257_vm0, %v2414_v10  ;;  %2481 = vst.msk [vmem:[#allocation2 + $0x60] sm:$0xff] %vm257_vm0, %v2415_v15 }
 0x206   : > { %2482 = vst.msk [vmem:[#allocation2 + $0x68] sm:$0xff] %vm257_vm0, %v2416_v60  ;;  %2483 = vst.msk [vmem:[#allocation2 + $0x70] sm:$0xff] %vm257_vm0, %v2417_v3  ;;  %v2537_v48 = vld [vmem:[#allocation2] sm:$0xff]  ;;  %v2241_v60 = vpop.xlane.xlu1 %2240 }
 0x207   : > { %2484 = vst.msk [vmem:[#allocation2 + $0x78] sm:$0xff] %vm257_vm0, %v2418_v52  ;;  %2485 = vst.msk [vmem:[#allocation2 + $0x80] sm:$0xff] %vm257_vm0, %v2419_v49  ;;  %v2539_v37 = vld [vmem:[#allocation2 + $0x10] sm:$0xff]  ;;  %v2538_v25 = vld [vmem:[#allocation2 + $0x8] sm:$0xff] }
 0x208   : > { %2486 = vst.msk [vmem:[#allocation2 + $0x88] sm:$0xff] %vm257_vm0, %v2420_v0  ;;  %2487 = vst.msk [vmem:[#allocation2 + $0x90] sm:$0xff] %vm257_vm0, %v2421_v30  ;;  %v2540_v53 = vld [vmem:[#allocation2 + $0x18] sm:$0xff]  ;;  %v2541_v28 = vld [vmem:[#allocation2 + $0x20] sm:$0xff]  ;;  %v2248_v0 = vpop.xlane.xlu0 %2247 }
 0x209   : > { %2488 = vst.msk [vmem:[#allocation2 + $0x98] sm:$0xff] %vm257_vm0, %v2422_v26  ;;  %2489 = vst.msk [vmem:[#allocation2 + $0xa0] sm:$0xff] %vm257_vm0, %v2423_v57  ;;  %v2542_v46 = vld [vmem:[#allocation2 + $0x28] sm:$0xff]  ;;  %v2543_v13 = vld [vmem:[#allocation2 + $0x30] sm:$0xff] }
 0x20a   : > { %2490 = vst.msk [vmem:[#allocation2 + $0xa8] sm:$0xff] %vm257_vm0, %v2424_v14  ;;  %2491 = vst.msk [vmem:[#allocation2 + $0xb0] sm:$0xff] %vm257_vm0, %v2425_v54  ;;  %v2544_v44 = vld [vmem:[#allocation2 + $0x38] sm:$0xff]  ;;  %v2545_v1 = vld [vmem:[#allocation2 + $0x40] sm:$0xff]  ;;  %v2255_v11 = vpop.xlane.xlu1 %2254 }
 0x20b   : > { %2492 = vst.msk [vmem:[#allocation2 + $0xb8] sm:$0xff] %vm257_vm0, %v2426_v29  ;;  %2602 = vst.msk [vmem:[%s4410_s29] sm:$0xff] %vm257_vm0, %v2537_v48  ;;  %v2546_v58 = vld [vmem:[#allocation2 + $0x48] sm:$0xff]  ;;  %v2547_v6 = vld [vmem:[#allocation2 + $0x50] sm:$0xff] }
 0x20c   : > { %2604 = vst.msk [vmem:[%s4410_s29 + $0x10] sm:$0xff] %vm257_vm0, %v2539_v37  ;;  %2603 = vst.msk [vmem:[%s4410_s29 + $0x8] sm:$0xff] %vm257_vm0, %v2538_v25  ;;  %v2548_v27 = vld [vmem:[#allocation2 + $0x58] sm:$0xff]  ;;  %v2549_v56 = vld [vmem:[#allocation2 + $0x60] sm:$0xff] }
 0x20d   : > { %2493 = vst.msk [vmem:[#allocation2 + $0xc0] sm:$0xff] %vm257_vm0, %v2427_v32  ;;  %2494 = vst.msk [vmem:[#allocation2 + $0xc8] sm:$0xff] %vm257_vm0, %v2428_v24  ;;  %v2550_v40 = vld [vmem:[#allocation2 + $0x68] sm:$0xff]  ;;  %v2551_v61 = vld [vmem:[#allocation2 + $0x70] sm:$0xff]  ;;  %v2438_v32 = vadd.f32 %v4343_v20, %v1918_v51  ;;  %v2442_v20 = vadd.f32 %v4406_v50, %v1922_v39 }
 0x20e   : > { %2495 = vst.msk [vmem:[#allocation2 + $0xd0] sm:$0xff] %vm257_vm0, %v2429_v63  ;;  %2605 = vst.msk [vmem:[%s4410_s29 + $0x18] sm:$0xff] %vm257_vm0, %v2540_v53  ;;  %v2552_v47 = vld [vmem:[#allocation2 + $0x78] sm:$0xff]  ;;  %v2553_v10 = vld [vmem:[#allocation2 + $0x80] sm:$0xff] }
 0x20f   : > { %2606 = vst.msk [vmem:[%s4410_s29 + $0x20] sm:$0xff] %vm257_vm0, %v2541_v28  ;;  %2607 = vst.msk [vmem:[%s4410_s29 + $0x28] sm:$0xff] %vm257_vm0, %v2542_v46  ;;  %v2554_v23 = vld [vmem:[#allocation2 + $0x88] sm:$0xff]  ;;  %v2555_v31 = vld [vmem:[#allocation2 + $0x90] sm:$0xff] }
 0x210   : > { %2496 = vst.msk [vmem:[#allocation2 + $0xd8] sm:$0xff] %vm257_vm0, %v2430_v43  ;;  %2497 = vst.msk [vmem:[#allocation2 + $0xe0] sm:$0xff] %vm257_vm0, %v2431_v41  ;;  %v2556_v59 = vld [vmem:[#allocation2 + $0x98] sm:$0xff]  ;;  %v2557_v15 = vld [vmem:[#allocation2 + $0xa0] sm:$0xff]  ;;  %v2262_v41 = vpop.xlane.xlu0 %2261 }
 0x211   : > { %2498 = vst.msk [vmem:[#allocation2 + $0xe8] sm:$0xff] %vm257_vm0, %v2432_v34  ;;  %2608 = vst.msk [vmem:[%s4410_s29 + $0x30] sm:$0xff] %vm257_vm0, %v2543_v13  ;;  %v2558_v3 = vld [vmem:[#allocation2 + $0xa8] sm:$0xff]  ;;  %v2559_v17 = vld [vmem:[#allocation2 + $0xb0] sm:$0xff]  ;;  %v2269_v13 = vpop.xlane.xlu1 %2268 }
 0x212   : > { %2609 = vst.msk [vmem:[%s4410_s29 + $0x38] sm:$0xff] %vm257_vm0, %v2544_v44  ;;  %2610 = vst.msk [vmem:[%s4410_s29 + $0x40] sm:$0xff] %vm257_vm0, %v2545_v1  ;;  %v2560_v2 = vld [vmem:[#allocation2 + $0xb8] sm:$0xff]  ;;  %v1913_v30 = vld [vmem:[#allocation2 + $0xf0] sm:$0xff] }
 0x213   : > { %2611 = vst.msk [vmem:[%s4410_s29 + $0x48] sm:$0xff] %vm257_vm0, %v2546_v58  ;;  %2612 = vst.msk [vmem:[%s4410_s29 + $0x50] sm:$0xff] %vm257_vm0, %v2547_v6  ;;  %v1914_v26 = vld [vmem:[#allocation2 + $0xf8] sm:$0xff]  ;;  %v1915_v57 = vld [vmem:[#allocation2 + $0x100] sm:$0xff]  ;;  %v2433_v22 = vadd.f32 %v4819_v9, %v1913_v30 }
 0x214   : > { %2613 = vst.msk [vmem:[%s4410_s29 + $0x58] sm:$0xff] %vm257_vm0, %v2548_v27  ;;  %2614 = vst.msk [vmem:[%s4410_s29 + $0x60] sm:$0xff] %vm257_vm0, %v2549_v56  ;;  %v2561_v42 = vld [vmem:[#allocation2 + $0xc0] sm:$0xff]  ;;  %v2562_v52 = vld [vmem:[#allocation2 + $0xc8] sm:$0xff]  ;;  %v2434_v35 = vadd.f32 %v4175_v21, %v1914_v26  ;;  %v2435_v14 = vadd.f32 %v4182_v36, %v1915_v57 }
 0x215   : > { %2615 = vst.msk [vmem:[%s4410_s29 + $0x68] sm:$0xff] %vm257_vm0, %v2550_v40  ;;  %2616 = vst.msk [vmem:[%s4410_s29 + $0x70] sm:$0xff] %vm257_vm0, %v2551_v61  ;;  %v2563_v49 = vld [vmem:[#allocation2 + $0xd0] sm:$0xff]  ;;  %v1916_v54 = vld [vmem:[#allocation2 + $0x108] sm:$0xff] }
 0x216   : > { %2617 = vst.msk [vmem:[%s4410_s29 + $0x78] sm:$0xff] %vm257_vm0, %v2552_v47  ;;  %2618 = vst.msk [vmem:[%s4410_s29 + $0x80] sm:$0xff] %vm257_vm0, %v2553_v10  ;;  %v1917_v29 = vld [vmem:[#allocation2 + $0x110] sm:$0xff]  ;;  %v2436_v12 = vadd.f32 %v4196_v62, %v1916_v54  ;;  %v1919_v24 = vld [vmem:[#allocation2 + $0x120] sm:$0xff]  ;;  %v2441_v62 = vadd.f32 %v4380_v5, %v1921_v19 }
 0x217   : > { %2619 = vst.msk [vmem:[%s4410_s29 + $0x88] sm:$0xff] %vm257_vm0, %v2554_v23  ;;  %2620 = vst.msk [vmem:[%s4410_s29 + $0x90] sm:$0xff] %vm257_vm0, %v2555_v31  ;;  %v2564_v55 = vld [vmem:[#allocation2 + $0xd8] sm:$0xff]  ;;  %v2565_v8 = vld [vmem:[#allocation2 + $0xe0] sm:$0xff]  ;;  %v2437_v18 = vadd.f32 %v4336_v7, %v1917_v29  ;;  %v2439_v21 = vadd.f32 %v4345_v4, %v1919_v24 }
 0x218   : > { %2621 = vst.msk [vmem:[%s4410_s29 + $0x98] sm:$0xff] %vm257_vm0, %v2556_v59  ;;  %2622 = vst.msk [vmem:[%s4410_s29 + $0xa0] sm:$0xff] %vm257_vm0, %v2557_v15  ;;  %v2566_v16 = vld [vmem:[#allocation2 + $0xe8] sm:$0xff]  ;;  %v1923_v7 = vld [vmem:[#allocation2 + $0x140] sm:$0xff]  ;;  %v2276_v15 = vpop.xlane.xlu0 %2275 }
 0x219   : > { %2623 = vst.msk [vmem:[%s4410_s29 + $0xa8] sm:$0xff] %vm257_vm0, %v2558_v3  ;;  %2624 = vst.msk [vmem:[%s4410_s29 + $0xb0] sm:$0xff] %vm257_vm0, %v2559_v17  ;;  %v1920_v63 = vld [vmem:[#allocation2 + $0x128] sm:$0xff]  ;;  %v2443_v37 = vadd.f32 %v4430_v38, %v1923_v7  ;;  %v1925_v43 = vld [vmem:[#allocation2 + $0x150] sm:$0xff] }
 0x21a   : > { %2625 = vst.msk [vmem:[%s4410_s29 + $0xb8] sm:$0xff] %vm257_vm0, %v2560_v2  ;;  %2626 = vst.msk [vmem:[%s4410_s29 + $0xc0] sm:$0xff] %vm257_vm0, %v2561_v42  ;;  %v2440_v36 = vadd.f32 %v4366_v45, %v1920_v63  ;;  %v1924_v48 = vld [vmem:[#allocation2 + $0x148] sm:$0xff]  ;;  %v1926_v4 = vld [vmem:[#allocation2 + $0x158] sm:$0xff]  ;;  %v2445_v5 = vadd.f32 %v2248_v0, %v1925_v43  ;;  %v2283_v2 = vpop.xlane.xlu1 %2282 }
 0x21b   : > { %2627 = vst.msk [vmem:[%s4410_s29 + $0xc8] sm:$0xff] %vm257_vm0, %v2562_v52  ;;  %2628 = vst.msk [vmem:[%s4410_s29 + $0xd0] sm:$0xff] %vm257_vm0, %v2563_v49  ;;  %v2444_v25 = vadd.f32 %v2241_v60, %v1924_v48  ;;  %v1927_v45 = vld [vmem:[#allocation2 + $0x160] sm:$0xff]  ;;  %v2446_v33 = vadd.f32 %v2255_v11, %v1926_v4  ;;  %v1928_v50 = vld [vmem:[#allocation2 + $0x168] sm:$0xff] }
 0x21c   : > { %2629 = vst.msk [vmem:[%s4410_s29 + $0xd8] sm:$0xff] %vm257_vm0, %v2564_v55  ;;  %2630 = vst.msk [vmem:[%s4410_s29 + $0xe0] sm:$0xff] %vm257_vm0, %v2565_v8  ;;  %v2447_v34 = vadd.f32 %v2262_v41, %v1927_v45  ;;  %v2448_v58 = vadd.f32 %v2269_v13, %v1928_v50  ;;  %v1929_v40 = vld [vmem:[#allocation2 + $0x170] sm:$0xff]  ;;  %v1930_v3 = vld [vmem:[#allocation2 + $0x178] sm:$0xff]  ;;  %v2290_v0 = vpop.xlane.xlu0 %2289 }
 0x21d   : > { %2631 = vst.msk [vmem:[%s4410_s29 + $0xe8] sm:$0xff] %vm257_vm0, %v2566_v16  ;;  %2499 = vst.msk [vmem:[#allocation2 + $0xf0] sm:$0xff] %vm257_vm0, %v2433_v22  ;;  %v2449_v60 = vadd.f32 %v2276_v15, %v1929_v40  ;;  %v2450_v42 = vadd.f32 %v2283_v2, %v1930_v3  ;;  %v1931_v52 = vld [vmem:[#allocation2 + $0x180] sm:$0xff]  ;;  %v1932_v16 = vld [vmem:[#allocation2 + $0x188] sm:$0xff] }
 0x21e   : > { %2500 = vst.msk [vmem:[#allocation2 + $0xf8] sm:$0xff] %vm257_vm0, %v2434_v35  ;;  %2501 = vst.msk [vmem:[#allocation2 + $0x100] sm:$0xff] %vm257_vm0, %v2435_v14  ;;  %v2451_v55 = vadd.f32 %v2290_v0, %v1931_v52  ;;  %v2297_v30 = vpop.xlane.xlu1 %2296  ;;  %v1933_v9 = vld [vmem:[#allocation2 + $0x190] sm:$0xff]  ;;  %v1934_v14 = vld [vmem:[#allocation2 + $0x198] sm:$0xff] }
 0x21f   : > { %2502 = vst.msk [vmem:[#allocation2 + $0x108] sm:$0xff] %vm257_vm0, %v2436_v12  ;;  %2503 = vst.msk [vmem:[#allocation2 + $0x110] sm:$0xff] %vm257_vm0, %v2437_v18  ;;  %v2452_v26 = vadd.f32 %v2297_v30, %v1932_v16  ;;  %v1935_v12 = vld [vmem:[#allocation2 + $0x1a0] sm:$0xff]  ;;  %v1936_v19 = vld [vmem:[#allocation2 + $0x1a8] sm:$0xff] }
 0x220   : > { %2504 = vst.msk [vmem:[#allocation2 + $0x118] sm:$0xff] %vm257_vm0, %v2438_v32  ;;  %2505 = vst.msk [vmem:[#allocation2 + $0x120] sm:$0xff] %vm257_vm0, %v2439_v21  ;;  %v1938_v48 = vld [vmem:[#allocation2 + $0x1b8] sm:$0xff]  ;;  %v1939_v43 = vld [vmem:[#allocation2 + $0x1c0] sm:$0xff] }
 0x221   : > { %2506 = vst.msk [vmem:[#allocation2 + $0x128] sm:$0xff] %vm257_vm0, %v2440_v36  ;;  %2507 = vst.msk [vmem:[#allocation2 + $0x130] sm:$0xff] %vm257_vm0, %v2441_v62  ;;  %v1937_v62 = vld [vmem:[#allocation2 + $0x1b0] sm:$0xff]  ;;  %v1946_v3 = vld [vmem:[#allocation2 + $0x1f8] sm:$0xff] }
 0x222   : > { %2508 = vst.msk [vmem:[#allocation2 + $0x138] sm:$0xff] %vm257_vm0, %v2442_v20  ;;  %2509 = vst.msk [vmem:[#allocation2 + $0x140] sm:$0xff] %vm257_vm0, %v2443_v37  ;;  %v2304_v22 = vpop.xlane.xlu0 %2303  ;;  %v1947_v52 = vld [vmem:[#allocation2 + $0x200] sm:$0xff] }
 0x223   : > { %2510 = vst.msk [vmem:[#allocation2 + $0x148] sm:$0xff] %vm257_vm0, %v2444_v25  ;;  %2511 = vst.msk [vmem:[#allocation2 + $0x150] sm:$0xff] %vm257_vm0, %v2445_v5  ;;  %v2453_v35 = vadd.f32 %v2304_v22, %v1933_v9 }
 0x224   : > { %2512 = vst.msk [vmem:[#allocation2 + $0x158] sm:$0xff] %vm257_vm0, %v2446_v33  ;;  %2513 = vst.msk [vmem:[#allocation2 + $0x160] sm:$0xff] %vm257_vm0, %v2447_v34  ;;  %v2567_v53 = vld [vmem:[#allocation2 + $0xf0] sm:$0xff]  ;;  %v1940_v33 = vld [vmem:[#allocation2 + $0x1c8] sm:$0xff] }
 0x225   : > { %v2568_v28 = vld [vmem:[#allocation2 + $0xf8] sm:$0xff]  ;;  %v2569_v46 = vld [vmem:[#allocation2 + $0x100] sm:$0xff]  ;;  %2632 = vst.msk [vmem:[%s4410_s29 + $0xf0] sm:$0xff] %vm257_vm0, %v2567_v53  ;;  %2514 = vst.msk [vmem:[#allocation2 + $0x168] sm:$0xff] %vm257_vm0, %v2448_v58 }
 0x226   : > { %2633 = vst.msk [vmem:[%s4410_s29 + $0xf8] sm:$0xff] %vm257_vm0, %v2568_v28  ;;  %2634 = vst.msk [vmem:[%s4410_s29 + $0x100] sm:$0xff] %vm257_vm0, %v2569_v46  ;;  %v2570_v44 = vld [vmem:[#allocation2 + $0x108] sm:$0xff]  ;;  %v2571_v1 = vld [vmem:[#allocation2 + $0x110] sm:$0xff] }
 0x227   : > { %v2572_v38 = vld [vmem:[#allocation2 + $0x118] sm:$0xff]  ;;  %2635 = vst.msk [vmem:[%s4410_s29 + $0x108] sm:$0xff] %vm257_vm0, %v2570_v44  ;;  %2636 = vst.msk [vmem:[%s4410_s29 + $0x110] sm:$0xff] %vm257_vm0, %v2571_v1  ;;  %v2573_v6 = vld [vmem:[#allocation2 + $0x120] sm:$0xff]  ;;  %v2311_v29 = vpop.xlane.xlu1 %2310 }
 0x228   : > { %2637 = vst.msk [vmem:[%s4410_s29 + $0x118] sm:$0xff] %vm257_vm0, %v2572_v38  ;;  %v2574_v27 = vld [vmem:[#allocation2 + $0x128] sm:$0xff]  ;;  %v2575_v56 = vld [vmem:[#allocation2 + $0x130] sm:$0xff]  ;;  %2638 = vst.msk [vmem:[%s4410_s29 + $0x120] sm:$0xff] %vm257_vm0, %v2573_v6  ;;  %v2454_v51 = vadd.f32 %v2311_v29, %v1934_v14 }
 0x229   : > { %2639 = vst.msk [vmem:[%s4410_s29 + $0x128] sm:$0xff] %vm257_vm0, %v2574_v27  ;;  %2640 = vst.msk [vmem:[%s4410_s29 + $0x130] sm:$0xff] %vm257_vm0, %v2575_v56  ;;  %v2576_v61 = vld [vmem:[#allocation2 + $0x138] sm:$0xff]  ;;  %v2577_v47 = vld [vmem:[#allocation2 + $0x140] sm:$0xff] }
 0x22a   : > { %v2578_v10 = vld [vmem:[#allocation2 + $0x148] sm:$0xff]  ;;  %2641 = vst.msk [vmem:[%s4410_s29 + $0x138] sm:$0xff] %vm257_vm0, %v2576_v61  ;;  %2642 = vst.msk [vmem:[%s4410_s29 + $0x140] sm:$0xff] %vm257_vm0, %v2577_v47  ;;  %v2579_v23 = vld [vmem:[#allocation2 + $0x150] sm:$0xff] }
 0x22b   : > { %2643 = vst.msk [vmem:[%s4410_s29 + $0x148] sm:$0xff] %vm257_vm0, %v2578_v10  ;;  %v2580_v31 = vld [vmem:[#allocation2 + $0x158] sm:$0xff]  ;;  %v2581_v59 = vld [vmem:[#allocation2 + $0x160] sm:$0xff]  ;;  %2644 = vst.msk [vmem:[%s4410_s29 + $0x150] sm:$0xff] %vm257_vm0, %v2579_v23 }
 0x22c   : > { %2645 = vst.msk [vmem:[%s4410_s29 + $0x158] sm:$0xff] %vm257_vm0, %v2580_v31  ;;  %2646 = vst.msk [vmem:[%s4410_s29 + $0x160] sm:$0xff] %vm257_vm0, %v2581_v59  ;;  %v2582_v17 = vld [vmem:[#allocation2 + $0x168] sm:$0xff]  ;;  %v1941_v28 = vld [vmem:[#allocation2 + $0x1d0] sm:$0xff] }
 0x22d   : > { %2515 = vst.msk [vmem:[#allocation2 + $0x170] sm:$0xff] %vm257_vm0, %v2449_v60  ;;  %2647 = vst.msk [vmem:[%s4410_s29 + $0x168] sm:$0xff] %vm257_vm0, %v2582_v17  ;;  %v2318_v32 = vpop.xlane.xlu0 %2317  ;;  %v1942_v44 = vld [vmem:[#allocation2 + $0x1d8] sm:$0xff]  ;;  %v1943_v6 = vld [vmem:[#allocation2 + $0x1e0] sm:$0xff] }
 0x22e   : > { %2516 = vst.msk [vmem:[#allocation2 + $0x178] sm:$0xff] %vm257_vm0, %v2450_v42  ;;  %2517 = vst.msk [vmem:[#allocation2 + $0x180] sm:$0xff] %vm257_vm0, %v2451_v55  ;;  %v2455_v24 = vadd.f32 %v2318_v32, %v1935_v12  ;;  %v1944_v47 = vld [vmem:[#allocation2 + $0x1e8] sm:$0xff]  ;;  %v1945_v59 = vld [vmem:[#allocation2 + $0x1f0] sm:$0xff] }
 0x22f   : > { %2518 = vst.msk [vmem:[#allocation2 + $0x188] sm:$0xff] %vm257_vm0, %v2452_v26  ;;  %2519 = vst.msk [vmem:[#allocation2 + $0x190] sm:$0xff] %vm257_vm0, %v2453_v35 }
 0x230   : > { %2520 = vst.msk [vmem:[#allocation2 + $0x198] sm:$0xff] %vm257_vm0, %v2454_v51  ;;  %2521 = vst.msk [vmem:[#allocation2 + $0x1a0] sm:$0xff] %vm257_vm0, %v2455_v24 }
 0x233   : > { %v2325_v11 = vpop.xlane.xlu1 %2324 }
 0x234   : > { %v2583_v49 = vld [vmem:[#allocation2 + $0x170] sm:$0xff]  ;;  %v2456_v21 = vadd.f32 %v2325_v11, %v1936_v19 }
 0x235   : > { %2648 = vst.msk [vmem:[%s4410_s29 + $0x170] sm:$0xff] %vm257_vm0, %v2583_v49  ;;  %v2584_v8 = vld [vmem:[#allocation2 + $0x178] sm:$0xff]  ;;  %v2585_v57 = vld [vmem:[#allocation2 + $0x180] sm:$0xff] }
 0x236   : > { %2649 = vst.msk [vmem:[%s4410_s29 + $0x178] sm:$0xff] %vm257_vm0, %v2584_v8  ;;  %2650 = vst.msk [vmem:[%s4410_s29 + $0x180] sm:$0xff] %vm257_vm0, %v2585_v57  ;;  %v2586_v54 = vld [vmem:[#allocation2 + $0x188] sm:$0xff]  ;;  %v2587_v18 = vld [vmem:[#allocation2 + $0x190] sm:$0xff] }
 0x237   : > { %2651 = vst.msk [vmem:[%s4410_s29 + $0x188] sm:$0xff] %vm257_vm0, %v2586_v54  ;;  %2652 = vst.msk [vmem:[%s4410_s29 + $0x190] sm:$0xff] %vm257_vm0, %v2587_v18  ;;  %v2588_v63 = vld [vmem:[#allocation2 + $0x198] sm:$0xff]  ;;  %v2589_v36 = vld [vmem:[#allocation2 + $0x1a0] sm:$0xff] }
 0x238   : > { %2653 = vst.msk [vmem:[%s4410_s29 + $0x198] sm:$0xff] %vm257_vm0, %v2588_v63  ;;  %2522 = vst.msk [vmem:[#allocation2 + $0x1a8] sm:$0xff] %vm257_vm0, %v2456_v21 }
 0x239   : > { %2654 = vst.msk [vmem:[%s4410_s29 + $0x1a0] sm:$0xff] %vm257_vm0, %v2589_v36  ;;  %v2332_v39 = vpop.xlane.xlu0 %2331 }
 0x23a   : > { %v2457_v7 = vadd.f32 %v2332_v39, %v1937_v62 }
 0x23c   : > { %2523 = vst.msk [vmem:[#allocation2 + $0x1b0] sm:$0xff] %vm257_vm0, %v2457_v7 }
 0x23e   : > { %v2339_v37 = vpop.xlane.xlu1 %2338 }
 0x23f   : > { %v2590_v20 = vld [vmem:[#allocation2 + $0x1a8] sm:$0xff]  ;;  %v2458_v25 = vadd.f32 %v2339_v37, %v1938_v48 }
 0x240   : > { %2655 = vst.msk [vmem:[%s4410_s29 + $0x1a8] sm:$0xff] %vm257_vm0, %v2590_v20 }
 0x241   : > { %2524 = vst.msk [vmem:[#allocation2 + $0x1b8] sm:$0xff] %vm257_vm0, %v2458_v25 }
 0x243   : > { %v2591_v4 = vld [vmem:[#allocation2 + $0x1b0] sm:$0xff] }
 0x244   : > { %2656 = vst.msk [vmem:[%s4410_s29 + $0x1b0] sm:$0xff] %vm257_vm0, %v2591_v4  ;;  %v2346_v41 = vpop.xlane.xlu0 %2345 }
 0x245   : > { %v2459_v45 = vadd.f32 %v2346_v41, %v1939_v43 }
 0x247   : > { %2525 = vst.msk [vmem:[#allocation2 + $0x1c0] sm:$0xff] %vm257_vm0, %v2459_v45 }
 0x248   : > { %v2592_v5 = vld [vmem:[#allocation2 + $0x1b8] sm:$0xff] }
 0x249   : > { %2657 = vst.msk [vmem:[%s4410_s29 + $0x1b8] sm:$0xff] %vm257_vm0, %v2592_v5 }
 0x24a   : > { %v2353_v34 = vpop.xlane.xlu1 %2352 }
 0x24b   : > { %v2460_v50 = vadd.f32 %v2353_v34, %v1940_v33 }
 0x24d   : > { %2526 = vst.msk [vmem:[#allocation2 + $0x1c8] sm:$0xff] %vm257_vm0, %v2460_v50 }
 0x24e   : > { %v2593_v53 = vld [vmem:[#allocation2 + $0x1c0] sm:$0xff] }
 0x24f   : > { %2658 = vst.msk [vmem:[%s4410_s29 + $0x1c0] sm:$0xff] %vm257_vm0, %v2593_v53 }
 0x250   : > { %v2360_v46 = vpop.xlane.xlu0 %2359 }
 0x251   : > { %v2461_v13 = vadd.f32 %v2360_v46, %v1941_v28 }
 0x253   : > { %2527 = vst.msk [vmem:[#allocation2 + $0x1d0] sm:$0xff] %vm257_vm0, %v2461_v13 }
 0x254   : > { %v2594_v1 = vld [vmem:[#allocation2 + $0x1c8] sm:$0xff] }
 0x255   : > { %2659 = vst.msk [vmem:[%s4410_s29 + $0x1c8] sm:$0xff] %vm257_vm0, %v2594_v1  ;;  %v2367_v38 = vpop.xlane.xlu1 %2366 }
 0x256   : > { %v2462_v58 = vadd.f32 %v2367_v38, %v1942_v44 }
 0x258   : > { %2528 = vst.msk [vmem:[#allocation2 + $0x1d8] sm:$0xff] %vm257_vm0, %v2462_v58 }
 0x25a   : > { %v2595_v27 = vld [vmem:[#allocation2 + $0x1d0] sm:$0xff] }
 0x25b   : > { %2660 = vst.msk [vmem:[%s4410_s29 + $0x1d0] sm:$0xff] %vm257_vm0, %v2595_v27  ;;  %v2374_v56 = vpop.xlane.xlu0 %2373 }
 0x25c   : > { %v2463_v40 = vadd.f32 %v2374_v56, %v1943_v6 }
 0x25e   : > { %2529 = vst.msk [vmem:[#allocation2 + $0x1e0] sm:$0xff] %vm257_vm0, %v2463_v40 }
 0x25f   : > { %v2596_v61 = vld [vmem:[#allocation2 + $0x1d8] sm:$0xff] }
 0x260   : > { %2661 = vst.msk [vmem:[%s4410_s29 + $0x1d8] sm:$0xff] %vm257_vm0, %v2596_v61 }
 0x261   : > { %v2381_v10 = vpop.xlane.xlu1 %2380 }
 0x262   : > { %v2464_v23 = vadd.f32 %v2381_v10, %v1944_v47 }
 0x264   : > { %2530 = vst.msk [vmem:[#allocation2 + $0x1e8] sm:$0xff] %vm257_vm0, %v2464_v23 }
 0x265   : > { %v2597_v31 = vld [vmem:[#allocation2 + $0x1e0] sm:$0xff] }
 0x266   : > { %2662 = vst.msk [vmem:[%s4410_s29 + $0x1e0] sm:$0xff] %vm257_vm0, %v2597_v31 }
 0x267   : > { %v2388_v15 = vpop.xlane.xlu0 %2387 }
 0x268   : > { %v2465_v60 = vadd.f32 %v2388_v15, %v1945_v59 }
 0x26a   : > { %2531 = vst.msk [vmem:[#allocation2 + $0x1f0] sm:$0xff] %vm257_vm0, %v2465_v60 }
 0x26b   : > { %v2598_v17 = vld [vmem:[#allocation2 + $0x1e8] sm:$0xff] }
 0x26c   : > { %2663 = vst.msk [vmem:[%s4410_s29 + $0x1e8] sm:$0xff] %vm257_vm0, %v2598_v17  ;;  %v2395_v2 = vpop.xlane.xlu1 %2394 }
 0x26d   : > { %v2466_v42 = vadd.f32 %v2395_v2, %v1946_v3 }
 0x26f   : > { %2532 = vst.msk [vmem:[#allocation2 + $0x1f8] sm:$0xff] %vm257_vm0, %v2466_v42 }
 0x271   : > { %v2599_v49 = vld [vmem:[#allocation2 + $0x1f0] sm:$0xff] }
 0x272   : > { %2664 = vst.msk [vmem:[%s4410_s29 + $0x1f0] sm:$0xff] %vm257_vm0, %v2599_v49  ;;  %v2402_v0 = vpop.xlane.xlu0 %2401 }
 0x273   : > { %v2467_v55 = vadd.f32 %v2402_v0, %v1947_v52 }
 0x275   : > { %2533 = vst.msk [vmem:[#allocation2 + $0x200] sm:$0xff] %vm257_vm0, %v2467_v55 }
 0x276   : > { %v2600_v8 = vld [vmem:[#allocation2 + $0x1f8] sm:$0xff] }
 0x277   : > { %2665 = vst.msk [vmem:[%s4410_s29 + $0x1f8] sm:$0xff] %vm257_vm0, %v2600_v8 }
 0x279   : > { %2673 = sbr.rel (!%p3587_p9) target bundleno = 702 (0x2be), region = 48 }
 0x27c   : > { %v2601_v16 = vld [vmem:[#allocation2 + $0x200] sm:$0xff] }
 0x27d   : > { %2666 = vst.msk [vmem:[%s4410_s29 + $0x200] sm:$0xff] %vm257_vm0, %v2601_v16 }
 0x27e   : > { %s4837_s19 = smov (!%p2676_p8, %s2675_s19), 65 }
 0x27f   : > { %s3198_s26 = sshll.u32 %s4837_s19, 7 }
 0x280   : > { %p3201_p3 = scmp.eq.s32.totalorder %s3198_s26, 0 }
 0x281   : > { %s4609_s22 = sshrl.u32 (!%p3201_p3), %s4837_s19, 6 }
 0x282   : > { %2684 = sbr.rel (%p3201_p3) target bundleno = 702 (0x2be), region = 52  ;;  %p3202_p9 = scmp.le.s32.totalorder (!%p3201_p3), %s4609_s22, 0 }
 0x287   : > { %3119 = sbr.rel (%p3202_p9) target bundleno = 685 (0x2ad), region = 143  ;;  %s4820_s12 = smov (!%p3202_p9), %s4603_s25 }
 0x288   : > { %s4821_s28 = smov (!%p3202_p9), %s4410_s29  ;;  %s4618_s30 = smov (!%p3202_p9), 0  }
 0x289   : > { %s4620_s3 = smov (!%p3202_p9), 0  }
 0x28c LB: >> { %v2873_v30 = vld [vmem:[%s3489_s28] sm:$0xff]  ;;  %v2875_v26 = vld [vmem:[%s3489_s28 + $0x8] sm:$0xff]  ;;  %v2877_v57 = vld [vmem:[%s3489_s28 + $0x10] sm:$0xff]  ;;  %s3001_s5 = sadd.s32 1, %s3493_s30  ;;  %s2867_s3 = sadd.s32 1, %s3497_s3   ;;  %s3497_s3 = sphi %s4620_s3, %s2867_s3   ;;  %s3493_s30 = sphi %s4618_s30, %s4824_s30   ;;  %s3489_s28 = sphi %s4821_s28, %s4823_s28   ;;  %s3485_s12 = sphi %s4820_s12, %s4822_s12  }
 0x28d   : >> { %2874 = vst [vmem:[%s3485_s12] sm:$0xff] %v2873_v30  ;;  %2876 = vst [vmem:[%s3485_s12 + $0x8] sm:$0xff] %v2875_v26  ;;  %v2879_v9 = vld [vmem:[%s3489_s28 + $0x18] sm:$0xff]  ;;  %v2881_v22 = vld [vmem:[%s3489_s28 + $0x20] sm:$0xff]  ;;  %p3002_p6 = scmp.ge.s32.totalorder %s3001_s5, %s4609_s22  ;;  %p2866_p7 = scmp.ge.s32.totalorder %s2867_s3, %s4609_s22 }
 0x28e   : >> { %2878 = vst [vmem:[%s3485_s12 + $0x10] sm:$0xff] %v2877_v57  ;;  %v2883_v35 = vld [vmem:[%s3489_s28 + $0x28] sm:$0xff]  ;;  %2880 = vst [vmem:[%s3485_s12 + $0x18] sm:$0xff] %v2879_v9  ;;  %v2885_v14 = vld [vmem:[%s3489_s28 + $0x30] sm:$0xff] }
 0x28f   : >> { %2882 = vst [vmem:[%s3485_s12 + $0x20] sm:$0xff] %v2881_v22  ;;  %2884 = vst [vmem:[%s3485_s12 + $0x28] sm:$0xff] %v2883_v35  ;;  %v2887_v54 = vld [vmem:[%s3489_s28 + $0x38] sm:$0xff]  ;;  %v2889_v29 = vld [vmem:[%s3489_s28 + $0x40] sm:$0xff]  ;;  %s4839_s5 = smov (%p3002_p6, %s3001_s5), 0 }
 0x290   : >> { %2886 = vst [vmem:[%s3485_s12 + $0x30] sm:$0xff] %v2885_v14  ;;  %2888 = vst [vmem:[%s3485_s12 + $0x38] sm:$0xff] %v2887_v54  ;;  %v2891_v51 = vld [vmem:[%s3489_s28 + $0x48] sm:$0xff]  ;;  %v2893_v12 = vld [vmem:[%s3489_s28 + $0x50] sm:$0xff]  ;;  %s3203_s6 = sshll.u32 %s4839_s5, 9  ;;  %s4824_s30 = smov %s4839_s5 }
 0x291   : >> { %2890 = vst [vmem:[%s3485_s12 + $0x40] sm:$0xff] %v2889_v29  ;;  %v2895_v18 = vld [vmem:[%s3489_s28 + $0x58] sm:$0xff]  ;;  %2892 = vst [vmem:[%s3485_s12 + $0x48] sm:$0xff] %v2891_v51  ;;  %v2897_v32 = vld [vmem:[%s3489_s28 + $0x60] sm:$0xff]  ;;  %s4676_s9 = scalar_lea.vmem %s4410_s29, %s3203_s6 [#allocation7]   ;;  %s4679_s27 = scalar_lea.vmem %s4603_s25, %s3203_s6  }
 0x292   : >> { %2894 = vst [vmem:[%s3485_s12 + $0x50] sm:$0xff] %v2893_v12  ;;  %2896 = vst [vmem:[%s3485_s12 + $0x58] sm:$0xff] %v2895_v18  ;;  %v2899_v24 = vld [vmem:[%s3489_s28 + $0x68] sm:$0xff]  ;;  %v2901_v63 = vld [vmem:[%s3489_s28 + $0x70] sm:$0xff] }
 0x293   : >> { %2898 = vst [vmem:[%s3485_s12 + $0x60] sm:$0xff] %v2897_v32  ;;  %2900 = vst [vmem:[%s3485_s12 + $0x68] sm:$0xff] %v2899_v24  ;;  %v2903_v19 = vld [vmem:[%s3489_s28 + $0x78] sm:$0xff]  ;;  %v2905_v11 = vld [vmem:[%s3489_s28 + $0x80] sm:$0xff] }
 0x294   : >> { %2902 = vst [vmem:[%s3485_s12 + $0x70] sm:$0xff] %v2901_v63  ;;  %v2907_v21 = vld [vmem:[%s3489_s28 + $0x88] sm:$0xff]  ;;  %2904 = vst [vmem:[%s3485_s12 + $0x78] sm:$0xff] %v2903_v19  ;;  %v2909_v36 = vld [vmem:[%s3489_s28 + $0x90] sm:$0xff] }
 0x295   : >> { %2906 = vst [vmem:[%s3485_s12 + $0x80] sm:$0xff] %v2905_v11  ;;  %2908 = vst [vmem:[%s3485_s12 + $0x88] sm:$0xff] %v2907_v21  ;;  %v2911_v62 = vld [vmem:[%s3489_s28 + $0x98] sm:$0xff]  ;;  %v2913_v39 = vld [vmem:[%s3489_s28 + $0xa0] sm:$0xff] }
 0x296   : >> { %2910 = vst [vmem:[%s3485_s12 + $0x90] sm:$0xff] %v2909_v36  ;;  %2912 = vst [vmem:[%s3485_s12 + $0x98] sm:$0xff] %v2911_v62  ;;  %v2915_v7 = vld [vmem:[%s3489_s28 + $0xa8] sm:$0xff]  ;;  %v2917_v48 = vld [vmem:[%s3489_s28 + $0xb0] sm:$0xff] }
 0x297   : >> { %2914 = vst [vmem:[%s3485_s12 + $0xa0] sm:$0xff] %v2913_v39  ;;  %v2919_v20 = vld [vmem:[%s3489_s28 + $0xb8] sm:$0xff]  ;;  %2916 = vst [vmem:[%s3485_s12 + $0xa8] sm:$0xff] %v2915_v7  ;;  %v2921_v37 = vld [vmem:[%s3489_s28 + $0xc0] sm:$0xff] }
 0x298   : >> { %2918 = vst [vmem:[%s3485_s12 + $0xb0] sm:$0xff] %v2917_v48  ;;  %2920 = vst [vmem:[%s3485_s12 + $0xb8] sm:$0xff] %v2919_v20  ;;  %v2923_v25 = vld [vmem:[%s3489_s28 + $0xc8] sm:$0xff]  ;;  %v2925_v43 = vld [vmem:[%s3489_s28 + $0xd0] sm:$0xff] }
 0x299   : >> { %2922 = vst [vmem:[%s3485_s12 + $0xc0] sm:$0xff] %v2921_v37  ;;  %2924 = vst [vmem:[%s3485_s12 + $0xc8] sm:$0xff] %v2923_v25  ;;  %v2927_v4 = vld [vmem:[%s3489_s28 + $0xd8] sm:$0xff]  ;;  %v2929_v41 = vld [vmem:[%s3489_s28 + $0xe0] sm:$0xff] }
 0x29a   : >> { %2926 = vst [vmem:[%s3485_s12 + $0xd0] sm:$0xff] %v2925_v43  ;;  %v2931_v45 = vld [vmem:[%s3489_s28 + $0xe8] sm:$0xff]  ;;  %2928 = vst [vmem:[%s3485_s12 + $0xd8] sm:$0xff] %v2927_v4  ;;  %v2933_v5 = vld [vmem:[%s3489_s28 + $0xf0] sm:$0xff] }
 0x29b   : >> { %2930 = vst [vmem:[%s3485_s12 + $0xe0] sm:$0xff] %v2929_v41  ;;  %2932 = vst [vmem:[%s3485_s12 + $0xe8] sm:$0xff] %v2931_v45  ;;  %v2935_v33 = vld [vmem:[%s3489_s28 + $0xf8] sm:$0xff]  ;;  %v2937_v34 = vld [vmem:[%s3489_s28 + $0x100] sm:$0xff] }
 0x29c   : >> { %2934 = vst [vmem:[%s3485_s12 + $0xf0] sm:$0xff] %v2933_v5  ;;  %2936 = vst [vmem:[%s3485_s12 + $0xf8] sm:$0xff] %v2935_v33  ;;  %v2939_v50 = vld [vmem:[%s3489_s28 + $0x108] sm:$0xff]  ;;  %v2941_v53 = vld [vmem:[%s3489_s28 + $0x110] sm:$0xff] }
 0x29d   : >> { %2938 = vst [vmem:[%s3485_s12 + $0x100] sm:$0xff] %v2937_v34  ;;  %v2943_v28 = vld [vmem:[%s3489_s28 + $0x118] sm:$0xff]  ;;  %2940 = vst [vmem:[%s3485_s12 + $0x108] sm:$0xff] %v2939_v50  ;;  %v2945_v46 = vld [vmem:[%s3489_s28 + $0x120] sm:$0xff] }
 0x29e   : >> { %2942 = vst [vmem:[%s3485_s12 + $0x110] sm:$0xff] %v2941_v53  ;;  %2944 = vst [vmem:[%s3485_s12 + $0x118] sm:$0xff] %v2943_v28  ;;  %v2947_v13 = vld [vmem:[%s3489_s28 + $0x128] sm:$0xff]  ;;  %v2949_v44 = vld [vmem:[%s3489_s28 + $0x130] sm:$0xff] }
 0x29f   : >> { %2946 = vst [vmem:[%s3485_s12 + $0x120] sm:$0xff] %v2945_v46  ;;  %2948 = vst [vmem:[%s3485_s12 + $0x128] sm:$0xff] %v2947_v13  ;;  %v2951_v1 = vld [vmem:[%s3489_s28 + $0x138] sm:$0xff]  ;;  %v2953_v38 = vld [vmem:[%s3489_s28 + $0x140] sm:$0xff] }
 0x2a0   : >> { %2950 = vst [vmem:[%s3485_s12 + $0x130] sm:$0xff] %v2949_v44  ;;  %v2955_v58 = vld [vmem:[%s3489_s28 + $0x148] sm:$0xff]  ;;  %2952 = vst [vmem:[%s3485_s12 + $0x138] sm:$0xff] %v2951_v1  ;;  %v2957_v6 = vld [vmem:[%s3489_s28 + $0x150] sm:$0xff] }
 0x2a1   : >> { %2954 = vst [vmem:[%s3485_s12 + $0x140] sm:$0xff] %v2953_v38  ;;  %2956 = vst [vmem:[%s3485_s12 + $0x148] sm:$0xff] %v2955_v58  ;;  %v2959_v27 = vld [vmem:[%s3489_s28 + $0x158] sm:$0xff]  ;;  %v2961_v56 = vld [vmem:[%s3489_s28 + $0x160] sm:$0xff] }
 0x2a2   : >> { %2958 = vst [vmem:[%s3485_s12 + $0x150] sm:$0xff] %v2957_v6  ;;  %2960 = vst [vmem:[%s3485_s12 + $0x158] sm:$0xff] %v2959_v27  ;;  %v2963_v40 = vld [vmem:[%s3489_s28 + $0x168] sm:$0xff]  ;;  %v2965_v61 = vld [vmem:[%s3489_s28 + $0x170] sm:$0xff] }
 0x2a3   : >> { %2962 = vst [vmem:[%s3485_s12 + $0x160] sm:$0xff] %v2961_v56  ;;  %v2967_v47 = vld [vmem:[%s3489_s28 + $0x178] sm:$0xff]  ;;  %2964 = vst [vmem:[%s3485_s12 + $0x168] sm:$0xff] %v2963_v40  ;;  %v2969_v10 = vld [vmem:[%s3489_s28 + $0x180] sm:$0xff] }
 0x2a4   : >> { %2966 = vst [vmem:[%s3485_s12 + $0x170] sm:$0xff] %v2965_v61  ;;  %2968 = vst [vmem:[%s3485_s12 + $0x178] sm:$0xff] %v2967_v47  ;;  %v2971_v23 = vld [vmem:[%s3489_s28 + $0x188] sm:$0xff]  ;;  %v2973_v31 = vld [vmem:[%s3489_s28 + $0x190] sm:$0xff] }
 0x2a5   : >> { %2970 = vst [vmem:[%s3485_s12 + $0x180] sm:$0xff] %v2969_v10  ;;  %2972 = vst [vmem:[%s3485_s12 + $0x188] sm:$0xff] %v2971_v23  ;;  %v2975_v59 = vld [vmem:[%s3489_s28 + $0x198] sm:$0xff]  ;;  %v2977_v15 = vld [vmem:[%s3489_s28 + $0x1a0] sm:$0xff] }
 0x2a6   : >> { %2974 = vst [vmem:[%s3485_s12 + $0x190] sm:$0xff] %v2973_v31  ;;  %v2979_v60 = vld [vmem:[%s3489_s28 + $0x1a8] sm:$0xff]  ;;  %2976 = vst [vmem:[%s3485_s12 + $0x198] sm:$0xff] %v2975_v59  ;;  %v2981_v3 = vld [vmem:[%s3489_s28 + $0x1b0] sm:$0xff] }
 0x2a7   : >> { %2978 = vst [vmem:[%s3485_s12 + $0x1a0] sm:$0xff] %v2977_v15  ;;  %2980 = vst [vmem:[%s3485_s12 + $0x1a8] sm:$0xff] %v2979_v60  ;;  %v2983_v17 = vld [vmem:[%s3489_s28 + $0x1b8] sm:$0xff]  ;;  %v2985_v2 = vld [vmem:[%s3489_s28 + $0x1c0] sm:$0xff] }
 0x2a8   : >> { %2982 = vst [vmem:[%s3485_s12 + $0x1b0] sm:$0xff] %v2981_v3  ;;  %2984 = vst [vmem:[%s3485_s12 + $0x1b8] sm:$0xff] %v2983_v17  ;;  %v2987_v42 = vld [vmem:[%s3489_s28 + $0x1c8] sm:$0xff]  ;;  %v2989_v52 = vld [vmem:[%s3489_s28 + $0x1d0] sm:$0xff]  ;;  %2869 = sbr.rel (!%p2866_p7) target bundleno = 652 (0x28c), region = 149 }
 0x2a9   : >> { %2986 = vst [vmem:[%s3485_s12 + $0x1c0] sm:$0xff] %v2985_v2  ;;  %v2991_v49 = vld [vmem:[%s3489_s28 + $0x1d8] sm:$0xff]  ;;  %2988 = vst [vmem:[%s3485_s12 + $0x1c8] sm:$0xff] %v2987_v42  ;;  %v2993_v0 = vld [vmem:[%s3489_s28 + $0x1e0] sm:$0xff] }
 0x2aa   : >> { %2990 = vst [vmem:[%s3485_s12 + $0x1d0] sm:$0xff] %v2989_v52  ;;  %2992 = vst [vmem:[%s3485_s12 + $0x1d8] sm:$0xff] %v2991_v49  ;;  %v2995_v55 = vld [vmem:[%s3489_s28 + $0x1e8] sm:$0xff]  ;;  %v2997_v8 = vld [vmem:[%s3489_s28 + $0x1f0] sm:$0xff] }
 0x2ab   : >> { %2994 = vst [vmem:[%s3485_s12 + $0x1e0] sm:$0xff] %v2993_v0  ;;  %2996 = vst [vmem:[%s3485_s12 + $0x1e8] sm:$0xff] %v2995_v55  ;;  %v2999_v16 = vld [vmem:[%s3489_s28 + $0x1f8] sm:$0xff]  ;;  %s4823_s28 = smov %s4676_s9 }
 0x2ac   : >> { %2998 = vst [vmem:[%s3485_s12 + $0x1f0] sm:$0xff] %v2997_v8  ;;  %3000 = vst [vmem:[%s3485_s12 + $0x1f8] sm:$0xff] %v2999_v16  ;;  %s4822_s12 = smov %s4679_s27 }
 0x2ad PF: > { %s4784_s18 = sand.u32 63, %s4837_s19   ;;  %s3214_s4 = sshll.u32 %s4609_s22, 9 }
 0x2ae   : > { %s3012_s8 = scalar_lea.vmem %s4410_s29, %s3214_s4 [#allocation7]   ;;  %s3014_s15 = scalar_lea.vmem %s4603_s25, %s3214_s4  }
 0x2af   : > { %p3208_p10 = scmp.le.s32.totalorder %s4784_s18, 0 }
 0x2b0   : > { %s3499_s20 = smov (!%p3208_p10), %s3014_s15   ;;  %s3503_s7 = smov (!%p3208_p10), %s3012_s8  }
 0x2b1   : > { %3133 = sbr.rel (%p3208_p10) target bundleno = 702 (0x2be), region = 154  ;;  %s3507_s17 = smov (!%p3208_p10), 0  }
 0x2b2   : > { %s3511_s23 = smov (!%p3208_p10), 0  }
 0x2b6 LB: >> { %v3024_v30 = vld [vmem:[%s3505_s7] sm:$0xff]  ;;  %s3026_s19 = sadd.s32 1, %s3509_s17  ;;  %s3018_s23 = sadd.s32 1, %s3513_s23   ;;  %s3513_s23 = sphi %s3511_s23, %s3018_s23   ;;  %s3509_s17 = sphi %s3507_s17, %s3508_s17   ;;  %s3505_s7 = sphi %s3503_s7, %s3031_s7   ;;  %s3501_s20 = sphi %s3499_s20, %s3032_s20  }
 0x2b7   : >> { %3025 = vst [vmem:[%s3501_s20] sm:$0xff] %v3024_v30  ;;  %p3027_p11 = scmp.ge.s32.totalorder %s3026_s19, %s4784_s18  ;;  %p3017_p13 = scmp.ge.s32.totalorder %s3018_s23, %s4784_s18 }
 0x2b9   : >> { %s4841_s19 = smov (%p3027_p11, %s3026_s19), 0  ;;  %3020 = sbr.rel (!%p3017_p13) target bundleno = 694 (0x2b6), region = 160 }
 0x2ba   : >> { %s3209_s29 = sshll.u32 %s4841_s19, 3  ;;  %s3508_s17 = smov %s4841_s19  }
 0x2bb   : >> { %s3031_s7 = scalar_lea.vmem %s3012_s8, %s3209_s29 [#allocation7]   ;;  %s3032_s20 = scalar_lea.vmem %s3014_s15, %s3209_s29  }
 0x2be PF: > { %s18_s14 = sadd.s32 1, %s3481_s14   ;;  %s4825_s9 = smov %s3465_s10 }
 0x2bf   : > { %p15_p0 = scmp.ge.s32.totalorder %s18_s14, 4   ;;  %s4826_s10 = smov %s3469_s11 }
 0x2c0   : > { %s4827_s11 = smov %s3585_s21  ;;  %s4828_s12 = smov %s3477_s13 }
 0x2c1   : > { %s4829_s13 = smov %s4831_s16  ;;  %17 = sbr.rel (!%p15_p0) target bundleno = 6 (0x6), region = 171 }
 0x2c6   :  { %3048 = vsyncpa [#allocation4], 1 }
 0x2c7   :  { %3050 = vsyncpa [#allocation4 + $0x1], 1 }
 0x2c8   :  { %3051 = vsyncpa [#allocation6], 1 }
 0x2c9   :  { %3053 = vsyncpa [#allocation6 + $0x1], 1 }

</bundles_post_ra>
